<compile_context>
chip_gen: v5e
topology: v5e:2x2
jax: 0.10.0
libtpu: 0.0.40
codegen_flags: <defaults>
</compile_context>

<pallas_src>
import functools
import math

import jax
import jax.numpy as jnp
from jax.experimental import pallas as pl
from jax.experimental.pallas import tpu as pltpu


def _round_up(n, m):
    return (n + m - 1) // m * m


def _pad_to(a, shape):
    pads = [(0, t - s) for s, t in zip(a.shape, shape)]
    if all(p == (0, 0) for p in pads):
        return a
    return jnp.pad(a, pads)


@functools.lru_cache(maxsize=None)
def _vmem_limit_bytes():
    # ~3/4 of physical VMEM: ~48 MiB on v7x (64 MiB), ~96 MiB on v5e/v6e (128 MiB).
    try:
        cap = int(pltpu.get_tpu_info().vmem_capacity_bytes)
    except Exception:
        cap = 64 * 1024 * 1024
    return min((cap * 3) // 4, 100 * 1024 * 1024)


# ----------------------------------------------------------------------------- LayerNorm helper
def _layer_norm_rows(x, gamma, beta, true_c, eps):
    """x: (T, Cp) f32, zero-padded beyond true_c; gamma/beta: (1, Cp), zero-padded.
    Matches the module: unbiased (N-1) variance, eps added to std."""
    cp = x.shape[-1]
    mean = jnp.sum(x, axis=-1, keepdims=True) * (1.0 / true_c)
    xc = x - mean
    if cp != true_c:
        col = jax.lax.broadcasted_iota(jnp.int32, x.shape, x.ndim - 1)
        xc = jnp.where(col < true_c, xc, 0.0)
    var = jnp.sum(xc * xc, axis=-1, keepdims=True) * (1.0 / (true_c - 1))
    return gamma * xc / (jnp.sqrt(var) + eps) + beta


# ----------------------------------------------------------------------------- LN + projection
def _ln_proj_kernel(x_ref, g_ref, b_ref, w_ref, bias_ref, o_ref, *, true_c, eps):
    x = x_ref[0].astype(jnp.float32)                                    # (T, Cp)
    h = _layer_norm_rows(x, g_ref[...], b_ref[...], true_c, eps)
    y = jnp.dot(h.astype(w_ref.dtype), w_ref[...],
                preferred_element_type=jnp.float32)
    y = y + bias_ref[...]
    o_ref[...] = y[None].astype(o_ref.dtype)


def _proj_kernel(x_ref, w_ref, bias_ref, o_ref):
    y = jnp.dot(x_ref[0].astype(w_ref.dtype), w_ref[...],
                preferred_element_type=jnp.float32)
    y = y + bias_ref[...]
    o_ref[...] = y[None].astype(o_ref.dtype)


def ln_project(x, gamma, beta, w, bias, *, true_c, eps=1e-6, out_dtype=jnp.bfloat16):
    """(optionally fused-QKV) projection of LN(x): x (B,T,Cp) f32 -> (B,T,Nout) bf16."""
    B, T, Cp = x.shape
    Nout = w.shape[1]
    return pl.pallas_call(
        functools.partial(_ln_proj_kernel, true_c=true_c, eps=eps),
        out_shape=jax.ShapeDtypeStruct((B, T, Nout), out_dtype),
        grid_spec=pltpu.PrefetchScalarGridSpec(
            num_scalar_prefetch=0,
            grid=(B,),
            in_specs=[
                pl.BlockSpec((1, T, Cp), lambda b: (b, 0, 0)),
                pl.BlockSpec((1, Cp), lambda b: (0, 0)),
                pl.BlockSpec((1, Cp), lambda b: (0, 0)),
                pl.BlockSpec((Cp, Nout), lambda b: (0, 0)),     # resident weight
                pl.BlockSpec((1, Nout), lambda b: (0, 0)),
            ],
            out_specs=pl.BlockSpec((1, T, Nout), lambda b: (b, 0, 0)),
        ),
        compiler_params=pltpu.CompilerParams(
            dimension_semantics=("parallel",), vmem_limit_bytes=_vmem_limit_bytes()),
        cost_estimate=pl.CostEstimate(
            flops=int(2 * B * T * Cp * Nout + 10 * B * T * Cp),
            transcendentals=int(B * T),
            bytes_accessed=int(B * T * Cp * 4 + Cp * Nout * 2 + Nout * 4 + B * T * Nout * 2)),
    )(x, gamma, beta, w, bias)


def project(x, w, bias, *, out_dtype=jnp.bfloat16):
    """Plain projection (no LN): used for the encoder K|V fused matmul."""
    B, T, Cp = x.shape
    Nout = w.shape[1]
    return pl.pallas_call(
        _proj_kernel,
        out_shape=jax.ShapeDtypeStruct((B, T, Nout), out_dtype),
        grid_spec=pltpu.PrefetchScalarGridSpec(
            num_scalar_prefetch=0,
            grid=(B,),
            in_specs=[
                pl.BlockSpec((1, T, Cp), lambda b: (b, 0, 0)),
                pl.BlockSpec((Cp, Nout), lambda b: (0, 0)),
                pl.BlockSpec((1, Nout), lambda b: (0, 0)),
            ],
            out_specs=pl.BlockSpec((1, T, Nout), lambda b: (b, 0, 0)),
        ),
        compiler_params=pltpu.CompilerParams(
            dimension_semantics=("parallel",), vmem_limit_bytes=_vmem_limit_bytes()),
        cost_estimate=pl.CostEstimate(
            flops=int(2 * B * T * Cp * Nout), transcendentals=0,
            bytes_accessed=int(B * T * Cp * 4 + Cp * Nout * 2 + Nout * 4 + B * T * Nout * 2)),
    )(x, w, bias)


# ----------------------------------------------------------------------------- Output proj + residual
def _out_proj_kernel(a_ref, res_ref, w_ref, bias_ref, o_ref):
    y = jnp.dot(a_ref[0], w_ref[...], preferred_element_type=jnp.float32)
    y = y + bias_ref[...] + res_ref[0].astype(jnp.float32)   # fused residual add
    o_ref[...] = y[None].astype(o_ref.dtype)


def out_project(attn, resid, w, bias):
    B, T, Cp = resid.shape
    return pl.pallas_call(
        _out_proj_kernel,
        out_shape=jax.ShapeDtypeStruct((B, T, Cp), jnp.float32),
        grid_spec=pltpu.PrefetchScalarGridSpec(
            num_scalar_prefetch=0,
            grid=(B,),
            in_specs=[
                pl.BlockSpec((1, T, Cp), lambda b: (b, 0, 0)),
                pl.BlockSpec((1, T, Cp), lambda b: (b, 0, 0)),
                pl.BlockSpec((Cp, Cp), lambda b: (0, 0)),
                pl.BlockSpec((1, Cp), lambda b: (0, 0)),
            ],
            out_specs=pl.BlockSpec((1, T, Cp), lambda b: (b, 0, 0)),
        ),
        compiler_params=pltpu.CompilerParams(
            dimension_semantics=("parallel",), vmem_limit_bytes=_vmem_limit_bytes()),
        cost_estimate=pl.CostEstimate(
            flops=int(2 * B * T * Cp * Cp), transcendentals=0,
            bytes_accessed=int(B * T * Cp * (2 + 4 + 4) + Cp * Cp * 2 + Cp * 4)),
    )(attn, resid, w, bias)


# ----------------------------------------------------------------------------- Attention core
def _attention_kernel(q_ref, k_ref, v_ref, bias_ref, o_ref, *, n_heads, dk, true_c, scale):
    # q/k/v: (1, T, Cp) bf16 slabs; bias: (1, Tq, Tk) additive (0 / -1e9) f32.
    q = q_ref[0]
    k = k_ref[0]
    v = v_ref[0]
    bias = bias_ref[0]
    cp = o_ref.shape[-1]
    heads = []
    for h in range(n_heads):                       # static unroll over heads
        lo = h * dk
        qh = q[:, lo:lo + dk]
        kh = k[:, lo:lo + dk]
        vh = v[:, lo:lo + dk]
        s = jnp.einsum("td,sd->ts", qh, kh, preferred_element_type=jnp.float32)
        s = s * scale + bias
        m = jnp.max(s, axis=-1, keepdims=True)
        p = jnp.exp(s - m)
        p = p * pl.reciprocal(jnp.sum(p, axis=-1, keepdims=True), approx=True)
        # Attention-dropout: identity (eval mode).
        heads.append(jnp.einsum("ts,sd->td", p.astype(vh.dtype), vh,
                                preferred_element_type=jnp.float32))
    if cp > true_c:
        heads.append(jnp.zeros((q.shape[0], cp - true_c), jnp.float32))
    o = jnp.concatenate(heads, axis=-1)            # lane-dense (Tq, Cp)
    o_ref[...] = o[None].astype(o_ref.dtype)


def attention(q_arr, q_blk, kv_arr, k_blk, v_blk, bias, *, n_heads, dk,
              out_dtype=jnp.bfloat16):
    """q_arr: (B,Tq,*Cp) and kv_arr: (B,Tk,*Cp) hold Cp-wide projection slabs; q_blk /
    k_blk / v_blk select which Cp-wide column block to read (avoids XLA-side slices)."""
    B, Tq = q_arr.shape[0], q_arr.shape[1]
    Tk = kv_arr.shape[1]
    true_c = n_heads * dk
    cp = _round_up(true_c, 128)
    scale = 1.0 / math.sqrt(dk)
    return pl.pallas_call(
        functools.partial(_attention_kernel, n_heads=n_heads, dk=dk,
                          true_c=true_c, scale=scale),
        out_shape=jax.ShapeDtypeStruct((B, Tq, cp), out_dtype),
        grid_spec=pltpu.PrefetchScalarGridSpec(
            num_scalar_prefetch=0,
            grid=(B,),
            in_specs=[
                pl.BlockSpec((1, Tq, cp), lambda b, c=q_blk: (b, 0, c)),
                pl.BlockSpec((1, Tk, cp), lambda b, c=k_blk: (b, 0, c)),
                pl.BlockSpec((1, Tk, cp), lambda b, c=v_blk: (b, 0, c)),
                pl.BlockSpec((1, Tq, Tk), lambda b: (b, 0, 0)),
            ],
            out_specs=pl.BlockSpec((1, Tq, cp), lambda b: (b, 0, 0)),
        ),
        compiler_params=pltpu.CompilerParams(
            dimension_semantics=("parallel",), vmem_limit_bytes=_vmem_limit_bytes()),
        cost_estimate=pl.CostEstimate(
            flops=int(4 * B * n_heads * Tq * Tk * dk),
            transcendentals=int(B * n_heads * Tq * Tk),
            bytes_accessed=int((B * Tq * cp + 2 * B * Tk * cp) * 2
                               + B * Tq * Tk * 4 + B * Tq * cp * 2)),
    )(q_arr, kv_arr, kv_arr, bias)


# ----------------------------------------------------------------------------- Fused LN + FFN + residual
def _ffn_kernel(x_ref, g_ref, b_ref, w1_ref, b1_ref, w2_ref, b2_ref, o_ref, h_ref,
                *, true_c, eps):
    k = pl.program_id(1)

    @pl.when(k == 0)
    def _():
        x = x_ref[0].astype(jnp.float32)
        h = _layer_norm_rows(x, g_ref[...], b_ref[...], true_c, eps)
        h_ref[...] = h.astype(h_ref.dtype)                  # LN(x) computed once per row block
        o_ref[...] = (x + b2_ref[...])[None]                # residual + final bias

    hid = jnp.dot(h_ref[...], w1_ref[...], preferred_element_type=jnp.float32)
    hid = jnp.maximum(hid + b1_ref[...], 0.0)               # ReLU
    part = jnp.dot(hid.astype(w2_ref.dtype), w2_ref[...],
                   preferred_element_type=jnp.float32)
    o_ref[...] = o_ref[...] + part[None]                    # accumulate directly in o_ref
    # Dropout: identity (eval mode).


def ffn_sublayer(x, gamma, beta, w1, b1, w2, b2, *, true_c, eps=1e-6, th=512):
    """x + W2(relu(W1(LN(x)) + b1)) + b2, hidden dim tiled on a trailing reduction axis."""
    B, T, Cp = x.shape
    Hp = w1.shape[1]
    th = min(th, Hp)
    while Hp % th:
        th -= 128
    nk = Hp // th
    return pl.pallas_call(
        functools.partial(_ffn_kernel, true_c=true_c, eps=eps),
        out_shape=jax.ShapeDtypeStruct((B, T, Cp), jnp.float32),
        grid_spec=pltpu.PrefetchScalarGridSpec(
            num_scalar_prefetch=0,
            grid=(B, nk),                                    # hidden-dim reduction last
            in_specs=[
                pl.BlockSpec((1, T, Cp), lambda b, k: (b, 0, 0)),
                pl.BlockSpec((1, Cp), lambda b, k: (0, 0)),
                pl.BlockSpec((1, Cp), lambda b, k: (0, 0)),
                pl.BlockSpec((Cp, th), lambda b, k: (0, k)),
                pl.BlockSpec((1, th), lambda b, k: (0, k)),
                pl.BlockSpec((th, Cp), lambda b, k: (k, 0)),
                pl.BlockSpec((1, Cp), lambda b, k: (0, 0)),
            ],
            out_specs=pl.BlockSpec((1, T, Cp), lambda b, k: (b, 0, 0)),
            scratch_shapes=[pltpu.VMEM((T, Cp), jnp.bfloat16)],
        ),
        compiler_params=pltpu.CompilerParams(
            dimension_semantics=("parallel", "arbitrary"),
            vmem_limit_bytes=_vmem_limit_bytes()),
        cost_estimate=pl.CostEstimate(
            flops=int(4 * B * T * Cp * Hp), transcendentals=int(B * T),
            bytes_accessed=int(B * T * Cp * 8 + 2 * Cp * Hp * 2 + (Hp + 2 * Cp) * 4)),
    )(x, gamma, beta, w1, b1, w2, b2)


# ----------------------------------------------------------------------------- Param preparation (one-time)
def prepare_params(params):
    """One-time padding to lane-dense widths + bf16 cast + QKV / KV weight concatenation.
    Weight layout is (in, out) == transpose of PyTorch nn.Linear.weight."""
    C = params["ffn"]["w1"].shape[0]
    H = params["ffn"]["w1"].shape[1]
    Cp = _round_up(C, 128)
    Hp = _round_up(H, 256)      # 256-multiple keeps the v6e/v7x 256x256 MXU full

    def padw(w, r, c):
        return _pad_to(w, (r, c)).astype(jnp.bfloat16)

    def padb(b, c):
        return _pad_to(b.reshape(1, -1), (1, c)).astype(jnp.float32)

    def attn_block(p):
        wq = _pad_to(p["wq"], (Cp, Cp))
        wk = _pad_to(p["wk"], (Cp, Cp))
        wv = _pad_to(p["wv"], (Cp, Cp))
        return dict(
            wqkv=jnp.concatenate([wq, wk, wv], axis=1).astype(jnp.bfloat16),
            bqkv=jnp.concatenate([padb(p["bq"], Cp), padb(p["bk"], Cp),
                                  padb(p["bv"], Cp)], axis=1),
            wq=wq.astype(jnp.bfloat16),
            bq=padb(p["bq"], Cp),
            wkv=jnp.concatenate([wk, wv], axis=1).astype(jnp.bfloat16),
            bkv=jnp.concatenate([padb(p["bk"], Cp), padb(p["bv"], Cp)], axis=1),
            wo=padw(p["wo"], Cp, Cp),
            bo=padb(p["bo"], Cp),
        )

    return dict(
        ln1_g=padb(params["ln1_a"], Cp), ln1_b=padb(params["ln1_b"], Cp),
        ln2_g=padb(params["ln2_a"], Cp), ln2_b=padb(params["ln2_b"], Cp),
        ln3_g=padb(params["ln3_a"], Cp), ln3_b=padb(params["ln3_b"], Cp),
        self_attn=attn_block(params["self_attn"]),
        src_attn=attn_block(params["src_attn"]),
        w1=padw(params["ffn"]["w1"], Cp, Hp), b1=padb(params["ffn"]["b1"], Hp),
        w2=padw(params["ffn"]["w2"], Hp, Cp), b2=padb(params["ffn"]["b2"], Cp),
    )


# ----------------------------------------------------------------------------- DecoderLayer
def decoder_layer(prep, x, encoder_op, src_mask, tgt_mask, *, n_embd, n_heads):
    """Eval-mode DecoderLayer forward. Activations are padded once to Cp (128-multiple)
    at entry and sliced once at exit; the f32 residual stream stays padded in between."""
    C = n_embd
    dk = C // n_heads
    B, T, _ = x.shape
    S = encoder_op.shape[1]
    Cp = prep["ln1_g"].shape[-1]

    xp = _pad_to(x.astype(jnp.float32), (B, T, Cp))
    encp = _pad_to(encoder_op.astype(jnp.float32), (B, S, Cp))
    tgt_bias = jnp.where(tgt_mask == 0, -1e9, 0.0).astype(jnp.float32)
    src_bias = jnp.where(src_mask == 0, -1e9, 0.0).astype(jnp.float32)

    # ---- sublayer 1: LN1 -> fused QKV -> self-attention -> Wo (+ residual) ----
    sa = prep["self_attn"]
    qkv = ln_project(xp, prep["ln1_g"], prep["ln1_b"], sa["wqkv"], sa["bqkv"], true_c=C)
    attn = attention(qkv, 0, qkv, 1, 2, tgt_bias, n_heads=n_heads, dk=dk)
    xp = out_project(attn, xp, sa["wo"], sa["bo"])

    # ---- sublayer 2: LN2 -> Q ; encoder fused KV ; src-attention -> Wo (+ residual) ----
    ca = prep["src_attn"]
    q = ln_project(xp, prep["ln2_g"], prep["ln2_b"], ca["wq"], ca["bq"], true_c=C)
    # TODO(synk): in a multi-layer decoder, hoist the encoder K/V projection out of the layer.
    kv = project(encp, ca["wkv"], ca["bkv"])
    attn = attention(q, 0, kv, 0, 1, src_bias, n_heads=n_heads, dk=dk)
    xp = out_project(attn, xp, ca["wo"], ca["bo"])

    # ---- sublayer 3: LN3 -> W1 -> ReLU -> W2 (+ residual), fully fused ----
    xp = ffn_sublayer(xp, prep["ln3_g"], prep["ln3_b"], prep["w1"], prep["b1"],
                      prep["w2"], prep["b2"], true_c=C)

    return xp[..., :C].astype(x.dtype)


# ----------------------------------------------------------------------------- Reference (pure JAX)
def reference_decoder_layer(params, x, encoder_op, src_mask, tgt_mask, *, n_heads,
                            compute_dtype=jnp.float32):
    """Mirror of the eval-mode PyTorch module; compute_dtype mirrors the kernel's matmul casts."""
    cd = compute_dtype

    def lin(h, w, b):
        return jnp.dot(h.astype(cd), w.astype(cd), preferred_element_type=jnp.float32) + b

    def ln(h, a, b, eps=1e-6):
        mean = h.mean(-1, keepdims=True)
        xc = h - mean
        std = jnp.sqrt((xc * xc).sum(-1, keepdims=True) / (h.shape[-1] - 1))
        return a * xc / (std + eps) + b

    def mha(p, q_in, kv_in, mask):
        B, Tq, C = q_in.shape
        Tk = kv_in.shape[1]
        dk = C // n_heads
        q = lin(q_in, p["wq"], p["bq"]).reshape(B, Tq, n_heads, dk).transpose(0, 2, 1, 3)
        k = lin(kv_in, p["wk"], p["bk"]).reshape(B, Tk, n_heads, dk).transpose(0, 2, 1, 3)
        v = lin(kv_in, p["wv"], p["bv"]).reshape(B, Tk, n_heads, dk).transpose(0, 2, 1, 3)
        s = jnp.einsum("bhtd,bhsd->bhts", q.astype(cd), k.astype(cd),
                       preferred_element_type=jnp.float32) / math.sqrt(dk)
        s = jnp.where(mask[:, None, :, :] == 0, -1e9, s)
        p_attn = jax.nn.softmax(s, axis=-1)
        o = jnp.einsum("bhts,bhsd->bhtd", p_attn.astype(cd), v.astype(cd),
                       preferred_element_type=jnp.float32)
        o = o.transpose(0, 2, 1, 3).reshape(B, Tq, C)
        return lin(o, p["wo"], p["bo"])

    def ffn(h):
        z = jnp.maximum(lin(h, params["ffn"]["w1"], params["ffn"]["b1"]), 0.0)
        return lin(z, params["ffn"]["w2"], params["ffn"]["b2"])

    h = ln(x, params["ln1_a"], params["ln1_b"])
    x = x + mha(params["self_attn"], h, h, tgt_mask)
    h = ln(x, params["ln2_a"], params["ln2_b"])
    x = x + mha(params["src_attn"], h, encoder_op, src_mask)
    h = ln(x, params["ln3_a"], params["ln3_b"])
    x = x + ffn(h)
    return x


# ----------------------------------------------------------------------------- Params
def init_params(key, n_embd):
    """Mimics nn.Linear defaults (uniform +-1/sqrt(fan_in)); LN = ones/zeros.
    Weights stored as (in, out) == transpose of PyTorch nn.Linear.weight."""
    hidden = 4 * n_embd
    keys = iter(jax.random.split(key, 32))

    def lin_init(fan_in, fan_out):
        bound = 1.0 / math.sqrt(fan_in)
        w = jax.random.uniform(next(keys), (fan_in, fan_out), jnp.float32, -bound, bound)
        b = jax.random.uniform(next(keys), (fan_out,), jnp.float32, -bound, bound)
        return w, b

    def attn_init():
        wq, bq = lin_init(n_embd, n_embd)
        wk, bk = lin_init(n_embd, n_embd)
        wv, bv = lin_init(n_embd, n_embd)
        wo, bo = lin_init(n_embd, n_embd)
        return dict(wq=wq, bq=bq, wk=wk, bk=bk, wv=wv, bv=bv, wo=wo, bo=bo)

    w1, b1 = lin_init(n_embd, hidden)
    w2, b2 = lin_init(hidden, n_embd)
    return dict(
        ln1_a=jnp.ones((n_embd,), jnp.float32), ln1_b=jnp.zeros((n_embd,), jnp.float32),
        ln2_a=jnp.ones((n_embd,), jnp.float32), ln2_b=jnp.zeros((n_embd,), jnp.float32),
        ln3_a=jnp.ones((n_embd,), jnp.float32), ln3_b=jnp.zeros((n_embd,), jnp.float32),
        self_attn=attn_init(), src_attn=attn_init(),
        ffn=dict(w1=w1, b1=b1, w2=w2, b2=b2),
    )


if __name__ == "__main__":
    n_embd, n_heads = 64, 4
    batch, tgt_len, src_len = 2, 16, 8
    dropout = 0.1  # unused at inference

    key = jax.random.PRNGKey(0)
    kx, km, kp = jax.random.split(key, 3)
    x = jax.random.normal(kx, (batch, tgt_len, n_embd), jnp.float32)
    encoder_op = jax.random.normal(km, (batch, src_len, n_embd), jnp.float32)
    params = init_params(kp, n_embd)
    prep = prepare_params(params)          # one-time weight padding / bf16 cast / QKV concat

    # Causal target mask; per-example source-length mask (1 = attend, 0 = masked).
    tgt_mask = jnp.broadcast_to(jnp.tril(jnp.ones((tgt_len, tgt_len), jnp.float32))[None],
                                (batch, tgt_len, tgt_len))
    src_lengths = jnp.array([src_len, src_len - 2])
    src_mask = (jnp.arange(src_len)[None, None, :] < src_lengths[:, None, None])
    src_mask = jnp.broadcast_to(src_mask, (batch, tgt_len, src_len)).astype(jnp.float32)

    layer_fn = jax.jit(functools.partial(decoder_layer, n_embd=n_embd, n_heads=n_heads))
    y = layer_fn(prep, x, encoder_op, src_mask, tgt_mask)
    y = jax.block_until_ready(y)
    assert y.shape == x.shape and y.dtype == x.dtype

    # Tight check against a reference that mirrors the bf16 matmul-input rounding.
    ref_bf16 = reference_decoder_layer(params, x, encoder_op, src_mask, tgt_mask,
                                       n_heads=n_heads, compute_dtype=jnp.bfloat16)
    assert jnp.allclose(y, ref_bf16, atol=2e-2, rtol=2e-2), \
        float(jnp.max(jnp.abs(y - ref_bf16)))

    # Loose check against the pure-f32 reference (bf16 rounding + approx reciprocal only).
    ref_f32 = reference_decoder_layer(params, x, encoder_op, src_mask, tgt_mask,
                                      n_heads=n_heads, compute_dtype=jnp.float32)
    assert jnp.allclose(y, ref_f32, atol=1e-1, rtol=1e-1), \
        float(jnp.max(jnp.abs(y - ref_f32)))

    print("KERNEL_OK")
</pallas_src>

<mosaic_0001>
module attributes {stable_mosaic.version = 11 : i64} {
  func.func @_attention_kernel(%arg0: i32, %arg1: memref<1x16x128xbf16, #tpu.memory_space<vmem>>, %arg2: memref<1x16x128xbf16, #tpu.memory_space<vmem>>, %arg3: memref<1x16x128xbf16, #tpu.memory_space<vmem>>, %arg4: memref<1x16x16xf32, #tpu.memory_space<vmem>>, %arg5: memref<1x16x128xbf16, #tpu.memory_space<vmem>>) attributes {dimension_semantics = [#tpu.dimension_semantics<parallel>], iteration_bounds = array<i64: 2>, scalar_prefetch = 0 : i64, scratch_operands = 0 : i64, tpu.core_type = #tpu.core_type<tc>, window_params = [{transform_indices = @transform_0, window_bounds = array<i64: 1, 16, 128>}, {transform_indices = @transform_1, window_bounds = array<i64: 1, 16, 128>}, {transform_indices = @transform_2, window_bounds = array<i64: 1, 16, 128>}, {transform_indices = @transform_3, window_bounds = array<i64: 1, 16, 16>}, {transform_indices = @transform_4, window_bounds = array<i64: 1, 16, 128>}]} {
    %c0 = arith.constant 0 : index
    %c0_0 = arith.constant 0 : index
    %c0_1 = arith.constant 0 : index
    %0 = vector.load %arg1[%c0, %c0_0, %c0_1] : memref<1x16x128xbf16, #tpu.memory_space<vmem>>, vector<1x16x128xbf16>
    %1 = vector.shape_cast %0 : vector<1x16x128xbf16> to vector<16x128xbf16>
    %c0_2 = arith.constant 0 : index
    %c0_3 = arith.constant 0 : index
    %c0_4 = arith.constant 0 : index
    %2 = vector.load %arg2[%c0_2, %c0_3, %c0_4] : memref<1x16x128xbf16, #tpu.memory_space<vmem>>, vector<1x16x128xbf16>
    %3 = vector.shape_cast %2 : vector<1x16x128xbf16> to vector<16x128xbf16>
    %c0_5 = arith.constant 0 : index
    %c0_6 = arith.constant 0 : index
    %c0_7 = arith.constant 0 : index
    %4 = vector.load %arg3[%c0_5, %c0_6, %c0_7] : memref<1x16x128xbf16, #tpu.memory_space<vmem>>, vector<1x16x128xbf16>
    %5 = vector.shape_cast %4 : vector<1x16x128xbf16> to vector<16x128xbf16>
    %c0_8 = arith.constant 0 : index
    %c0_9 = arith.constant 0 : index
    %c0_10 = arith.constant 0 : index
    %6 = vector.load %arg4[%c0_8, %c0_9, %c0_10] : memref<1x16x16xf32, #tpu.memory_space<vmem>>, vector<1x16x16xf32>
    %7 = vector.shape_cast %6 : vector<1x16x16xf32> to vector<16x16xf32>
    %8 = vector.extract_strided_slice %1 {offsets = [0, 0], sizes = [16, 16], strides = [1, 1]} : vector<16x128xbf16> to vector<16x16xbf16>
    %9 = vector.extract_strided_slice %3 {offsets = [0, 0], sizes = [16, 16], strides = [1, 1]} : vector<16x128xbf16> to vector<16x16xbf16>
    %10 = vector.extract_strided_slice %5 {offsets = [0, 0], sizes = [16, 16], strides = [1, 1]} : vector<16x128xbf16> to vector<16x16xbf16>
    "tpu.trace_start"() <{level = 10 : i32, message = "td,sd->ts"}> : () -> ()
    %cst = arith.constant dense<0.000000e+00> : vector<16x16xf32>
    %11 = tpu.matmul %8, %9, %cst {dimension_numbers = #tpu.dot_dimension_numbers<[1], [1], [0], [0], [0, 0, 1, 0], [], []>} : vector<16x16xbf16>, vector<16x16xbf16>, vector<16x16xf32> -> vector<16x16xf32>
    "tpu.trace_stop"() : () -> ()
    %cst_11 = arith.constant 2.500000e-01 : f32
    %12 = vector.broadcast %cst_11 : f32 to vector<16x16xf32>
    %13 = arith.mulf %11, %12 : vector<16x16xf32>
    %14 = arith.addf %13, %7 : vector<16x16xf32>
    %cst_12 = arith.constant dense<0xFF800000> : vector<16xf32>
    %15 = vector.multi_reduction <maximumf>, %14, %cst_12 [1] : vector<16x16xf32> to vector<16xf32>
    %16 = vector.shape_cast %15 : vector<16xf32> to vector<16x1xf32>
    %17 = vector.broadcast %16 : vector<16x1xf32> to vector<16x16xf32>
    %18 = arith.subf %14, %17 : vector<16x16xf32>
    %19 = math.exp %18 : vector<16x16xf32>
    %cst_13 = arith.constant dense<0.000000e+00> : vector<16xf32>
    %20 = vector.multi_reduction <add>, %19, %cst_13 [1] : vector<16x16xf32> to vector<16xf32>
    %21 = vector.shape_cast %20 : vector<16xf32> to vector<16x1xf32>
    %22 = tpu.reciprocal %21 {approx = true} : vector<16x1xf32> -> vector<16x1xf32>
    %23 = vector.broadcast %22 : vector<16x1xf32> to vector<16x16xf32>
    %24 = arith.mulf %19, %23 : vector<16x16xf32>
    %25 = arith.truncf %24 : vector<16x16xf32> to vector<16x16xbf16>
    "tpu.trace_start"() <{level = 10 : i32, message = "ts,sd->td"}> : () -> ()
    %cst_14 = arith.constant dense<0.000000e+00> : vector<16x16xf32>
    %26 = tpu.matmul %25, %10, %cst_14 {dimension_numbers = #tpu.dot_dimension_numbers<[1], [0], [0], [1], [0, 0, 1, 1], [], []>} : vector<16x16xbf16>, vector<16x16xbf16>, vector<16x16xf32> -> vector<16x16xf32>
    "tpu.trace_stop"() : () -> ()
    %27 = vector.extract_strided_slice %1 {offsets = [0, 16], sizes = [16, 16], strides = [1, 1]} : vector<16x128xbf16> to vector<16x16xbf16>
    %28 = vector.extract_strided_slice %3 {offsets = [0, 16], sizes = [16, 16], strides = [1, 1]} : vector<16x128xbf16> to vector<16x16xbf16>
    %29 = vector.extract_strided_slice %5 {offsets = [0, 16], sizes = [16, 16], strides = [1, 1]} : vector<16x128xbf16> to vector<16x16xbf16>
    "tpu.trace_start"() <{level = 10 : i32, message = "td,sd->ts"}> : () -> ()
    %cst_15 = arith.constant dense<0.000000e+00> : vector<16x16xf32>
    %30 = tpu.matmul %27, %28, %cst_15 {dimension_numbers = #tpu.dot_dimension_numbers<[1], [1], [0], [0], [0, 0, 1, 0], [], []>} : vector<16x16xbf16>, vector<16x16xbf16>, vector<16x16xf32> -> vector<16x16xf32>
    "tpu.trace_stop"() : () -> ()
    %cst_16 = arith.constant 2.500000e-01 : f32
    %31 = vector.broadcast %cst_16 : f32 to vector<16x16xf32>
    %32 = arith.mulf %30, %31 : vector<16x16xf32>
    %33 = arith.addf %32, %7 : vector<16x16xf32>
    %cst_17 = arith.constant dense<0xFF800000> : vector<16xf32>
    %34 = vector.multi_reduction <maximumf>, %33, %cst_17 [1] : vector<16x16xf32> to vector<16xf32>
    %35 = vector.shape_cast %34 : vector<16xf32> to vector<16x1xf32>
    %36 = vector.broadcast %35 : vector<16x1xf32> to vector<16x16xf32>
    %37 = arith.subf %33, %36 : vector<16x16xf32>
    %38 = math.exp %37 : vector<16x16xf32>
    %cst_18 = arith.constant dense<0.000000e+00> : vector<16xf32>
    %39 = vector.multi_reduction <add>, %38, %cst_18 [1] : vector<16x16xf32> to vector<16xf32>
    %40 = vector.shape_cast %39 : vector<16xf32> to vector<16x1xf32>
    %41 = tpu.reciprocal %40 {approx = true} : vector<16x1xf32> -> vector<16x1xf32>
    %42 = vector.broadcast %41 : vector<16x1xf32> to vector<16x16xf32>
    %43 = arith.mulf %38, %42 : vector<16x16xf32>
    %44 = arith.truncf %43 : vector<16x16xf32> to vector<16x16xbf16>
    "tpu.trace_start"() <{level = 10 : i32, message = "ts,sd->td"}> : () -> ()
    %cst_19 = arith.constant dense<0.000000e+00> : vector<16x16xf32>
    %45 = tpu.matmul %44, %29, %cst_19 {dimension_numbers = #tpu.dot_dimension_numbers<[1], [0], [0], [1], [0, 0, 1, 1], [], []>} : vector<16x16xbf16>, vector<16x16xbf16>, vector<16x16xf32> -> vector<16x16xf32>
    "tpu.trace_stop"() : () -> ()
    %46 = vector.extract_strided_slice %1 {offsets = [0, 32], sizes = [16, 16], strides = [1, 1]} : vector<16x128xbf16> to vector<16x16xbf16>
    %47 = vector.extract_strided_slice %3 {offsets = [0, 32], sizes = [16, 16], strides = [1, 1]} : vector<16x128xbf16> to vector<16x16xbf16>
    %48 = vector.extract_strided_slice %5 {offsets = [0, 32], sizes = [16, 16], strides = [1, 1]} : vector<16x128xbf16> to vector<16x16xbf16>
    "tpu.trace_start"() <{level = 10 : i32, message = "td,sd->ts"}> : () -> ()
    %cst_20 = arith.constant dense<0.000000e+00> : vector<16x16xf32>
    %49 = tpu.matmul %46, %47, %cst_20 {dimension_numbers = #tpu.dot_dimension_numbers<[1], [1], [0], [0], [0, 0, 1, 0], [], []>} : vector<16x16xbf16>, vector<16x16xbf16>, vector<16x16xf32> -> vector<16x16xf32>
    "tpu.trace_stop"() : () -> ()
    %cst_21 = arith.constant 2.500000e-01 : f32
    %50 = vector.broadcast %cst_21 : f32 to vector<16x16xf32>
    %51 = arith.mulf %49, %50 : vector<16x16xf32>
    %52 = arith.addf %51, %7 : vector<16x16xf32>
    %cst_22 = arith.constant dense<0xFF800000> : vector<16xf32>
    %53 = vector.multi_reduction <maximumf>, %52, %cst_22 [1] : vector<16x16xf32> to vector<16xf32>
    %54 = vector.shape_cast %53 : vector<16xf32> to vector<16x1xf32>
    %55 = vector.broadcast %54 : vector<16x1xf32> to vector<16x16xf32>
    %56 = arith.subf %52, %55 : vector<16x16xf32>
    %57 = math.exp %56 : vector<16x16xf32>
    %cst_23 = arith.constant dense<0.000000e+00> : vector<16xf32>
    %58 = vector.multi_reduction <add>, %57, %cst_23 [1] : vector<16x16xf32> to vector<16xf32>
    %59 = vector.shape_cast %58 : vector<16xf32> to vector<16x1xf32>
    %60 = tpu.reciprocal %59 {approx = true} : vector<16x1xf32> -> vector<16x1xf32>
    %61 = vector.broadcast %60 : vector<16x1xf32> to vector<16x16xf32>
    %62 = arith.mulf %57, %61 : vector<16x16xf32>
    %63 = arith.truncf %62 : vector<16x16xf32> to vector<16x16xbf16>
    "tpu.trace_start"() <{level = 10 : i32, message = "ts,sd->td"}> : () -> ()
    %cst_24 = arith.constant dense<0.000000e+00> : vector<16x16xf32>
    %64 = tpu.matmul %63, %48, %cst_24 {dimension_numbers = #tpu.dot_dimension_numbers<[1], [0], [0], [1], [0, 0, 1, 1], [], []>} : vector<16x16xbf16>, vector<16x16xbf16>, vector<16x16xf32> -> vector<16x16xf32>
    "tpu.trace_stop"() : () -> ()
    %65 = vector.extract_strided_slice %1 {offsets = [0, 48], sizes = [16, 16], strides = [1, 1]} : vector<16x128xbf16> to vector<16x16xbf16>
    %66 = vector.extract_strided_slice %3 {offsets = [0, 48], sizes = [16, 16], strides = [1, 1]} : vector<16x128xbf16> to vector<16x16xbf16>
    %67 = vector.extract_strided_slice %5 {offsets = [0, 48], sizes = [16, 16], strides = [1, 1]} : vector<16x128xbf16> to vector<16x16xbf16>
    "tpu.trace_start"() <{level = 10 : i32, message = "td,sd->ts"}> : () -> ()
    %cst_25 = arith.constant dense<0.000000e+00> : vector<16x16xf32>
    %68 = tpu.matmul %65, %66, %cst_25 {dimension_numbers = #tpu.dot_dimension_numbers<[1], [1], [0], [0], [0, 0, 1, 0], [], []>} : vector<16x16xbf16>, vector<16x16xbf16>, vector<16x16xf32> -> vector<16x16xf32>
    "tpu.trace_stop"() : () -> ()
    %cst_26 = arith.constant 2.500000e-01 : f32
    %69 = vector.broadcast %cst_26 : f32 to vector<16x16xf32>
    %70 = arith.mulf %68, %69 : vector<16x16xf32>
    %71 = arith.addf %70, %7 : vector<16x16xf32>
    %cst_27 = arith.constant dense<0xFF800000> : vector<16xf32>
    %72 = vector.multi_reduction <maximumf>, %71, %cst_27 [1] : vector<16x16xf32> to vector<16xf32>
    %73 = vector.shape_cast %72 : vector<16xf32> to vector<16x1xf32>
    %74 = vector.broadcast %73 : vector<16x1xf32> to vector<16x16xf32>
    %75 = arith.subf %71, %74 : vector<16x16xf32>
    %76 = math.exp %75 : vector<16x16xf32>
    %cst_28 = arith.constant dense<0.000000e+00> : vector<16xf32>
    %77 = vector.multi_reduction <add>, %76, %cst_28 [1] : vector<16x16xf32> to vector<16xf32>
    %78 = vector.shape_cast %77 : vector<16xf32> to vector<16x1xf32>
    %79 = tpu.reciprocal %78 {approx = true} : vector<16x1xf32> -> vector<16x1xf32>
    %80 = vector.broadcast %79 : vector<16x1xf32> to vector<16x16xf32>
    %81 = arith.mulf %76, %80 : vector<16x16xf32>
    %82 = arith.truncf %81 : vector<16x16xf32> to vector<16x16xbf16>
    "tpu.trace_start"() <{level = 10 : i32, message = "ts,sd->td"}> : () -> ()
    %cst_29 = arith.constant dense<0.000000e+00> : vector<16x16xf32>
    %83 = tpu.matmul %82, %67, %cst_29 {dimension_numbers = #tpu.dot_dimension_numbers<[1], [0], [0], [1], [0, 0, 1, 1], [], []>} : vector<16x16xbf16>, vector<16x16xbf16>, vector<16x16xf32> -> vector<16x16xf32>
    %cst_30 = arith.constant 0.000000e+00 : f32
    "tpu.trace_stop"() : () -> ()
    %84 = vector.broadcast %cst_30 : f32 to vector<16x64xf32>
    %85 = tpu.concatenate %26, %45, %64, %83, %84 in 1 : vector<16x16xf32>, vector<16x16xf32>, vector<16x16xf32>, vector<16x16xf32>, vector<16x64xf32> -> vector<16x128xf32>
    %86 = vector.shape_cast %85 : vector<16x128xf32> to vector<1x16x128xf32>
    %87 = arith.truncf %86 : vector<1x16x128xf32> to vector<1x16x128xbf16>
    %c0_31 = arith.constant 0 : index
    %c0_32 = arith.constant 0 : index
    %c0_33 = arith.constant 0 : index
    %88 = vector.load %arg5[%c0_31, %c0_32, %c0_33] : memref<1x16x128xbf16, #tpu.memory_space<vmem>>, vector<1x16x128xbf16>
    tpu.vector_store %arg5[%c0_31, %c0_32, %c0_33], %87 {strides = array<i32>} : memref<1x16x128xbf16, #tpu.memory_space<vmem>>, vector<1x16x128xbf16>,
    return
  }
  func.func @transform_0(%arg0: i32) -> (i32, i32, i32) {
    %c0_i32 = arith.constant 0 : i32
    %c0_i32_0 = arith.constant 0 : i32
    %c0_i32_1 = arith.constant 0 : i32
    return %arg0, %c0_i32, %c0_i32_0 : i32, i32, i32
  }
  func.func @transform_1(%arg0: i32) -> (i32, i32, i32) {
    %c0_i32 = arith.constant 0 : i32
    %c1_i32 = arith.constant 1 : i32
    %c0_i32_0 = arith.constant 0 : i32
    return %arg0, %c0_i32, %c1_i32 : i32, i32, i32
  }
  func.func @transform_2(%arg0: i32) -> (i32, i32, i32) {
    %c0_i32 = arith.constant 0 : i32
    %c2_i32 = arith.constant 2 : i32
    %c0_i32_0 = arith.constant 0 : i32
    return %arg0, %c0_i32, %c2_i32 : i32, i32, i32
  }
  func.func @transform_3(%arg0: i32) -> (i32, i32, i32) {
    %c0_i32 = arith.constant 0 : i32
    %c0_i32_0 = arith.constant 0 : i32
    %c0_i32_1 = arith.constant 0 : i32
    return %arg0, %c0_i32, %c0_i32_0 : i32, i32, i32
  }
  func.func @transform_4(%arg0: i32) -> (i32, i32, i32) {
    %c0_i32 = arith.constant 0 : i32
    %c0_i32_0 = arith.constant 0 : i32
    %c0_i32_1 = arith.constant 0 : i32
    return %arg0, %c0_i32, %c0_i32_0 : i32, i32, i32
  }
}

module attributes {stable_mosaic.version = 11 : i64} {
  func.func @_ln_proj_kernel(%arg0: i32, %arg1: memref<1x16x128xf32, #tpu.memory_space<vmem>>, %arg2: memref<1x128xf32, #tpu.memory_space<vmem>>, %arg3: memref<1x128xf32, #tpu.memory_space<vmem>>, %arg4: memref<128x384xbf16, #tpu.memory_space<vmem>>, %arg5: memref<1x384xf32, #tpu.memory_space<vmem>>, %arg6: memref<1x16x384xbf16, #tpu.memory_space<vmem>>) attributes {dimension_semantics = [#tpu.dimension_semantics<parallel>], iteration_bounds = array<i64: 2>, scalar_prefetch = 0 : i64, scratch_operands = 0 : i64, tpu.core_type = #tpu.core_type<tc>, window_params = [{transform_indices = @transform_0, window_bounds = array<i64: 1, 16, 128>}, {pipeline_mode = #tpu.pipeline_mode<synchronous>, transform_indices = @transform_1, window_bounds = array<i64: 1, 128>}, {pipeline_mode = #tpu.pipeline_mode<synchronous>, transform_indices = @transform_2, window_bounds = array<i64: 1, 128>}, {pipeline_mode = #tpu.pipeline_mode<synchronous>, transform_indices = @transform_3, window_bounds = array<i64: 128, 384>}, {pipeline_mode = #tpu.pipeline_mode<synchronous>, transform_indices = @transform_4, window_bounds = array<i64: 1, 384>}, {transform_indices = @transform_5, window_bounds = array<i64: 1, 16, 384>}]} {
    %c0 = arith.constant 0 : index
    %c0_0 = arith.constant 0 : index
    %c0_1 = arith.constant 0 : index
    %0 = vector.load %arg1[%c0, %c0_0, %c0_1] : memref<1x16x128xf32, #tpu.memory_space<vmem>>, vector<1x16x128xf32>
    %1 = vector.shape_cast %0 : vector<1x16x128xf32> to vector<16x128xf32>
    %c0_2 = arith.constant 0 : index
    %c0_3 = arith.constant 0 : index
    %2 = vector.load %arg2[%c0_2, %c0_3] : memref<1x128xf32, #tpu.memory_space<vmem>>, vector<1x128xf32>
    %c0_4 = arith.constant 0 : index
    %c0_5 = arith.constant 0 : index
    %3 = vector.load %arg3[%c0_4, %c0_5] : memref<1x128xf32, #tpu.memory_space<vmem>>, vector<1x128xf32>
    %cst = arith.constant dense<0.000000e+00> : vector<16xf32>
    %4 = vector.multi_reduction <add>, %1, %cst [1] : vector<16x128xf32> to vector<16xf32>
    %5 = vector.shape_cast %4 : vector<16xf32> to vector<16x1xf32>
    %cst_6 = arith.constant 1.562500e-02 : f32
    %6 = vector.broadcast %cst_6 : f32 to vector<16x1xf32>
    %7 = arith.mulf %5, %6 : vector<16x1xf32>
    %8 = vector.broadcast %7 : vector<16x1xf32> to vector<16x128xf32>
    %9 = arith.subf %1, %8 : vector<16x128xf32>
    %10 = tpu.iota {dimensions = array<i32: 1>} : vector<16x128xi32>
    %c64_i32 = arith.constant 64 : i32
    %11 = vector.broadcast %c64_i32 : i32 to vector<16x128xi32>
    %12 = arith.cmpi slt, %10, %11 : vector<16x128xi32>
    %cst_7 = arith.constant 0.000000e+00 : f32
    %13 = vector.broadcast %cst_7 : f32 to vector<16x128xf32>
    %14 = arith.select %12, %9, %13 : vector<16x128xi1>, vector<16x128xf32>
    %15 = arith.mulf %14, %14 : vector<16x128xf32>
    %cst_8 = arith.constant dense<0.000000e+00> : vector<16xf32>
    %16 = vector.multi_reduction <add>, %15, %cst_8 [1] : vector<16x128xf32> to vector<16xf32>
    %17 = vector.shape_cast %16 : vector<16xf32> to vector<16x1xf32>
    %cst_9 = arith.constant 0.0158730168 : f32
    %18 = vector.broadcast %cst_9 : f32 to vector<16x1xf32>
    %19 = arith.mulf %17, %18 : vector<16x1xf32>
    %20 = vector.broadcast %2 : vector<1x128xf32> to vector<16x128xf32>
    %21 = arith.mulf %20, %14 : vector<16x128xf32>
    %22 = math.sqrt %19 : vector<16x1xf32>
    %cst_10 = arith.constant 9.99999997E-7 : f32
    %23 = vector.broadcast %cst_10 : f32 to vector<16x1xf32>
    %24 = arith.addf %22, %23 : vector<16x1xf32>
    %25 = vector.broadcast %24 : vector<16x1xf32> to vector<16x128xf32>
    %26 = arith.divf %21, %25 : vector<16x128xf32>
    %27 = vector.broadcast %3 : vector<1x128xf32> to vector<16x128xf32>
    %28 = arith.addf %26, %27 : vector<16x128xf32>
    %29 = arith.truncf %28 : vector<16x128xf32> to vector<16x128xbf16>
    %c0_11 = arith.constant 0 : index
    %c0_12 = arith.constant 0 : index
    %30 = vector.load %arg4[%c0_11, %c0_12] : memref<128x384xbf16, #tpu.memory_space<vmem>>, vector<128x384xbf16>
    %cst_13 = arith.constant dense<0.000000e+00> : vector<16x384xf32>
    %31 = tpu.matmul %29, %30, %cst_13 {dimension_numbers = #tpu.dot_dimension_numbers<[1], [0], [0], [1], [0, 0, 1, 1], [], []>} : vector<16x128xbf16>, vector<128x384xbf16>, vector<16x384xf32> -> vector<16x384xf32>
    %c0_14 = arith.constant 0 : index
    %c0_15 = arith.constant 0 : index
    %32 = vector.load %arg5[%c0_14, %c0_15] : memref<1x384xf32, #tpu.memory_space<vmem>>, vector<1x384xf32>
    %33 = vector.broadcast %32 : vector<1x384xf32> to vector<16x384xf32>
    %34 = arith.addf %31, %33 : vector<16x384xf32>
    %35 = vector.shape_cast %34 : vector<16x384xf32> to vector<1x16x384xf32>
    %36 = arith.truncf %35 : vector<1x16x384xf32> to vector<1x16x384xbf16>
    %c0_16 = arith.constant 0 : index
    %c0_17 = arith.constant 0 : index
    %c0_18 = arith.constant 0 : index
    %37 = vector.load %arg6[%c0_16, %c0_17, %c0_18] : memref<1x16x384xbf16, #tpu.memory_space<vmem>>, vector<1x16x384xbf16>
    tpu.vector_store %arg6[%c0_16, %c0_17, %c0_18], %36 {strides = array<i32>} : memref<1x16x384xbf16, #tpu.memory_space<vmem>>, vector<1x16x384xbf16>,
    return
  }
  func.func @transform_0(%arg0: i32) -> (i32, i32, i32) {
    %c0_i32 = arith.constant 0 : i32
    %c0_i32_0 = arith.constant 0 : i32
    %c0_i32_1 = arith.constant 0 : i32
    return %arg0, %c0_i32, %c0_i32_0 : i32, i32, i32
  }
  func.func @transform_1(%arg0: i32) -> (i32, i32) {
    %c0_i32 = arith.constant 0 : i32
    %c0_i32_0 = arith.constant 0 : i32
    %c0_i32_1 = arith.constant 0 : i32
    return %c0_i32, %c0_i32_0 : i32, i32
  }
  func.func @transform_2(%arg0: i32) -> (i32, i32) {
    %c0_i32 = arith.constant 0 : i32
    %c0_i32_0 = arith.constant 0 : i32
    %c0_i32_1 = arith.constant 0 : i32
    return %c0_i32, %c0_i32_0 : i32, i32
  }
  func.func @transform_3(%arg0: i32) -> (i32, i32) {
    %c0_i32 = arith.constant 0 : i32
    %c0_i32_0 = arith.constant 0 : i32
    %c0_i32_1 = arith.constant 0 : i32
    return %c0_i32, %c0_i32_0 : i32, i32
  }
  func.func @transform_4(%arg0: i32) -> (i32, i32) {
    %c0_i32 = arith.constant 0 : i32
    %c0_i32_0 = arith.constant 0 : i32
    %c0_i32_1 = arith.constant 0 : i32
    return %c0_i32, %c0_i32_0 : i32, i32
  }
  func.func @transform_5(%arg0: i32) -> (i32, i32, i32) {
    %c0_i32 = arith.constant 0 : i32
    %c0_i32_0 = arith.constant 0 : i32
    %c0_i32_1 = arith.constant 0 : i32
    return %arg0, %c0_i32, %c0_i32_0 : i32, i32, i32
  }
}

module attributes {stable_mosaic.version = 11 : i64} {
  func.func @_out_proj_kernel(%arg0: i32, %arg1: memref<1x16x128xbf16, #tpu.memory_space<vmem>>, %arg2: memref<1x16x128xf32, #tpu.memory_space<vmem>>, %arg3: memref<128x128xbf16, #tpu.memory_space<vmem>>, %arg4: memref<1x128xf32, #tpu.memory_space<vmem>>, %arg5: memref<1x16x128xf32, #tpu.memory_space<vmem>>) attributes {dimension_semantics = [#tpu.dimension_semantics<parallel>], iteration_bounds = array<i64: 2>, scalar_prefetch = 0 : i64, scratch_operands = 0 : i64, tpu.core_type = #tpu.core_type<tc>, window_params = [{transform_indices = @transform_0, window_bounds = array<i64: 1, 16, 128>}, {transform_indices = @transform_1, window_bounds = array<i64: 1, 16, 128>}, {pipeline_mode = #tpu.pipeline_mode<synchronous>, transform_indices = @transform_2, window_bounds = array<i64: 128, 128>}, {pipeline_mode = #tpu.pipeline_mode<synchronous>, transform_indices = @transform_3, window_bounds = array<i64: 1, 128>}, {transform_indices = @transform_4, window_bounds = array<i64: 1, 16, 128>}]} {
    %c0 = arith.constant 0 : index
    %c0_0 = arith.constant 0 : index
    %c0_1 = arith.constant 0 : index
    %0 = vector.load %arg1[%c0, %c0_0, %c0_1] : memref<1x16x128xbf16, #tpu.memory_space<vmem>>, vector<1x16x128xbf16>
    %1 = vector.shape_cast %0 : vector<1x16x128xbf16> to vector<16x128xbf16>
    %c0_2 = arith.constant 0 : index
    %c0_3 = arith.constant 0 : index
    %2 = vector.load %arg3[%c0_2, %c0_3] : memref<128x128xbf16, #tpu.memory_space<vmem>>, vector<128x128xbf16>
    %cst = arith.constant dense<0.000000e+00> : vector<16x128xf32>
    %3 = tpu.matmul %1, %2, %cst {dimension_numbers = #tpu.dot_dimension_numbers<[1], [0], [0], [1], [0, 0, 1, 1], [], []>} : vector<16x128xbf16>, vector<128x128xbf16>, vector<16x128xf32> -> vector<16x128xf32>
    %c0_4 = arith.constant 0 : index
    %c0_5 = arith.constant 0 : index
    %4 = vector.load %arg4[%c0_4, %c0_5] : memref<1x128xf32, #tpu.memory_space<vmem>>, vector<1x128xf32>
    %5 = vector.broadcast %4 : vector<1x128xf32> to vector<16x128xf32>
    %6 = arith.addf %3, %5 : vector<16x128xf32>
    %c0_6 = arith.constant 0 : index
    %c0_7 = arith.constant 0 : index
    %c0_8 = arith.constant 0 : index
    %7 = vector.load %arg2[%c0_6, %c0_7, %c0_8] : memref<1x16x128xf32, #tpu.memory_space<vmem>>, vector<1x16x128xf32>
    %8 = vector.shape_cast %7 : vector<1x16x128xf32> to vector<16x128xf32>
    %9 = arith.addf %6, %8 : vector<16x128xf32>
    %10 = vector.shape_cast %9 : vector<16x128xf32> to vector<1x16x128xf32>
    %c0_9 = arith.constant 0 : index
    %c0_10 = arith.constant 0 : index
    %c0_11 = arith.constant 0 : index
    %11 = vector.load %arg5[%c0_9, %c0_10, %c0_11] : memref<1x16x128xf32, #tpu.memory_space<vmem>>, vector<1x16x128xf32>
    tpu.vector_store %arg5[%c0_9, %c0_10, %c0_11], %10 {strides = array<i32>} : memref<1x16x128xf32, #tpu.memory_space<vmem>>, vector<1x16x128xf32>,
    return
  }
  func.func @transform_0(%arg0: i32) -> (i32, i32, i32) {
    %c0_i32 = arith.constant 0 : i32
    %c0_i32_0 = arith.constant 0 : i32
    %c0_i32_1 = arith.constant 0 : i32
    return %arg0, %c0_i32, %c0_i32_0 : i32, i32, i32
  }
  func.func @transform_1(%arg0: i32) -> (i32, i32, i32) {
    %c0_i32 = arith.constant 0 : i32
    %c0_i32_0 = arith.constant 0 : i32
    %c0_i32_1 = arith.constant 0 : i32
    return %arg0, %c0_i32, %c0_i32_0 : i32, i32, i32
  }
  func.func @transform_2(%arg0: i32) -> (i32, i32) {
    %c0_i32 = arith.constant 0 : i32
    %c0_i32_0 = arith.constant 0 : i32
    %c0_i32_1 = arith.constant 0 : i32
    return %c0_i32, %c0_i32_0 : i32, i32
  }
  func.func @transform_3(%arg0: i32) -> (i32, i32) {
    %c0_i32 = arith.constant 0 : i32
    %c0_i32_0 = arith.constant 0 : i32
    %c0_i32_1 = arith.constant 0 : i32
    return %c0_i32, %c0_i32_0 : i32, i32
  }
  func.func @transform_4(%arg0: i32) -> (i32, i32, i32) {
    %c0_i32 = arith.constant 0 : i32
    %c0_i32_0 = arith.constant 0 : i32
    %c0_i32_1 = arith.constant 0 : i32
    return %arg0, %c0_i32, %c0_i32_0 : i32, i32, i32
  }
}

module attributes {stable_mosaic.version = 11 : i64} {
  func.func @_ln_proj_kernel(%arg0: i32, %arg1: memref<1x16x128xf32, #tpu.memory_space<vmem>>, %arg2: memref<1x128xf32, #tpu.memory_space<vmem>>, %arg3: memref<1x128xf32, #tpu.memory_space<vmem>>, %arg4: memref<128x128xbf16, #tpu.memory_space<vmem>>, %arg5: memref<1x128xf32, #tpu.memory_space<vmem>>, %arg6: memref<1x16x128xbf16, #tpu.memory_space<vmem>>) attributes {dimension_semantics = [#tpu.dimension_semantics<parallel>], iteration_bounds = array<i64: 2>, scalar_prefetch = 0 : i64, scratch_operands = 0 : i64, tpu.core_type = #tpu.core_type<tc>, window_params = [{transform_indices = @transform_0, window_bounds = array<i64: 1, 16, 128>}, {pipeline_mode = #tpu.pipeline_mode<synchronous>, transform_indices = @transform_1, window_bounds = array<i64: 1, 128>}, {pipeline_mode = #tpu.pipeline_mode<synchronous>, transform_indices = @transform_2, window_bounds = array<i64: 1, 128>}, {pipeline_mode = #tpu.pipeline_mode<synchronous>, transform_indices = @transform_3, window_bounds = array<i64: 128, 128>}, {pipeline_mode = #tpu.pipeline_mode<synchronous>, transform_indices = @transform_4, window_bounds = array<i64: 1, 128>}, {transform_indices = @transform_5, window_bounds = array<i64: 1, 16, 128>}]} {
    %c0 = arith.constant 0 : index
    %c0_0 = arith.constant 0 : index
    %c0_1 = arith.constant 0 : index
    %0 = vector.load %arg1[%c0, %c0_0, %c0_1] : memref<1x16x128xf32, #tpu.memory_space<vmem>>, vector<1x16x128xf32>
    %1 = vector.shape_cast %0 : vector<1x16x128xf32> to vector<16x128xf32>
    %c0_2 = arith.constant 0 : index
    %c0_3 = arith.constant 0 : index
    %2 = vector.load %arg2[%c0_2, %c0_3] : memref<1x128xf32, #tpu.memory_space<vmem>>, vector<1x128xf32>
    %c0_4 = arith.constant 0 : index
    %c0_5 = arith.constant 0 : index
    %3 = vector.load %arg3[%c0_4, %c0_5] : memref<1x128xf32, #tpu.memory_space<vmem>>, vector<1x128xf32>
    %cst = arith.constant dense<0.000000e+00> : vector<16xf32>
    %4 = vector.multi_reduction <add>, %1, %cst [1] : vector<16x128xf32> to vector<16xf32>
    %5 = vector.shape_cast %4 : vector<16xf32> to vector<16x1xf32>
    %cst_6 = arith.constant 1.562500e-02 : f32
    %6 = vector.broadcast %cst_6 : f32 to vector<16x1xf32>
    %7 = arith.mulf %5, %6 : vector<16x1xf32>
    %8 = vector.broadcast %7 : vector<16x1xf32> to vector<16x128xf32>
    %9 = arith.subf %1, %8 : vector<16x128xf32>
    %10 = tpu.iota {dimensions = array<i32: 1>} : vector<16x128xi32>
    %c64_i32 = arith.constant 64 : i32
    %11 = vector.broadcast %c64_i32 : i32 to vector<16x128xi32>
    %12 = arith.cmpi slt, %10, %11 : vector<16x128xi32>
    %cst_7 = arith.constant 0.000000e+00 : f32
    %13 = vector.broadcast %cst_7 : f32 to vector<16x128xf32>
    %14 = arith.select %12, %9, %13 : vector<16x128xi1>, vector<16x128xf32>
    %15 = arith.mulf %14, %14 : vector<16x128xf32>
    %cst_8 = arith.constant dense<0.000000e+00> : vector<16xf32>
    %16 = vector.multi_reduction <add>, %15, %cst_8 [1] : vector<16x128xf32> to vector<16xf32>
    %17 = vector.shape_cast %16 : vector<16xf32> to vector<16x1xf32>
    %cst_9 = arith.constant 0.0158730168 : f32
    %18 = vector.broadcast %cst_9 : f32 to vector<16x1xf32>
    %19 = arith.mulf %17, %18 : vector<16x1xf32>
    %20 = vector.broadcast %2 : vector<1x128xf32> to vector<16x128xf32>
    %21 = arith.mulf %20, %14 : vector<16x128xf32>
    %22 = math.sqrt %19 : vector<16x1xf32>
    %cst_10 = arith.constant 9.99999997E-7 : f32
    %23 = vector.broadcast %cst_10 : f32 to vector<16x1xf32>
    %24 = arith.addf %22, %23 : vector<16x1xf32>
    %25 = vector.broadcast %24 : vector<16x1xf32> to vector<16x128xf32>
    %26 = arith.divf %21, %25 : vector<16x128xf32>
    %27 = vector.broadcast %3 : vector<1x128xf32> to vector<16x128xf32>
    %28 = arith.addf %26, %27 : vector<16x128xf32>
    %29 = arith.truncf %28 : vector<16x128xf32> to vector<16x128xbf16>
    %c0_11 = arith.constant 0 : index
    %c0_12 = arith.constant 0 : index
    %30 = vector.load %arg4[%c0_11, %c0_12] : memref<128x128xbf16, #tpu.memory_space<vmem>>, vector<128x128xbf16>
    %cst_13 = arith.constant dense<0.000000e+00> : vector<16x128xf32>
    %31 = tpu.matmul %29, %30, %cst_13 {dimension_numbers = #tpu.dot_dimension_numbers<[1], [0], [0], [1], [0, 0, 1, 1], [], []>} : vector<16x128xbf16>, vector<128x128xbf16>, vector<16x128xf32> -> vector<16x128xf32>
    %c0_14 = arith.constant 0 : index
    %c0_15 = arith.constant 0 : index
    %32 = vector.load %arg5[%c0_14, %c0_15] : memref<1x128xf32, #tpu.memory_space<vmem>>, vector<1x128xf32>
    %33 = vector.broadcast %32 : vector<1x128xf32> to vector<16x128xf32>
    %34 = arith.addf %31, %33 : vector<16x128xf32>
    %35 = vector.shape_cast %34 : vector<16x128xf32> to vector<1x16x128xf32>
    %36 = arith.truncf %35 : vector<1x16x128xf32> to vector<1x16x128xbf16>
    %c0_16 = arith.constant 0 : index
    %c0_17 = arith.constant 0 : index
    %c0_18 = arith.constant 0 : index
    %37 = vector.load %arg6[%c0_16, %c0_17, %c0_18] : memref<1x16x128xbf16, #tpu.memory_space<vmem>>, vector<1x16x128xbf16>
    tpu.vector_store %arg6[%c0_16, %c0_17, %c0_18], %36 {strides = array<i32>} : memref<1x16x128xbf16, #tpu.memory_space<vmem>>, vector<1x16x128xbf16>,
    return
  }
  func.func @transform_0(%arg0: i32) -> (i32, i32, i32) {
    %c0_i32 = arith.constant 0 : i32
    %c0_i32_0 = arith.constant 0 : i32
    %c0_i32_1 = arith.constant 0 : i32
    return %arg0, %c0_i32, %c0_i32_0 : i32, i32, i32
  }
  func.func @transform_1(%arg0: i32) -> (i32, i32) {
    %c0_i32 = arith.constant 0 : i32
    %c0_i32_0 = arith.constant 0 : i32
    %c0_i32_1 = arith.constant 0 : i32
    return %c0_i32, %c0_i32_0 : i32, i32
  }
  func.func @transform_2(%arg0: i32) -> (i32, i32) {
    %c0_i32 = arith.constant 0 : i32
    %c0_i32_0 = arith.constant 0 : i32
    %c0_i32_1 = arith.constant 0 : i32
    return %c0_i32, %c0_i32_0 : i32, i32
  }
  func.func @transform_3(%arg0: i32) -> (i32, i32) {
    %c0_i32 = arith.constant 0 : i32
    %c0_i32_0 = arith.constant 0 : i32
    %c0_i32_1 = arith.constant 0 : i32
    return %c0_i32, %c0_i32_0 : i32, i32
  }
  func.func @transform_4(%arg0: i32) -> (i32, i32) {
    %c0_i32 = arith.constant 0 : i32
    %c0_i32_0 = arith.constant 0 : i32
    %c0_i32_1 = arith.constant 0 : i32
    return %c0_i32, %c0_i32_0 : i32, i32
  }
  func.func @transform_5(%arg0: i32) -> (i32, i32, i32) {
    %c0_i32 = arith.constant 0 : i32
    %c0_i32_0 = arith.constant 0 : i32
    %c0_i32_1 = arith.constant 0 : i32
    return %arg0, %c0_i32, %c0_i32_0 : i32, i32, i32
  }
}

module attributes {stable_mosaic.version = 11 : i64} {
  func.func @_ffn_kernel(%arg0: i32, %arg1: i32, %arg2: memref<1x16x128xf32, #tpu.memory_space<vmem>>, %arg3: memref<1x128xf32, #tpu.memory_space<vmem>>, %arg4: memref<1x128xf32, #tpu.memory_space<vmem>>, %arg5: memref<128x256xbf16, #tpu.memory_space<vmem>>, %arg6: memref<1x256xf32, #tpu.memory_space<vmem>>, %arg7: memref<256x128xbf16, #tpu.memory_space<vmem>>, %arg8: memref<1x128xf32, #tpu.memory_space<vmem>>, %arg9: memref<1x16x128xf32, #tpu.memory_space<vmem>>, %arg10: memref<16x128xbf16, #tpu.memory_space<vmem>>) attributes {dimension_semantics = [#tpu.dimension_semantics<parallel>, #tpu.dimension_semantics<arbitrary>], iteration_bounds = array<i64: 2, 1>, scalar_prefetch = 0 : i64, scratch_operands = 1 : i64, tpu.core_type = #tpu.core_type<tc>, window_params = [{transform_indices = @transform_0, window_bounds = array<i64: 1, 16, 128>}, {pipeline_mode = #tpu.pipeline_mode<synchronous>, transform_indices = @transform_1, window_bounds = array<i64: 1, 128>}, {pipeline_mode = #tpu.pipeline_mode<synchronous>, transform_indices = @transform_2, window_bounds = array<i64: 1, 128>}, {transform_indices = @transform_3, window_bounds = array<i64: 128, 256>}, {transform_indices = @transform_4, window_bounds = array<i64: 1, 256>}, {transform_indices = @transform_5, window_bounds = array<i64: 256, 128>}, {pipeline_mode = #tpu.pipeline_mode<synchronous>, transform_indices = @transform_6, window_bounds = array<i64: 1, 128>}, {transform_indices = @transform_7, window_bounds = array<i64: 1, 16, 128>}]} {
    %c0_i32 = arith.constant 0 : i32
    %0 = arith.cmpi eq, %arg1, %c0_i32 : i32
    %1 = arith.extui %0 : i1 to i32
    %c0_i32_0 = arith.constant 0 : i32
    %2 = arith.cmpi ne, %1, %c0_i32_0 : i32
    scf.if %2 {
      %c0_16 = arith.constant 0 : index
      %c0_17 = arith.constant 0 : index
      %c0_18 = arith.constant 0 : index
      %18 = vector.load %arg2[%c0_16, %c0_17, %c0_18] : memref<1x16x128xf32, #tpu.memory_space<vmem>>, vector<1x16x128xf32>
      %19 = vector.shape_cast %18 : vector<1x16x128xf32> to vector<16x128xf32>
      %c0_19 = arith.constant 0 : index
      %c0_20 = arith.constant 0 : index
      %20 = vector.load %arg3[%c0_19, %c0_20] : memref<1x128xf32, #tpu.memory_space<vmem>>, vector<1x128xf32>
      %c0_21 = arith.constant 0 : index
      %c0_22 = arith.constant 0 : index
      %21 = vector.load %arg4[%c0_21, %c0_22] : memref<1x128xf32, #tpu.memory_space<vmem>>, vector<1x128xf32>
      %cst_23 = arith.constant dense<0.000000e+00> : vector<16xf32>
      %22 = vector.multi_reduction <add>, %19, %cst_23 [1] : vector<16x128xf32> to vector<16xf32>
      %23 = vector.shape_cast %22 : vector<16xf32> to vector<16x1xf32>
      %cst_24 = arith.constant 1.562500e-02 : f32
      %24 = vector.broadcast %cst_24 : f32 to vector<16x1xf32>
      %25 = arith.mulf %23, %24 : vector<16x1xf32>
      %26 = vector.broadcast %25 : vector<16x1xf32> to vector<16x128xf32>
      %27 = arith.subf %19, %26 : vector<16x128xf32>
      %28 = tpu.iota {dimensions = array<i32: 1>} : vector<16x128xi32>
      %c64_i32 = arith.constant 64 : i32
      %29 = vector.broadcast %c64_i32 : i32 to vector<16x128xi32>
      %30 = arith.cmpi slt, %28, %29 : vector<16x128xi32>
      %cst_25 = arith.constant 0.000000e+00 : f32
      %31 = vector.broadcast %cst_25 : f32 to vector<16x128xf32>
      %32 = arith.select %30, %27, %31 : vector<16x128xi1>, vector<16x128xf32>
      %33 = arith.mulf %32, %32 : vector<16x128xf32>
      %cst_26 = arith.constant dense<0.000000e+00> : vector<16xf32>
      %34 = vector.multi_reduction <add>, %33, %cst_26 [1] : vector<16x128xf32> to vector<16xf32>
      %35 = vector.shape_cast %34 : vector<16xf32> to vector<16x1xf32>
      %cst_27 = arith.constant 0.0158730168 : f32
      %36 = vector.broadcast %cst_27 : f32 to vector<16x1xf32>
      %37 = arith.mulf %35, %36 : vector<16x1xf32>
      %38 = vector.broadcast %20 : vector<1x128xf32> to vector<16x128xf32>
      %39 = arith.mulf %38, %32 : vector<16x128xf32>
      %40 = math.sqrt %37 : vector<16x1xf32>
      %cst_28 = arith.constant 9.99999997E-7 : f32
      %41 = vector.broadcast %cst_28 : f32 to vector<16x1xf32>
      %42 = arith.addf %40, %41 : vector<16x1xf32>
      %43 = vector.broadcast %42 : vector<16x1xf32> to vector<16x128xf32>
      %44 = arith.divf %39, %43 : vector<16x128xf32>
      %45 = vector.broadcast %21 : vector<1x128xf32> to vector<16x128xf32>
      %46 = arith.addf %44, %45 : vector<16x128xf32>
      %47 = arith.truncf %46 : vector<16x128xf32> to vector<16x128xbf16>
      %c0_29 = arith.constant 0 : index
      %c0_30 = arith.constant 0 : index
      %48 = vector.load %arg10[%c0_29, %c0_30] : memref<16x128xbf16, #tpu.memory_space<vmem>>, vector<16x128xbf16>
      tpu.vector_store %arg10[%c0_29, %c0_30], %47 {strides = array<i32>} : memref<16x128xbf16, #tpu.memory_space<vmem>>, vector<16x128xbf16>,
      %c0_31 = arith.constant 0 : index
      %c0_32 = arith.constant 0 : index
      %49 = vector.load %arg8[%c0_31, %c0_32] : memref<1x128xf32, #tpu.memory_space<vmem>>, vector<1x128xf32>
      %50 = vector.broadcast %49 : vector<1x128xf32> to vector<16x128xf32>
      %51 = arith.addf %19, %50 : vector<16x128xf32>
      %52 = vector.shape_cast %51 : vector<16x128xf32> to vector<1x16x128xf32>
      %c0_33 = arith.constant 0 : index
      %c0_34 = arith.constant 0 : index
      %c0_35 = arith.constant 0 : index
      %53 = vector.load %arg9[%c0_33, %c0_34, %c0_35] : memref<1x16x128xf32, #tpu.memory_space<vmem>>, vector<1x16x128xf32>
      tpu.vector_store %arg9[%c0_33, %c0_34, %c0_35], %52 {strides = array<i32>} : memref<1x16x128xf32, #tpu.memory_space<vmem>>, vector<1x16x128xf32>,
    } else {
    }
    %c0 = arith.constant 0 : index
    %c0_1 = arith.constant 0 : index
    %3 = vector.load %arg10[%c0, %c0_1] : memref<16x128xbf16, #tpu.memory_space<vmem>>, vector<16x128xbf16>
    %c0_2 = arith.constant 0 : index
    %c0_3 = arith.constant 0 : index
    %4 = vector.load %arg5[%c0_2, %c0_3] : memref<128x256xbf16, #tpu.memory_space<vmem>>, vector<128x256xbf16>
    %cst = arith.constant dense<0.000000e+00> : vector<16x256xf32>
    %5 = tpu.matmul %3, %4, %cst {dimension_numbers = #tpu.dot_dimension_numbers<[1], [0], [0], [1], [0, 0, 1, 1], [], []>} : vector<16x128xbf16>, vector<128x256xbf16>, vector<16x256xf32> -> vector<16x256xf32>
    %c0_4 = arith.constant 0 : index
    %c0_5 = arith.constant 0 : index
    %6 = vector.load %arg6[%c0_4, %c0_5] : memref<1x256xf32, #tpu.memory_space<vmem>>, vector<1x256xf32>
    %7 = vector.broadcast %6 : vector<1x256xf32> to vector<16x256xf32>
    %8 = arith.addf %5, %7 : vector<16x256xf32>
    %cst_6 = arith.constant 0.000000e+00 : f32
    %9 = vector.broadcast %cst_6 : f32 to vector<16x256xf32>
    %10 = arith.maximumf %8, %9 : vector<16x256xf32>
    %11 = arith.truncf %10 : vector<16x256xf32> to vector<16x256xbf16>
    %c0_7 = arith.constant 0 : index
    %c0_8 = arith.constant 0 : index
    %12 = vector.load %arg7[%c0_7, %c0_8] : memref<256x128xbf16, #tpu.memory_space<vmem>>, vector<256x128xbf16>
    %cst_9 = arith.constant dense<0.000000e+00> : vector<16x128xf32>
    %13 = tpu.matmul %11, %12, %cst_9 {dimension_numbers = #tpu.dot_dimension_numbers<[1], [0], [0], [1], [0, 0, 1, 1], [], []>} : vector<16x256xbf16>, vector<256x128xbf16>, vector<16x128xf32> -> vector<16x128xf32>
    %c0_10 = arith.constant 0 : index
    %c0_11 = arith.constant 0 : index
    %c0_12 = arith.constant 0 : index
    %14 = vector.load %arg9[%c0_10, %c0_11, %c0_12] : memref<1x16x128xf32, #tpu.memory_space<vmem>>, vector<1x16x128xf32>
    %15 = vector.shape_cast %13 : vector<16x128xf32> to vector<1x16x128xf32>
    %16 = arith.addf %14, %15 : vector<1x16x128xf32>
    %c0_13 = arith.constant 0 : index
    %c0_14 = arith.constant 0 : index
    %c0_15 = arith.constant 0 : index
    %17 = vector.load %arg9[%c0_13, %c0_14, %c0_15] : memref<1x16x128xf32, #tpu.memory_space<vmem>>, vector<1x16x128xf32>
    tpu.vector_store %arg9[%c0_13, %c0_14, %c0_15], %16 {strides = array<i32>} : memref<1x16x128xf32, #tpu.memory_space<vmem>>, vector<1x16x128xf32>,
    return
  }
  func.func @transform_0(%arg0: i32, %arg1: i32) -> (i32, i32, i32) {
    %c0_i32 = arith.constant 0 : i32
    %c0_i32_0 = arith.constant 0 : i32
    %c0_i32_1 = arith.constant 0 : i32
    return %arg0, %c0_i32, %c0_i32_0 : i32, i32, i32
  }
  func.func @transform_1(%arg0: i32, %arg1: i32) -> (i32, i32) {
    %c0_i32 = arith.constant 0 : i32
    %c0_i32_0 = arith.constant 0 : i32
    %c0_i32_1 = arith.constant 0 : i32
    return %c0_i32, %c0_i32_0 : i32, i32
  }
  func.func @transform_2(%arg0: i32, %arg1: i32) -> (i32, i32) {
    %c0_i32 = arith.constant 0 : i32
    %c0_i32_0 = arith.constant 0 : i32
    %c0_i32_1 = arith.constant 0 : i32
    return %c0_i32, %c0_i32_0 : i32, i32
  }
  func.func @transform_3(%arg0: i32, %arg1: i32) -> (i32, i32) {
    %c0_i32 = arith.constant 0 : i32
    %c0_i32_0 = arith.constant 0 : i32
    return %c0_i32, %arg1 : i32, i32
  }
  func.func @transform_4(%arg0: i32, %arg1: i32) -> (i32, i32) {
    %c0_i32 = arith.constant 0 : i32
    %c0_i32_0 = arith.constant 0 : i32
    return %c0_i32, %arg1 : i32, i32
  }
  func.func @transform_5(%arg0: i32, %arg1: i32) -> (i32, i32) {
    %c0_i32 = arith.constant 0 : i32
    %c0_i32_0 = arith.constant 0 : i32
    return %arg1, %c0_i32 : i32, i32
  }
  func.func @transform_6(%arg0: i32, %arg1: i32) -> (i32, i32) {
    %c0_i32 = arith.constant 0 : i32
    %c0_i32_0 = arith.constant 0 : i32
    %c0_i32_1 = arith.constant 0 : i32
    return %c0_i32, %c0_i32_0 : i32, i32
  }
  func.func @transform_7(%arg0: i32, %arg1: i32) -> (i32, i32, i32) {
    %c0_i32 = arith.constant 0 : i32
    %c0_i32_0 = arith.constant 0 : i32
    %c0_i32_1 = arith.constant 0 : i32
    return %arg0, %c0_i32, %c0_i32_0 : i32, i32, i32
  }
}

module attributes {stable_mosaic.version = 11 : i64} {
  func.func @_attention_kernel(%arg0: i32, %arg1: memref<1x16x128xbf16, #tpu.memory_space<vmem>>, %arg2: memref<1x8x128xbf16, #tpu.memory_space<vmem>>, %arg3: memref<1x8x128xbf16, #tpu.memory_space<vmem>>, %arg4: memref<1x16x8xf32, #tpu.memory_space<vmem>>, %arg5: memref<1x16x128xbf16, #tpu.memory_space<vmem>>) attributes {dimension_semantics = [#tpu.dimension_semantics<parallel>], iteration_bounds = array<i64: 2>, scalar_prefetch = 0 : i64, scratch_operands = 0 : i64, tpu.core_type = #tpu.core_type<tc>, window_params = [{transform_indices = @transform_0, window_bounds = array<i64: 1, 16, 128>}, {transform_indices = @transform_1, window_bounds = array<i64: 1, 8, 128>}, {transform_indices = @transform_2, window_bounds = array<i64: 1, 8, 128>}, {transform_indices = @transform_3, window_bounds = array<i64: 1, 16, 8>}, {transform_indices = @transform_4, window_bounds = array<i64: 1, 16, 128>}]} {
    %c0 = arith.constant 0 : index
    %c0_0 = arith.constant 0 : index
    %c0_1 = arith.constant 0 : index
    %0 = vector.load %arg1[%c0, %c0_0, %c0_1] : memref<1x16x128xbf16, #tpu.memory_space<vmem>>, vector<1x16x128xbf16>
    %1 = vector.shape_cast %0 : vector<1x16x128xbf16> to vector<16x128xbf16>
    %c0_2 = arith.constant 0 : index
    %c0_3 = arith.constant 0 : index
    %c0_4 = arith.constant 0 : index
    %2 = vector.load %arg2[%c0_2, %c0_3, %c0_4] : memref<1x8x128xbf16, #tpu.memory_space<vmem>>, vector<1x8x128xbf16>
    %3 = vector.shape_cast %2 : vector<1x8x128xbf16> to vector<8x128xbf16>
    %c0_5 = arith.constant 0 : index
    %c0_6 = arith.constant 0 : index
    %c0_7 = arith.constant 0 : index
    %4 = vector.load %arg3[%c0_5, %c0_6, %c0_7] : memref<1x8x128xbf16, #tpu.memory_space<vmem>>, vector<1x8x128xbf16>
    %5 = vector.shape_cast %4 : vector<1x8x128xbf16> to vector<8x128xbf16>
    %c0_8 = arith.constant 0 : index
    %c0_9 = arith.constant 0 : index
    %c0_10 = arith.constant 0 : index
    %6 = vector.load %arg4[%c0_8, %c0_9, %c0_10] : memref<1x16x8xf32, #tpu.memory_space<vmem>>, vector<1x16x8xf32>
    %7 = vector.shape_cast %6 : vector<1x16x8xf32> to vector<16x8xf32>
    %8 = vector.extract_strided_slice %1 {offsets = [0, 0], sizes = [16, 16], strides = [1, 1]} : vector<16x128xbf16> to vector<16x16xbf16>
    %9 = vector.extract_strided_slice %3 {offsets = [0, 0], sizes = [8, 16], strides = [1, 1]} : vector<8x128xbf16> to vector<8x16xbf16>
    %10 = vector.extract_strided_slice %5 {offsets = [0, 0], sizes = [8, 16], strides = [1, 1]} : vector<8x128xbf16> to vector<8x16xbf16>
    "tpu.trace_start"() <{level = 10 : i32, message = "td,sd->ts"}> : () -> ()
    %cst = arith.constant dense<0.000000e+00> : vector<16x8xf32>
    %11 = tpu.matmul %8, %9, %cst {dimension_numbers = #tpu.dot_dimension_numbers<[1], [1], [0], [0], [0, 0, 1, 0], [], []>} : vector<16x16xbf16>, vector<8x16xbf16>, vector<16x8xf32> -> vector<16x8xf32>
    "tpu.trace_stop"() : () -> ()
    %cst_11 = arith.constant 2.500000e-01 : f32
    %12 = vector.broadcast %cst_11 : f32 to vector<16x8xf32>
    %13 = arith.mulf %11, %12 : vector<16x8xf32>
    %14 = arith.addf %13, %7 : vector<16x8xf32>
    %cst_12 = arith.constant dense<0xFF800000> : vector<16xf32>
    %15 = vector.multi_reduction <maximumf>, %14, %cst_12 [1] : vector<16x8xf32> to vector<16xf32>
    %16 = vector.shape_cast %15 : vector<16xf32> to vector<16x1xf32>
    %17 = vector.broadcast %16 : vector<16x1xf32> to vector<16x8xf32>
    %18 = arith.subf %14, %17 : vector<16x8xf32>
    %19 = math.exp %18 : vector<16x8xf32>
    %cst_13 = arith.constant dense<0.000000e+00> : vector<16xf32>
    %20 = vector.multi_reduction <add>, %19, %cst_13 [1] : vector<16x8xf32> to vector<16xf32>
    %21 = vector.shape_cast %20 : vector<16xf32> to vector<16x1xf32>
    %22 = tpu.reciprocal %21 {approx = true} : vector<16x1xf32> -> vector<16x1xf32>
    %23 = vector.broadcast %22 : vector<16x1xf32> to vector<16x8xf32>
    %24 = arith.mulf %19, %23 : vector<16x8xf32>
    %25 = arith.truncf %24 : vector<16x8xf32> to vector<16x8xbf16>
    "tpu.trace_start"() <{level = 10 : i32, message = "ts,sd->td"}> : () -> ()
    %cst_14 = arith.constant dense<0.000000e+00> : vector<16x16xf32>
    %26 = tpu.matmul %25, %10, %cst_14 {dimension_numbers = #tpu.dot_dimension_numbers<[1], [0], [0], [1], [0, 0, 1, 1], [], []>} : vector<16x8xbf16>, vector<8x16xbf16>, vector<16x16xf32> -> vector<16x16xf32>
    "tpu.trace_stop"() : () -> ()
    %27 = vector.extract_strided_slice %1 {offsets = [0, 16], sizes = [16, 16], strides = [1, 1]} : vector<16x128xbf16> to vector<16x16xbf16>
    %28 = vector.extract_strided_slice %3 {offsets = [0, 16], sizes = [8, 16], strides = [1, 1]} : vector<8x128xbf16> to vector<8x16xbf16>
    %29 = vector.extract_strided_slice %5 {offsets = [0, 16], sizes = [8, 16], strides = [1, 1]} : vector<8x128xbf16> to vector<8x16xbf16>
    "tpu.trace_start"() <{level = 10 : i32, message = "td,sd->ts"}> : () -> ()
    %cst_15 = arith.constant dense<0.000000e+00> : vector<16x8xf32>
    %30 = tpu.matmul %27, %28, %cst_15 {dimension_numbers = #tpu.dot_dimension_numbers<[1], [1], [0], [0], [0, 0, 1, 0], [], []>} : vector<16x16xbf16>, vector<8x16xbf16>, vector<16x8xf32> -> vector<16x8xf32>
    "tpu.trace_stop"() : () -> ()
    %cst_16 = arith.constant 2.500000e-01 : f32
    %31 = vector.broadcast %cst_16 : f32 to vector<16x8xf32>
    %32 = arith.mulf %30, %31 : vector<16x8xf32>
    %33 = arith.addf %32, %7 : vector<16x8xf32>
    %cst_17 = arith.constant dense<0xFF800000> : vector<16xf32>
    %34 = vector.multi_reduction <maximumf>, %33, %cst_17 [1] : vector<16x8xf32> to vector<16xf32>
    %35 = vector.shape_cast %34 : vector<16xf32> to vector<16x1xf32>
    %36 = vector.broadcast %35 : vector<16x1xf32> to vector<16x8xf32>
    %37 = arith.subf %33, %36 : vector<16x8xf32>
    %38 = math.exp %37 : vector<16x8xf32>
    %cst_18 = arith.constant dense<0.000000e+00> : vector<16xf32>
    %39 = vector.multi_reduction <add>, %38, %cst_18 [1] : vector<16x8xf32> to vector<16xf32>
    %40 = vector.shape_cast %39 : vector<16xf32> to vector<16x1xf32>
    %41 = tpu.reciprocal %40 {approx = true} : vector<16x1xf32> -> vector<16x1xf32>
    %42 = vector.broadcast %41 : vector<16x1xf32> to vector<16x8xf32>
    %43 = arith.mulf %38, %42 : vector<16x8xf32>
    %44 = arith.truncf %43 : vector<16x8xf32> to vector<16x8xbf16>
    "tpu.trace_start"() <{level = 10 : i32, message = "ts,sd->td"}> : () -> ()
    %cst_19 = arith.constant dense<0.000000e+00> : vector<16x16xf32>
    %45 = tpu.matmul %44, %29, %cst_19 {dimension_numbers = #tpu.dot_dimension_numbers<[1], [0], [0], [1], [0, 0, 1, 1], [], []>} : vector<16x8xbf16>, vector<8x16xbf16>, vector<16x16xf32> -> vector<16x16xf32>
    "tpu.trace_stop"() : () -> ()
    %46 = vector.extract_strided_slice %1 {offsets = [0, 32], sizes = [16, 16], strides = [1, 1]} : vector<16x128xbf16> to vector<16x16xbf16>
    %47 = vector.extract_strided_slice %3 {offsets = [0, 32], sizes = [8, 16], strides = [1, 1]} : vector<8x128xbf16> to vector<8x16xbf16>
    %48 = vector.extract_strided_slice %5 {offsets = [0, 32], sizes = [8, 16], strides = [1, 1]} : vector<8x128xbf16> to vector<8x16xbf16>
    "tpu.trace_start"() <{level = 10 : i32, message = "td,sd->ts"}> : () -> ()
    %cst_20 = arith.constant dense<0.000000e+00> : vector<16x8xf32>
    %49 = tpu.matmul %46, %47, %cst_20 {dimension_numbers = #tpu.dot_dimension_numbers<[1], [1], [0], [0], [0, 0, 1, 0], [], []>} : vector<16x16xbf16>, vector<8x16xbf16>, vector<16x8xf32> -> vector<16x8xf32>
    "tpu.trace_stop"() : () -> ()
    %cst_21 = arith.constant 2.500000e-01 : f32
    %50 = vector.broadcast %cst_21 : f32 to vector<16x8xf32>
    %51 = arith.mulf %49, %50 : vector<16x8xf32>
    %52 = arith.addf %51, %7 : vector<16x8xf32>
    %cst_22 = arith.constant dense<0xFF800000> : vector<16xf32>
    %53 = vector.multi_reduction <maximumf>, %52, %cst_22 [1] : vector<16x8xf32> to vector<16xf32>
    %54 = vector.shape_cast %53 : vector<16xf32> to vector<16x1xf32>
    %55 = vector.broadcast %54 : vector<16x1xf32> to vector<16x8xf32>
    %56 = arith.subf %52, %55 : vector<16x8xf32>
    %57 = math.exp %56 : vector<16x8xf32>
    %cst_23 = arith.constant dense<0.000000e+00> : vector<16xf32>
    %58 = vector.multi_reduction <add>, %57, %cst_23 [1] : vector<16x8xf32> to vector<16xf32>
    %59 = vector.shape_cast %58 : vector<16xf32> to vector<16x1xf32>
    %60 = tpu.reciprocal %59 {approx = true} : vector<16x1xf32> -> vector<16x1xf32>
    %61 = vector.broadcast %60 : vector<16x1xf32> to vector<16x8xf32>
    %62 = arith.mulf %57, %61 : vector<16x8xf32>
    %63 = arith.truncf %62 : vector<16x8xf32> to vector<16x8xbf16>
    "tpu.trace_start"() <{level = 10 : i32, message = "ts,sd->td"}> : () -> ()
    %cst_24 = arith.constant dense<0.000000e+00> : vector<16x16xf32>
    %64 = tpu.matmul %63, %48, %cst_24 {dimension_numbers = #tpu.dot_dimension_numbers<[1], [0], [0], [1], [0, 0, 1, 1], [], []>} : vector<16x8xbf16>, vector<8x16xbf16>, vector<16x16xf32> -> vector<16x16xf32>
    "tpu.trace_stop"() : () -> ()
    %65 = vector.extract_strided_slice %1 {offsets = [0, 48], sizes = [16, 16], strides = [1, 1]} : vector<16x128xbf16> to vector<16x16xbf16>
    %66 = vector.extract_strided_slice %3 {offsets = [0, 48], sizes = [8, 16], strides = [1, 1]} : vector<8x128xbf16> to vector<8x16xbf16>
    %67 = vector.extract_strided_slice %5 {offsets = [0, 48], sizes = [8, 16], strides = [1, 1]} : vector<8x128xbf16> to vector<8x16xbf16>
    "tpu.trace_start"() <{level = 10 : i32, message = "td,sd->ts"}> : () -> ()
    %cst_25 = arith.constant dense<0.000000e+00> : vector<16x8xf32>
    %68 = tpu.matmul %65, %66, %cst_25 {dimension_numbers = #tpu.dot_dimension_numbers<[1], [1], [0], [0], [0, 0, 1, 0], [], []>} : vector<16x16xbf16>, vector<8x16xbf16>, vector<16x8xf32> -> vector<16x8xf32>
    "tpu.trace_stop"() : () -> ()
    %cst_26 = arith.constant 2.500000e-01 : f32
    %69 = vector.broadcast %cst_26 : f32 to vector<16x8xf32>
    %70 = arith.mulf %68, %69 : vector<16x8xf32>
    %71 = arith.addf %70, %7 : vector<16x8xf32>
    %cst_27 = arith.constant dense<0xFF800000> : vector<16xf32>
    %72 = vector.multi_reduction <maximumf>, %71, %cst_27 [1] : vector<16x8xf32> to vector<16xf32>
    %73 = vector.shape_cast %72 : vector<16xf32> to vector<16x1xf32>
    %74 = vector.broadcast %73 : vector<16x1xf32> to vector<16x8xf32>
    %75 = arith.subf %71, %74 : vector<16x8xf32>
    %76 = math.exp %75 : vector<16x8xf32>
    %cst_28 = arith.constant dense<0.000000e+00> : vector<16xf32>
    %77 = vector.multi_reduction <add>, %76, %cst_28 [1] : vector<16x8xf32> to vector<16xf32>
    %78 = vector.shape_cast %77 : vector<16xf32> to vector<16x1xf32>
    %79 = tpu.reciprocal %78 {approx = true} : vector<16x1xf32> -> vector<16x1xf32>
    %80 = vector.broadcast %79 : vector<16x1xf32> to vector<16x8xf32>
    %81 = arith.mulf %76, %80 : vector<16x8xf32>
    %82 = arith.truncf %81 : vector<16x8xf32> to vector<16x8xbf16>
    "tpu.trace_start"() <{level = 10 : i32, message = "ts,sd->td"}> : () -> ()
    %cst_29 = arith.constant dense<0.000000e+00> : vector<16x16xf32>
    %83 = tpu.matmul %82, %67, %cst_29 {dimension_numbers = #tpu.dot_dimension_numbers<[1], [0], [0], [1], [0, 0, 1, 1], [], []>} : vector<16x8xbf16>, vector<8x16xbf16>, vector<16x16xf32> -> vector<16x16xf32>
    %cst_30 = arith.constant 0.000000e+00 : f32
    "tpu.trace_stop"() : () -> ()
    %84 = vector.broadcast %cst_30 : f32 to vector<16x64xf32>
    %85 = tpu.concatenate %26, %45, %64, %83, %84 in 1 : vector<16x16xf32>, vector<16x16xf32>, vector<16x16xf32>, vector<16x16xf32>, vector<16x64xf32> -> vector<16x128xf32>
    %86 = vector.shape_cast %85 : vector<16x128xf32> to vector<1x16x128xf32>
    %87 = arith.truncf %86 : vector<1x16x128xf32> to vector<1x16x128xbf16>
    %c0_31 = arith.constant 0 : index
    %c0_32 = arith.constant 0 : index
    %c0_33 = arith.constant 0 : index
    %88 = vector.load %arg5[%c0_31, %c0_32, %c0_33] : memref<1x16x128xbf16, #tpu.memory_space<vmem>>, vector<1x16x128xbf16>
    tpu.vector_store %arg5[%c0_31, %c0_32, %c0_33], %87 {strides = array<i32>} : memref<1x16x128xbf16, #tpu.memory_space<vmem>>, vector<1x16x128xbf16>,
    return
  }
  func.func @transform_0(%arg0: i32) -> (i32, i32, i32) {
    %c0_i32 = arith.constant 0 : i32
    %c0_i32_0 = arith.constant 0 : i32
    %c0_i32_1 = arith.constant 0 : i32
    return %arg0, %c0_i32, %c0_i32_0 : i32, i32, i32
  }
  func.func @transform_1(%arg0: i32) -> (i32, i32, i32) {
    %c0_i32 = arith.constant 0 : i32
    %c0_i32_0 = arith.constant 0 : i32
    %c0_i32_1 = arith.constant 0 : i32
    return %arg0, %c0_i32, %c0_i32_0 : i32, i32, i32
  }
  func.func @transform_2(%arg0: i32) -> (i32, i32, i32) {
    %c0_i32 = arith.constant 0 : i32
    %c1_i32 = arith.constant 1 : i32
    %c0_i32_0 = arith.constant 0 : i32
    return %arg0, %c0_i32, %c1_i32 : i32, i32, i32
  }
  func.func @transform_3(%arg0: i32) -> (i32, i32, i32) {
    %c0_i32 = arith.constant 0 : i32
    %c0_i32_0 = arith.constant 0 : i32
    %c0_i32_1 = arith.constant 0 : i32
    return %arg0, %c0_i32, %c0_i32_0 : i32, i32, i32
  }
  func.func @transform_4(%arg0: i32) -> (i32, i32, i32) {
    %c0_i32 = arith.constant 0 : i32
    %c0_i32_0 = arith.constant 0 : i32
    %c0_i32_1 = arith.constant 0 : i32
    return %arg0, %c0_i32, %c0_i32_0 : i32, i32, i32
  }
}

module attributes {stable_mosaic.version = 11 : i64} {
  func.func @_proj_kernel(%arg0: i32, %arg1: memref<1x8x128xf32, #tpu.memory_space<vmem>>, %arg2: memref<128x256xbf16, #tpu.memory_space<vmem>>, %arg3: memref<1x256xf32, #tpu.memory_space<vmem>>, %arg4: memref<1x8x256xbf16, #tpu.memory_space<vmem>>) attributes {dimension_semantics = [#tpu.dimension_semantics<parallel>], iteration_bounds = array<i64: 2>, scalar_prefetch = 0 : i64, scratch_operands = 0 : i64, tpu.core_type = #tpu.core_type<tc>, window_params = [{transform_indices = @transform_0, window_bounds = array<i64: 1, 8, 128>}, {pipeline_mode = #tpu.pipeline_mode<synchronous>, transform_indices = @transform_1, window_bounds = array<i64: 128, 256>}, {pipeline_mode = #tpu.pipeline_mode<synchronous>, transform_indices = @transform_2, window_bounds = array<i64: 1, 256>}, {transform_indices = @transform_3, window_bounds = array<i64: 1, 8, 256>}]} {
    %c0 = arith.constant 0 : index
    %c0_0 = arith.constant 0 : index
    %c0_1 = arith.constant 0 : index
    %0 = vector.load %arg1[%c0, %c0_0, %c0_1] : memref<1x8x128xf32, #tpu.memory_space<vmem>>, vector<1x8x128xf32>
    %1 = vector.shape_cast %0 : vector<1x8x128xf32> to vector<8x128xf32>
    %2 = arith.truncf %1 : vector<8x128xf32> to vector<8x128xbf16>
    %c0_2 = arith.constant 0 : index
    %c0_3 = arith.constant 0 : index
    %3 = vector.load %arg2[%c0_2, %c0_3] : memref<128x256xbf16, #tpu.memory_space<vmem>>, vector<128x256xbf16>
    %cst = arith.constant dense<0.000000e+00> : vector<8x256xf32>
    %4 = tpu.matmul %2, %3, %cst {dimension_numbers = #tpu.dot_dimension_numbers<[1], [0], [0], [1], [0, 0, 1, 1], [], []>} : vector<8x128xbf16>, vector<128x256xbf16>, vector<8x256xf32> -> vector<8x256xf32>
    %c0_4 = arith.constant 0 : index
    %c0_5 = arith.constant 0 : index
    %5 = vector.load %arg3[%c0_4, %c0_5] : memref<1x256xf32, #tpu.memory_space<vmem>>, vector<1x256xf32>
    %6 = vector.broadcast %5 : vector<1x256xf32> to vector<8x256xf32>
    %7 = arith.addf %4, %6 : vector<8x256xf32>
    %8 = vector.shape_cast %7 : vector<8x256xf32> to vector<1x8x256xf32>
    %9 = arith.truncf %8 : vector<1x8x256xf32> to vector<1x8x256xbf16>
    %c0_6 = arith.constant 0 : index
    %c0_7 = arith.constant 0 : index
    %c0_8 = arith.constant 0 : index
    %10 = vector.load %arg4[%c0_6, %c0_7, %c0_8] : memref<1x8x256xbf16, #tpu.memory_space<vmem>>, vector<1x8x256xbf16>
    tpu.vector_store %arg4[%c0_6, %c0_7, %c0_8], %9 {strides = array<i32>} : memref<1x8x256xbf16, #tpu.memory_space<vmem>>, vector<1x8x256xbf16>,
    return
  }
  func.func @transform_0(%arg0: i32) -> (i32, i32, i32) {
    %c0_i32 = arith.constant 0 : i32
    %c0_i32_0 = arith.constant 0 : i32
    %c0_i32_1 = arith.constant 0 : i32
    return %arg0, %c0_i32, %c0_i32_0 : i32, i32, i32
  }
  func.func @transform_1(%arg0: i32) -> (i32, i32) {
    %c0_i32 = arith.constant 0 : i32
    %c0_i32_0 = arith.constant 0 : i32
    %c0_i32_1 = arith.constant 0 : i32
    return %c0_i32, %c0_i32_0 : i32, i32
  }
  func.func @transform_2(%arg0: i32) -> (i32, i32) {
    %c0_i32 = arith.constant 0 : i32
    %c0_i32_0 = arith.constant 0 : i32
    %c0_i32_1 = arith.constant 0 : i32
    return %c0_i32, %c0_i32_0 : i32, i32
  }
  func.func @transform_3(%arg0: i32) -> (i32, i32, i32) {
    %c0_i32 = arith.constant 0 : i32
    %c0_i32_0 = arith.constant 0 : i32
    %c0_i32_1 = arith.constant 0 : i32
    return %arg0, %c0_i32, %c0_i32_0 : i32, i32, i32
  }
}

</mosaic_0001>

<bundles_post_ra>
// kernel: decoder_layer.8
= control target key start
LH: loop header
LB: loop body
LE: loop exit
PB: predicated region body
PF: predicated region fallthrough
CT: control target
= control target key end

     0   :  { %10 = vsyncpa [#allocation3], 0  ;;  %s859_s18 = smov 0   ;;  %s911_s0 = inlined_call_operand.vmem [shape: f32[2,16,128], index: 0, kind: input, shape index: {}]   ;;  %s912_s1 = inlined_call_operand.vmem [shape: f32[1,128], index: 1, kind: input, shape index: {}]   ;;  %s913_s2 = inlined_call_operand.vmem [shape: f32[1,128], index: 2, kind: input, shape index: {}]   ;;  %s914_s3 = inlined_call_operand.hbm [shape: bf16[128,384], index: 3, kind: input, shape index: {}]   ;;  %s915_s4 = inlined_call_operand.vmem [shape: f32[1,384], index: 4, kind: input, shape index: {}]   ;;  %s916_s5 = inlined_call_operand.vmem [shape: bf16[2,16,384], index: 5, kind: output, shape index: {}]  }
   0x1 LB: > { %s174_s21 = sshll.u32 %s914_s3, 4  ;;  %s619_s22 = sadd.s32 4294967295, %s824_s18   ;;  %s824_s18 = sphi %s859_s18, %s16_s18   ;;  %s175_s21 = int_to_ptr.hbm [resolvable:$true] %s174_s21 }
   0x2   : > { %p621_p0 = scmp.ge.s32.totalorder %s824_s18, 1  ;;  %p157_p1 = scmp.lt.s32.totalorder %s824_s18, 3 }
   0x3   : > { %p761_p2 = scmp.eq.s32.totalorder %s619_s22, 0  ;;  %s826_s23 = smov [#allocation2]  }
   0x4   : > { %p158_p3 = pnand %p621_p0, %p157_p1  ;;  %s176_s24 = sshll.u32 %s826_s23, 4  ;;  %s177_s24 = int_to_ptr.vmem [resolvable:$true] %s176_s24 }
   0x5   : > { %s827_s25 = smov 192   ;;  %s828_s26 = smov 12  }
   0x6   : > { %p757_p4 = pneg %p158_p3  ;;  %203 = sbr.rel (%p158_p3) target bundleno = 459 (0x1cb), region = 40 }
   0x8   : > { %p758_p5 = pnand %p761_p2, %p757_p4 }
   0xa   : > { %760 = dma.hbm_to_vmem [thread:$0]  (!%p758_p5), %s175_s21, 3072, %s177_s24, [#allocation3], %s827_s25, %s827_s25, %s828_s26  }
   0xb   : > { %819 = dma.done.wait (%p761_p2), [#allocation3], 3072  }
   0xc   : > { %821 = vsyncadd (%p761_p2), [#allocation3], 4294964224  ;;  %p232_p6 = scmp.lt.s32.totalorder %s619_s22, 1  ;;  %v254_v2 = vlaneseq  ;;  %v715_v14 = vld [vmem:[#allocation2 + $0xa8] sm:$0xf] }
   0xd   : > { %v750_v15 = vld [vmem:[#allocation2 + $0xb0] sm:$0xf0]  ;;  %v749_v16 = vld [vmem:[#allocation2 + $0xac] sm:$0xf]  ;;  %v717_v18 = vld [vmem:[#allocation2 + $0xb4] sm:$0xf0] }
   0xe   : > { %s918_s22 = smov (!%p232_p6, %s619_s22), 1  ;;  %v255_v3 = vand.u32 127, %v254_v2  ;;  %v716_v17 = vor.u32 %v750_v15, %v715_v14  ;;  %v723_v19 = vld [vmem:[#allocation2 + $0xb0] sm:$0xf]  ;;  %v751_v20 = vld [vmem:[#allocation2 + $0xb8] sm:$0xf0]  ;;  %v720_v21 = vor.u32 %v749_v16, %v717_v18 }
   0xf   : > { %s727_s27 = sshll.u32 %s918_s22, 4  ;;  %v724_v22 = vor.u32 %v751_v20, %v723_v19  ;;  %v703_v23 = vld [vmem:[#allocation2 + $0x90] sm:$0xf]  ;;  %v747_v24 = vld [vmem:[#allocation2 + $0x98] sm:$0xf0]  ;;  %s752_s12 = smul.u32 24, %s918_s22 }
  0x10   : > { %s236_s30 = scalar_lea.vmem %s911_s0, %s727_s27  ;;  %vm256_vm0 = vcmp.lt.s32.totalorder %v255_v3, 64  ;;  %502 = vmatpush.bf16.msra.mxu0 %v716_v17  ;;  %516 = vmatpush.bf16.msra.mxu1 %v720_v21  ;;  %v746_v25 = vld [vmem:[#allocation2 + $0x94] sm:$0xf]  ;;  %v704_v26 = vor.u32 %v747_v24, %v703_v23  ;;  %v705_v27 = vld [vmem:[#allocation2 + $0x9c] sm:$0xf0] }
  0x11   : > { %v242_v0 = vld [vmem:[%s236_s30] sm:$0xff]  ;;  %v243_v1 = vld [vmem:[%s236_s30 + $0x8] sm:$0xff]  ;;  %530 = vmatpush.bf16.msra.mxu2 %v724_v22  ;;  %v711_v28 = vld [vmem:[#allocation2 + $0x98] sm:$0xf]  ;;  %v708_v30 = vor.u32 %v746_v25, %v705_v27  ;;  %s241_s15 = scalar_lea.vmem %s916_s5, %s752_s12 }
  0x12   : > { %246 = vadd.xlane.f32.xlu0 %v242_v0  ;;  %v748_v29 = vld [vmem:[#allocation2 + $0xa0] sm:$0xf0]  ;;  %v691_v32 = vld [vmem:[#allocation2 + $0x78] sm:$0xf]  ;;  %v743_v34 = vld [vmem:[#allocation2 + $0x7c] sm:$0xf] }
  0x13   : > { %v712_v31 = vor.u32 %v748_v29, %v711_v28  ;;  %v744_v33 = vld [vmem:[#allocation2 + $0x80] sm:$0xf0]  ;;  %v693_v36 = vld [vmem:[#allocation2 + $0x84] sm:$0xf0]  ;;  %v699_v37 = vld [vmem:[#allocation2 + $0x80] sm:$0xf] }
  0x14   : > { %503 = vmatpush.bf16.msra.mxu0 %v704_v26  ;;  %517 = vmatpush.bf16.msra.mxu1 %v708_v30  ;;  %v692_v35 = vor.u32 %v744_v33, %v691_v32  ;;  %v745_v38 = vld [vmem:[#allocation2 + $0x88] sm:$0xf0]  ;;  %v696_v40 = vor.u32 %v743_v34, %v693_v36  ;;  %v679_v42 = vld [vmem:[#allocation2 + $0x60] sm:$0xf]  ;;  %v740_v44 = vld [vmem:[#allocation2 + $0x64] sm:$0xf] }
  0x15   : > { %531 = vmatpush.bf16.msra.mxu2 %v712_v31  ;;  %v700_v41 = vor.u32 %v745_v38, %v699_v37  ;;  %v741_v43 = vld [vmem:[#allocation2 + $0x68] sm:$0xf0]  ;;  %v681_v46 = vld [vmem:[#allocation2 + $0x6c] sm:$0xf0]  ;;  %v687_v47 = vld [vmem:[#allocation2 + $0x68] sm:$0xf] }
  0x16   : > { %v680_v48 = vor.u32 %v741_v43, %v679_v42  ;;  %v742_v49 = vld [vmem:[#allocation2 + $0x70] sm:$0xf0]  ;;  %v684_v50 = vor.u32 %v740_v44, %v681_v46  ;;  %v667_v51 = vld [vmem:[#allocation2 + $0x48] sm:$0xf]  ;;  %v737_v53 = vld [vmem:[#allocation2 + $0x4c] sm:$0xf] }
  0x17   : > { %v738_v52 = vld [vmem:[#allocation2 + $0x50] sm:$0xf0]  ;;  %v688_v54 = vor.u32 %v742_v49, %v687_v47  ;;  %v669_v55 = vld [vmem:[#allocation2 + $0x54] sm:$0xf0]  ;;  %v675_v56 = vld [vmem:[#allocation2 + $0x50] sm:$0xf] }
  0x18   : > { %504 = vmatpush.bf16.msra.mxu0 %v692_v35  ;;  %518 = vmatpush.bf16.msra.mxu1 %v696_v40  ;;  %v739_v57 = vld [vmem:[#allocation2 + $0x58] sm:$0xf0]  ;;  %v668_v58 = vor.u32 %v738_v52, %v667_v51  ;;  %v672_v59 = vor.u32 %v737_v53, %v669_v55  ;;  %v655_v61 = vld [vmem:[#allocation2 + $0x30] sm:$0xf]  ;;  %v734_v63 = vld [vmem:[#allocation2 + $0x34] sm:$0xf] }
  0x19   : > { %532 = vmatpush.bf16.msra.mxu2 %v700_v41  ;;  %v676_v60 = vor.u32 %v739_v57, %v675_v56  ;;  %v735_v62 = vld [vmem:[#allocation2 + $0x38] sm:$0xf0]  ;;  %v663_v2 = vld [vmem:[#allocation2 + $0x38] sm:$0xf]  ;;  %v736_v3 = vld [vmem:[#allocation2 + $0x40] sm:$0xf0] }
  0x1a   : > { %248 = vadd.xlane.f32.xlu0 %v243_v1  ;;  %v731_v14 = vld [vmem:[#allocation2 + $0x1c] sm:$0xf]  ;;  %v645_v16 = vld [vmem:[#allocation2 + $0x24] sm:$0xf0]  ;;  %v651_v17 = vld [vmem:[#allocation2 + $0x20] sm:$0xf] }
  0x1b   : > { %v733_v18 = vld [vmem:[#allocation2 + $0x28] sm:$0xf0]  ;;  %v631_v21 = vld [vmem:[#allocation2] sm:$0xf]  ;;  %v648_v22 = vor.u32 %v731_v14, %v645_v16  ;;  %v728_v25 = vld [vmem:[#allocation2 + $0x4] sm:$0xf] }
  0x1c   : > { %505 = vmatpush.bf16.msra.mxu0 %v680_v48  ;;  %519 = vmatpush.bf16.msra.mxu1 %v684_v50  ;;  %v652_v23 = vor.u32 %v733_v18, %v651_v17  ;;  %v729_v24 = vld [vmem:[#allocation2 + $0x8] sm:$0xf0]  ;;  %v633_v26 = vld [vmem:[#allocation2 + $0xc] sm:$0xf0]  ;;  %v639_v28 = vld [vmem:[#allocation2 + $0x8] sm:$0xf] }
  0x1d   : > { %533 = vmatpush.bf16.msra.mxu2 %v688_v54  ;;  %v730_v29 = vld [vmem:[#allocation2 + $0x10] sm:$0xf0]  ;;  %v632_v33 = vor.u32 %v729_v24, %v631_v21  ;;  %v636_v34 = vor.u32 %v728_v25, %v633_v26 }
  0x1e   : > { %v640_v35 = vor.u32 %v730_v29, %v639_v28 }
  0x20   : > { %506 = vmatpush.bf16.msra.mxu0 %v668_v58  ;;  %520 = vmatpush.bf16.msra.mxu1 %v672_v59  ;;  %v774_v59 = vld [vmem:[%s912_s1] ss:$0 sm:$0xff] }
  0x21   : > { %534 = vmatpush.bf16.msra.mxu2 %v676_v60 }
  0x85   : > { %v247_v4 = vpop.xlane.xlu0 %246 }
  0x86   : > { %v250_v5 = vmul.f32 0.015625, %v247_v4 }
  0x88   : > { %v252_v6 = vsub.f32 %v242_v0, %v250_v5 }
  0x8a   : > { %v876_v7 = vsel %vm256_vm0, %v252_v6, 0.0 }
  0x8b   : > { %v259_v8 = vmul.f32 %v876_v7, %v876_v7 }
  0x8d   : > { %261 = vadd.xlane.f32.xlu1 %v259_v8  ;;  %v249_v9 = vpop.xlane.xlu0 %248  ;;  %v656_v8 = vor.u32 %v735_v62, %v655_v61 }
  0x8e   : > { %v251_v10 = vmul.f32 0.015625, %v249_v9 }
  0x8f   : > { %507 = vmatpush.bf16.msra.mxu0 %v656_v8 }
  0x90   : > { %v253_v11 = vsub.f32 %v243_v1, %v251_v10  ;;  %v657_v1 = vld [vmem:[#allocation2 + $0x3c] sm:$0xf0]  ;;  %v664_v10 = vor.u32 %v736_v3, %v663_v2  ;;  %v270_v3 = vmul.f32 %v774_v59, %v876_v7 }
  0x91   : > { %v660_v9 = vor.u32 %v734_v63, %v657_v1  ;;  %v366_v7 = vld [vmem:[%s915_s4] sm:$0x7] }
  0x92   : > { %v880_v12 = vsel %vm256_vm0, %v253_v11, 0.0  ;;  %v643_v11 = vld [vmem:[#allocation2 + $0x18] sm:$0xf]  ;;  %535 = vmatpush.bf16.msra.mxu2 %v664_v10  ;;  %v775_v10 = vld [vmem:[%s913_s2] ss:$0 sm:$0xff]  ;;  %v369_v17 = vperm.slane %v366_v7, 1 }
  0x93   : > { %v260_v13 = vmul.f32 %v880_v12, %v880_v12  ;;  %521 = vmatpush.bf16.msra.mxu1 %v660_v9 }
  0x95   : > { %263 = vadd.xlane.f32.xlu1 %v260_v13  ;;  %v732_v13 = vld [vmem:[#allocation2 + $0x20] sm:$0xf0] }
  0x96   : > { %v644_v20 = vor.u32 %v732_v13, %v643_v11  ;;  %536 = vmatpush.bf16.msra.mxu2 %v652_v23  ;;  %v370_v23 = vperm.slane %v366_v7, 2 }
  0x97   : > { %522 = vmatpush.bf16.msra.mxu1 %v648_v22 }
  0x98   : > { %508 = vmatpush.bf16.msra.mxu0 %v644_v20 }
  0x9a   : > { %537 = vmatpush.bf16.msra.mxu2 %v640_v35 }
  0x9b   : > { %523 = vmatpush.bf16.msra.mxu1 %v636_v34 }
  0x9c   : > { %509 = vmatpush.bf16.msra.mxu0 %v632_v33 }
 0x100   : > { %v262_v39 = vpop.xlane.xlu1 %261 }
 0x101   : > { %v884_v45 = vmul.f32 0.015873017, %v262_v39 }
 0x103   : > { %776 = vrsqrt.f32 %v884_v45  ;;  %vm279_vm1 = vcmp.eq.f32.partialorder %v884_v45, inf  ;;  %v282_v38 = vand.u32 2147483648, %v884_v45  ;;  %vm281_vm2 = vcmp.eq.f32.partialorder %v884_v45, 0.0 }
 0x108   : > { %v264_v0 = vpop.xlane.xlu1 %263 }
 0x109   : > { %v777_v4 = vpop.eup %776  ;;  %v266_v5 = vmul.f32 0.015873017, %v264_v0 }
 0x10a   : > { %v273_v6 = vmul.f32 %v777_v4, %v884_v45 }
 0x10b   : > { %778 = vrsqrt.f32 %v266_v5  ;;  %vm291_vm3 = vcmp.eq.f32.partialorder %v266_v5, inf  ;;  %v294_v47 = vand.u32 2147483648, %v266_v5  ;;  %vm293_vm4 = vcmp.eq.f32.partialorder %v266_v5, 0.0 }
 0x10c   : > { %v274_v15 = vmul.f32 %v777_v4, %v273_v6  ;;  %v271_v6 = vmul.f32 %v774_v59, %v880_v12  ;;  %v368_v12 = vperm.slane %v366_v7, 0 }
 0x10e   : > { %v275_v19 = vmul.f32 0.5, %v274_v15 }
 0x110   : > { %v276_v27 = vsub.f32 1.5, %v275_v19 }
 0x111   : > { %v779_v30 = vpop.eup %778 }
 0x112   : > { %v277_v31 = vmul.f32 %v777_v4, %v276_v27  ;;  %v285_v32 = vmul.f32 %v779_v30, %v266_v5 }
 0x114   : > { %v278_v36 = vmul.f32 %v277_v31, %v884_v45  ;;  %v286_v37 = vmul.f32 %v779_v30, %v285_v32 }
 0x116   : > { %v280_v39 = vsel %vm279_vm1, %v884_v45, %v278_v36  ;;  %v287_v40 = vmul.f32 0.5, %v286_v37 }
 0x117   : > { %v283_v41 = vsel %vm281_vm2, %v282_v38, %v280_v39 }
 0x118   : > { %v288_v42 = vsub.f32 1.5, %v287_v40  ;;  %v296_v43 = vadd.f32 1e-06, %v283_v41 }
 0x11a   : > { %v289_v44 = vmul.f32 %v779_v30, %v288_v42  ;;  %780 = vrcp.f32 %v296_v43  ;;  %v309_v56 = vand.u32 2147483648, %v296_v43  ;;  %vm303_vm6 = vweird.f32 %v296_v43 }
 0x11b   : > { %v307_v57 = vand.u32 2147483647, %v296_v43 }
 0x11c   : > { %v290_v46 = vmul.f32 %v289_v44, %v266_v5  ;;  %v310_v62 = vor.u32 1.1754944e-38, %v309_v56 }
 0x11d   : > { %vm308_vm8 = vcmp.eq.f32.partialorder %v307_v57, 8.507059e+37 }
 0x11e   : > { %v292_v48 = vsel %vm291_vm3, %v266_v5, %v290_v46 }
 0x11f   : > { %v295_v49 = vsel %vm293_vm4, %v294_v47, %v292_v48 }
 0x120   : > { %v781_v50 = vpop.eup %780  ;;  %v297_v51 = vadd.f32 1e-06, %v295_v49 }
 0x121   : > { %v299_v52 = vmul.f32 %v781_v50, %v296_v43  ;;  %vm304_vm5 = vweird.f32 %v781_v50 }
 0x122   : > { %782 = vrcp.f32 %v297_v51  ;;  %vm305_vm7 = vmor %vm303_vm6, %vm304_vm5  ;;  %v324_v63 = vand.u32 2147483648, %v297_v51  ;;  %v322_v1 = vand.u32 2147483647, %v297_v51  ;;  %vm318_vm10 = vweird.f32 %v297_v51 }
 0x123   : > { %v300_v45 = vsub.f32 1.0, %v299_v52 }
 0x124   : > { %v325_v5 = vor.u32 1.1754944e-38, %v324_v63  ;;  %vm323_vm12 = vcmp.eq.f32.partialorder %v322_v1, 8.507059e+37 }
 0x125   : > { %v301_v53 = vmul.f32 %v781_v50, %v300_v45 }
 0x127   : > { %v302_v54 = vadd.f32 %v781_v50, %v301_v53 }
 0x128   : > { %v783_v55 = vpop.eup %782 }
 0x129   : > { %v314_v58 = vmul.f32 %v783_v55, %v297_v51  ;;  %v306_v60 = vsel %vm305_vm7, %v781_v50, %v302_v54  ;;  %vm319_vm9 = vweird.f32 %v783_v55 }
 0x12a   : > { %v311_v2 = vsel %vm308_vm8, %v310_v62, %v306_v60  ;;  %vm320_vm11 = vmor %vm318_vm10, %vm319_vm9 }
 0x12b   : > { %v315_v61 = vsub.f32 1.0, %v314_v58  ;;  %v312_v8 = vmul.f32 %v311_v2, %v270_v3 }
 0x12d   : > { %v316_v0 = vmul.f32 %v783_v55, %v315_v61  ;;  %v331_v14 = vadd.f32 %v775_v10, %v312_v8 }
 0x12f   : > { %v317_v4 = vadd.f32 %v783_v55, %v316_v0 }
 0x131   : > { %v321_v9 = vsel %vm320_vm11, %v783_v55, %v317_v4 }
 0x132   : > { %v326_v11 = vsel %vm323_vm12, %v325_v5, %v321_v9 }
 0x133   : > { %v327_v13 = vmul.f32 %v326_v11, %v271_v6 }
 0x135   : > { %v332_v15 = vadd.f32 %v775_v10, %v327_v13 }
 0x137   : > { %v333_v16 = vpack.c.bf16 %v332_v15, %v331_v14 }
 0x139   : > { %510 = vmatmul.bf16.vlgmr.msra.gmra.mxu0 %v333_v16  ;;  %524 = vmatmul.bf16.vlgmr.msra.gmra.mxu1 %v333_v16 }
 0x13a   : > { %538 = vmatmul.bf16.vlgmr.msra.gmra.mxu2 %v333_v16 }
 0x1b6   : > { %v511_v18 = vpop.f32.mrf.mxu0  ;;  %v525_v19 = vpop.f32.mrf.mxu1 }
 0x1b7   : > { %v512_v20 = vadd.f32 %v511_v18, %v368_v12  ;;  %v526_v21 = vadd.f32 %v525_v19, %v369_v17 }
 0x1b9   : > { %v544_v22 = vpack.c.bf16 %v526_v21, %v512_v20 }
 0x1bb   : > { %548 = vst [vmem:[%s241_s15] sm:$0xff] %v544_v22 }
 0x1bd   : > { %v539_v24 = vpop.f32.mrf.mxu2 }
 0x1be   : > { %v540_v25 = vadd.f32 %v539_v24, %v370_v23  ;;  %v513_v26 = vpop.f32.mrf.mxu0  ;;  %v527_v27 = vpop.f32.mrf.mxu1 }
 0x1bf   : > { %v514_v28 = vadd.f32 %v513_v26, %v368_v12  ;;  %v528_v29 = vadd.f32 %v527_v27, %v369_v17 }
 0x1c0   : > { %v545_v30 = vpack.c.bf16 %v540_v25, %v540_v25 }
 0x1c1   : > { %v546_v31 = vpack.c.bf16 %v528_v29, %v514_v28 }
 0x1c2   : > { %549 = vst [vmem:[%s241_s15 + $0x8] sm:$0xf] %v545_v30 }
 0x1c3   : > { %550 = vst [vmem:[%s241_s15 + $0xc] sm:$0xff] %v546_v31 }
 0x1c5   : > { %v541_v32 = vpop.f32.mrf.mxu2 }
 0x1c6   : > { %v542_v33 = vadd.f32 %v541_v32, %v370_v23 }
 0x1c8   : > { %v547_v34 = vpack.c.bf16 %v542_v33, %v542_v33 }
 0x1ca   : > { %551 = vst [vmem:[%s241_s15 + $0x14] sm:$0xf] %v547_v34 }
 0x1cb PF: > { %s16_s18 = sadd.s32 1, %s824_s18  }
 0x1cc   : > { %p13_p7 = scmp.ge.s32.totalorder %s16_s18, 4  }
 0x1ce   :  { %15 = sbr.rel (!%p13_p7) target bundleno = 1 (0x1), region = 75 }
 0x1d3   :  { %573 = vsyncpa [#allocation3], 1 }
 0x1d4   :  { %575 = vsyncpa [#allocation3 + $0x1], 1 }

// kernel: decoder_layer.9
= control target key start
LH: loop header
LB: loop body
LE: loop exit
PB: predicated region body
PF: predicated region fallthrough
CT: control target
= control target key end

     0   :  { %s1046_s15 = smov 0   ;;  %s1048_s16 = smov 0   ;;  %s1199_s0 = inlined_call_operand.vmem [shape: bf16[2,16,384], index: 0, kind: input, shape index: {}, may-alias: {0,1,2}]   ;;  %s1200_s1 = inlined_call_operand.vmem [shape: bf16[2,16,384], index: 1, kind: input, shape index: {}, may-alias: {0,1,2}]   ;;  %s1201_s2 = inlined_call_operand.vmem [shape: bf16[2,16,384], index: 2, kind: input, shape index: {}, may-alias: {0,1,2}]   ;;  %s1202_s3 = inlined_call_operand.vmem [shape: f32[2,16,16], index: 3, kind: input, shape index: {}]   ;;  %s1203_s4 = inlined_call_operand.vmem [shape: bf16[2,16,128], index: 4, kind: output, shape index: {}]  }
   0x1   :  { %s1050_s17 = smov 0  }
   0x2 LB: > { %s859_s18 = sadd.s32 4294967295, %s1013_s17   ;;  %s1063_s19 = sadd.s32 1, %s1013_s17   ;;  %s1013_s17 = sphi %s1050_s17, %s1207_s17   ;;  %s1009_s16 = sphi %s1048_s16, %s1206_s16   ;;  %s1005_s15 = sphi %s1046_s15, %s1205_s15  }
   0x3   : > { %s18_s20 = ssub.s32 %s1013_s17, %s1063_s19  ;;  %s21_s21 = sadd.s32 1, %s1009_s16 }
   0x4   : > { %p19_p0 = scmp.eq.s32.totalorder %s18_s20, 0  ;;  %p28_p1 = scmp.ne.s32.totalorder %s1009_s16, %s1005_s15 }
   0x5   : > { %p29_p2 = scmp.eq.s32.totalorder %s1013_s17, 0  ;;  %p862_p4 = scmp.ge.s32.totalorder %s1013_s17, 2 }
   0x6   : > { %s1072_s22 = scalar_select %p19_p0, %s1009_s16, %s21_s21  }
   0x7   : > { %p1074_p3 = por %p29_p2, %p28_p1  ;;  %158 = sbr.rel (%p862_p4) target bundleno = 33 (0x21), region = 16 }
   0xc   : > { %161 = sbr.rel (!%p1074_p3) target bundleno = 19 (0x13), region = 20  ;;  %s163_s24 = sand.u32 (%p1074_p3), 1, %s1009_s16  }
   0xd   : > { %s913_s25 = smul.u32 (%p1074_p3), 24, %s1013_s17  ;;  %s863_s26 = sshll.u32 (%p1074_p3), %s163_s24, 3 }
   0xe   : > { %s165_s30 = scalar_lea.vmem (%p1074_p3), [#allocation2], %s863_s26 }
   0xf   : > { %s168_s29 = scalar_lea.vmem (%p1074_p3), %s1199_s0, %s913_s25 }
  0x10   : > { %v185_v0 = vld [vmem:[%s168_s29] sm:$0xf] (%p1074_p3)  ;;  %v187_v1 = vld [vmem:[%s168_s29 + $0xc] sm:$0xf] (%p1074_p3) }
  0x11   : > { %186 = vst [vmem:[%s165_s30] sm:$0xf] %v185_v0 }
  0x12   : > { %188 = vst [vmem:[%s165_s30 + $0x4] sm:$0xf] %v187_v1 }
  0x13 PF: > { %216 = sbr.rel (!%p1074_p3) target bundleno = 26 (0x1a), region = 61  ;;  %s218_s5 = sand.u32 (%p1074_p3), 1, %s1009_s16  }
  0x14   : > { %s866_s6 = smul.u32 (%p1074_p3), 24, %s1013_s17  ;;  %s865_s7 = sshll.u32 (%p1074_p3), %s218_s5, 3 }
  0x15   : > { %s220_s11 = scalar_lea.vmem (%p1074_p3), [#allocation3], %s865_s7 }
  0x16   : > { %s775_s10 = scalar_lea.vmem (%p1074_p3), %s1200_s1, %s866_s6 }
  0x17   : > { %v867_v2 = vld [vmem:[%s775_s10 + $0x4] sm:$0xf] (%p1074_p3)  ;;  %v868_v3 = vld [vmem:[%s775_s10 + $0x10] sm:$0xf] (%p1074_p3) }
  0x18   : > { %242 = vst [vmem:[%s220_s11] sm:$0xf] %v867_v2 }
  0x19   : > { %244 = vst [vmem:[%s220_s11 + $0x4] sm:$0xf] %v868_v3 }
  0x1a PF: > { %272 = sbr.rel (!%p1074_p3) target bundleno = 33 (0x21), region = 102  ;;  %s274_s12 = sand.u32 (%p1074_p3), 1, %s1009_s16  }
  0x1b   : > { %s870_s13 = smul.u32 (%p1074_p3), 24, %s1013_s17  ;;  %s869_s14 = sshll.u32 (%p1074_p3), %s274_s12, 3 }
  0x1c   : > { %s276_s25 = scalar_lea.vmem (%p1074_p3), [#allocation4], %s869_s14 }
  0x1d   : > { %s781_s24 = scalar_lea.vmem (%p1074_p3), %s1201_s2, %s870_s13 }
  0x1e   : > { %v871_v4 = vld [vmem:[%s781_s24 + $0x8] sm:$0xf] (%p1074_p3)  ;;  %v872_v5 = vld [vmem:[%s781_s24 + $0x14] sm:$0xf] (%p1074_p3) }
  0x1f   : > { %298 = vst [vmem:[%s276_s25] sm:$0xf] %v871_v4 }
  0x20   : > { %300 = vst [vmem:[%s276_s25 + $0x4] sm:$0xf] %v872_v5 }
  0x21 PF: > { %p873_p5 = scmp.ge.s32.totalorder %s1013_s17, 1  ;;  %p335_p6 = scmp.lt.s32.totalorder %s1013_s17, 3 }
  0x23   : > { %p336_p7 = pnand %p873_p5, %p335_p6 }
  0x24   : > { %s342_s23 = sand.u32 (!%p336_p7), 1, %s1005_s15   ;;  %s1015_s29 = smov (!%p336_p7), 112  }
  0x25   : > { %339 = sbr.rel (%p336_p7) target bundleno = 1111 (0x457), region = 147  ;;  %s1103_s26 = sshll.u32 (!%p336_p7), %s342_s23, 3 }
  0x26   : > { %s351_s27 = scalar_lea.vmem (!%p336_p7), [#allocation3], %s1103_s26  ;;  %s344_s28 = scalar_lea.vmem (!%p336_p7), [#allocation2], %s1103_s26 }
  0x27   : > { %s1016_s15 = smov (!%p336_p7), 80   ;;  %p394_p8 = scmp.lt.s32.totalorder (!%p336_p7), %s859_s18, 1 }
  0x28   : > { %s1017_s17 = smov (!%p336_p7), 96   ;;  %s358_s8 = scalar_lea.vmem (!%p336_p7), [#allocation4], %s1103_s26 }
  0x29   : > { %s1018_s9 = smov (!%p336_p7), 16   ;;  %s1019_s10 = smov (!%p336_p7), 32  }
  0x2a   : > { %vm423_vm0 = vcmask 130048   ;;  %v906_v6 = vld [vmem:[%s351_s27] sm:$0xff]  ;;  %v905_v7 = vld [vmem:[%s344_s28] sm:$0xff]  ;;  %s1209_s18 = smov (!%p394_p8, %s859_s18), 1  ;;  %s1020_s11 = smov 48   ;;  %vm733_vm1 = vcmask 261120  }
  0x2b   : > { %v428_v8 = vsel %vm423_vm0, %v906_v6, 0  ;;  %496 = vrot.lane.b32.xlu1 %v906_v6, %s1015_s29  ;;  %494 = vrot.lane.b32.xlu2 %v905_v7, %s1015_s29  ;;  %s903_s30 = sshll.u32 %s1209_s18, 4  ;;  %v1143_v42 = vld [vmem:[%s358_s8] sm:$0xff]  ;;  %vm736_vm2 = vcmask 392192   ;;  %s904_s12 = sshll.u32 %s1209_s18, 3  ;;  %vm739_vm3 = vcmask 523264  }
  0x2c   : > { %437 = vmatpush.bf16.xpose.msra.mxu0 %v428_v8  ;;  %s398_s7 = scalar_lea.vmem %s1202_s3, %s903_s30  ;;  %487 = vmatpush.bf16.msra.mxu1 %v1143_v42  ;;  %s403_s20 = scalar_lea.vmem %s1203_s4, %s904_s12 }
  0x2d   : > { %v1124_v13 = vld [vmem:[%s398_s7] sm:$0xff]  ;;  %v1128_v18 = vld [vmem:[%s398_s7 + $0x8] sm:$0xff] }
  0x33   : > { %889 = vmatmul.msk.bf16.vlgmr.msra.gmra.mxu0 %vm423_vm0, %v905_v7  ;;  %638 = vrot.lane.b32.xlu2 %v906_v6, %s1016_s15 }
  0x85   : > { %v495_v11 = vpop.permute.xlu2 %494 }
  0x8d   : > { %v639_v30 = vpop.permute.xlu2 %638 }
  0x8e   : > { %v644_v33 = vsel %vm423_vm0, %v639_v30, 0 }
  0x8f   : > { %653 = vmatpush.bf16.xpose.msrb.mxu0 %v644_v33 }
  0x9d   : > { %v497_v9 = vpop.permute.xlu1 %496 }
  0x9e   : > { %v502_v10 = vsel %vm423_vm0, %v497_v9, 0 }
  0x9f   : > { %511 = vmatpush.bf16.xpose.msra.mxu2 %v502_v10 }
  0xa6   : > { %895 = vmatmul.msk.bf16.vlgmr.msra.gmra.mxu2 %vm423_vm0, %v495_v11 }
  0xb0   : > { %v439_v12 = vpop.f32.mrf.mxu0 }
  0xb1   : > { %v444_v14 = vmul.f32 0.25, %v439_v12 }
  0xb3   : > { %v446_v15 = vadd.f32 %v444_v14, %v1124_v13 }
  0xb5   : > { %v448_v16 = vsel %vm423_vm0, %v446_v15, -inf }
  0xb6   : > { %449 = vmax.xlane.f32.xlu0 %v448_v16 }
  0xb8   : > { %v441_v17 = vpop.f32.mrf.mxu0 }
  0xb9   : > { %v445_v19 = vmul.f32 0.25, %v441_v17 }
  0xbb   : > { %v447_v20 = vadd.f32 %v445_v19, %v1128_v18 }
  0xbd   : > { %v451_v21 = vsel %vm423_vm0, %v447_v20, -inf }
  0xbe   : > { %452 = vmax.xlane.f32.xlu0 %v451_v21 }
  0xd2   : > { %567 = vrot.lane.b32.xlu0 %v906_v6, %s1017_s17 }
  0xda   : > { %565 = vrot.lane.b32.xlu0 %v905_v7, %s1017_s17 }
 0x129   : > { %v450_v22 = vpop.xlane.xlu0 %449  ;;  %v513_v31 = vpop.f32.mrf.mxu2 }
 0x12a   : > { %v454_v23 = vsub.f32 %v446_v15, %v450_v22  ;;  %v518_v32 = vmul.f32 0.25, %v513_v31 }
 0x12c   : > { %v456_v24 = vmul.f32 1.442695, %v454_v23  ;;  %v520_v34 = vadd.f32 %v518_v32, %v1124_v13 }
 0x12e   : > { %959 = vpow2.f32 %v456_v24  ;;  %v522_v35 = vsel %vm423_vm0, %v520_v34, -inf }
 0x12f   : > { %523 = vmax.xlane.f32.xlu0 %v522_v35 }
 0x131   : > { %v453_v25 = vpop.xlane.xlu0 %452  ;;  %v515_v38 = vpop.f32.mrf.mxu2 }
 0x132   : > { %v455_v26 = vsub.f32 %v447_v20, %v453_v25  ;;  %v519_v39 = vmul.f32 0.25, %v515_v38 }
 0x134   : > { %v960_v27 = vpop.eup %959  ;;  %v458_v28 = vmul.f32 1.442695, %v455_v26  ;;  %v521_v40 = vadd.f32 %v519_v39, %v1128_v18 }
 0x135   : > { %v460_v29 = vsel %vm423_vm0, %v960_v27, 0.0 }
 0x136   : > { %961 = vpow2.f32 %v458_v28  ;;  %461 = vadd.xlane.f32.xlu1 %v460_v29  ;;  %v525_v41 = vsel %vm423_vm0, %v521_v40, -inf }
 0x13c   : > { %v962_v36 = vpop.eup %961 }
 0x13d   : > { %v463_v37 = vsel %vm423_vm0, %v962_v36, 0.0 }
 0x13e   : > { %464 = vadd.xlane.f32.xlu2 %v463_v37 }
 0x144   : > { %v568_v43 = vpop.permute.xlu0 %567 }
 0x145   : > { %v573_v44 = vsel %vm423_vm0, %v568_v43, 0 }
 0x146   : > { %582 = vmatpush.bf16.xpose.msrb.mxu1 %v573_v44 }
 0x14c   : > { %v566_v53 = vpop.permute.xlu0 %565 }
 0x156   : > { %636 = vrot.lane.b32.xlu2 %v905_v7, %s1016_s15 }
 0x17f   : > { %526 = vmax.xlane.f32.xlu2 %v525_v41 }
 0x197   : > { %545 = vrot.lane.b32.xlu2 %v1143_v42, %s1015_s29 }
 0x1a2   : > { %v524_v6 = vpop.xlane.xlu0 %523 }
 0x1a3   : > { %v528_v9 = vsub.f32 %v520_v34, %v524_v6 }
 0x1a5   : > { %v530_v11 = vmul.f32 1.442695, %v528_v9 }
 0x1a9   : > { %v462_v45 = vpop.xlane.xlu1 %461 }
 0x1aa   : > { %963 = vrcp.f32 %v462_v45 }
 0x1b0   : > { %v964_v47 = vpop.eup %963 }
 0x1b1   : > { %v465_v46 = vpop.xlane.xlu2 %464  ;;  %v468_v50 = vmul.f32 %v964_v47, %v960_v27 }
 0x1b2   : > { %965 = vrcp.f32 %v465_v46 }
 0x1b8   : > { %v966_v48 = vpop.eup %965 }
 0x1b9   : > { %v637_v49 = vpop.permute.xlu2 %636  ;;  %v469_v51 = vmul.f32 %v966_v48, %v962_v36 }
 0x1ba   : > { %899 = vmatmul.msk.bf16.vlgmr.msrb.gmra.mxu0 %vm423_vm0, %v637_v49 }
 0x1bb   : > { %v470_v52 = vpack.c.bf16 %v469_v51, %v468_v50 }
 0x1bd   : > { %894 = vmatmul.msk.bf16.vlgmr.msra.gmra.mxu1 %vm423_vm0, %v470_v52 }
 0x1cd   : > { %897 = vmatmul.msk.bf16.vlgmr.msrb.gmra.mxu1 %vm423_vm0, %v566_v53 }
 0x1f2   : > { %v527_v54 = vpop.xlane.xlu2 %526 }
 0x1f3   : > { %v529_v55 = vsub.f32 %v521_v40, %v527_v54 }
 0x1f5   : > { %v532_v56 = vmul.f32 1.442695, %v529_v55 }
 0x1f7   : > { %967 = vpow2.f32 %v532_v56 }
 0x1f8   : > { %969 = vpow2.f32 %v530_v11 }
 0x1fa   : > { %v546_v23 = vpop.permute.xlu2 %545 }
 0x1fb   : > { %558 = vmatpush.bf16.msra.mxu3 %v546_v23 }
 0x1fd   : > { %v1152_v57 = vpop.eup %967 }
 0x1fe   : > { %v537_v58 = vsel %vm423_vm0, %v1152_v57, 0.0  ;;  %v970_v17 = vpop.eup %969 }
 0x1ff   : > { %538 = vadd.xlane.f32.xlu0 %v537_v58  ;;  %v534_v19 = vsel %vm423_vm0, %v970_v17, 0.0 }
 0x237   : > { %v655_v59 = vpop.f32.mrf.mxu0 }
 0x238   : > { %v660_v60 = vmul.f32 0.25, %v655_v59 }
 0x23a   : > { %v1156_v61 = vpop.f32.mrf.mxu1  ;;  %v662_v62 = vadd.f32 %v660_v60, %v1124_v13 }
 0x23c   : > { %v664_v63 = vsel %vm423_vm0, %v662_v62, -inf }
 0x23d   : > { %665 = vmax.xlane.f32.xlu1 %v664_v63 }
 0x23f   : > { %v657_v0 = vpop.f32.mrf.mxu0 }
 0x240   : > { %v661_v1 = vmul.f32 0.25, %v657_v0 }
 0x242   : > { %v663_v2 = vadd.f32 %v661_v1, %v1128_v18  ;;  %v1161_v3 = vpop.f32.mrf.mxu1 }
 0x244   : > { %v667_v4 = vsel %vm423_vm0, %v663_v2, -inf }
 0x245   : > { %668 = vmax.xlane.f32.xlu1 %v667_v4 }
 0x24a   : > { %v584_v5 = vpop.f32.mrf.mxu1 }
 0x24b   : > { %v589_v7 = vmul.f32 0.25, %v584_v5 }
 0x24d   : > { %v591_v8 = vadd.f32 %v589_v7, %v1124_v13 }
 0x24f   : > { %v593_v10 = vsel %vm423_vm0, %v591_v8, -inf }
 0x250   : > { %594 = vmax.xlane.f32.xlu1 %v593_v10 }
 0x252   : > { %v586_v12 = vpop.f32.mrf.mxu1 }
 0x253   : > { %v590_v14 = vmul.f32 0.25, %v586_v12 }
 0x255   : > { %v592_v15 = vadd.f32 %v590_v14, %v1128_v18 }
 0x257   : > { %v596_v16 = vsel %vm423_vm0, %v592_v15, -inf }
 0x258   : > { %597 = vmax.xlane.f32.xlu1 %v596_v16 }
 0x260   : > { %535 = vadd.xlane.f32.xlu1 %v534_v19 }
 0x272   : > { %v539_v36 = vpop.xlane.xlu0 %538 }
 0x2b0   : > { %v666_v20 = vpop.xlane.xlu1 %665 }
 0x2b1   : > { %v670_v21 = vsub.f32 %v662_v62, %v666_v20 }
 0x2b3   : > { %v672_v13 = vmul.f32 1.442695, %v670_v21 }
 0x2b5   : > { %971 = vpow2.f32 %v672_v13 }
 0x2b8   : > { %v669_v22 = vpop.xlane.xlu1 %668 }
 0x2b9   : > { %v671_v24 = vsub.f32 %v663_v2, %v669_v22 }
 0x2bb   : > { %v972_v25 = vpop.eup %971  ;;  %v674_v26 = vmul.f32 1.442695, %v671_v24 }
 0x2bc   : > { %v676_v18 = vsel %vm423_vm0, %v972_v25, 0.0 }
 0x2bd   : > { %973 = vpow2.f32 %v674_v26  ;;  %677 = vadd.xlane.f32.xlu1 %v676_v18 }
 0x2c3   : > { %v974_v27 = vpop.eup %973  ;;  %v595_v28 = vpop.xlane.xlu1 %594 }
 0x2c4   : > { %v599_v29 = vsub.f32 %v591_v8, %v595_v28  ;;  %v679_v30 = vsel %vm423_vm0, %v974_v27, 0.0 }
 0x2c5   : > { %680 = vadd.xlane.f32.xlu0 %v679_v30 }
 0x2c6   : > { %v601_v31 = vmul.f32 1.442695, %v599_v29 }
 0x2c8   : > { %975 = vpow2.f32 %v601_v31 }
 0x2cb   : > { %v598_v32 = vpop.xlane.xlu1 %597 }
 0x2cc   : > { %v600_v33 = vsub.f32 %v592_v15, %v598_v32 }
 0x2ce   : > { %v976_v34 = vpop.eup %975  ;;  %v603_v35 = vmul.f32 1.442695, %v600_v33 }
 0x2cf   : > { %v605_v37 = vsel %vm423_vm0, %v976_v34, 0.0 }
 0x2d0   : > { %977 = vpow2.f32 %v603_v35  ;;  %606 = vadd.xlane.f32.xlu1 %v605_v37 }
 0x2d1   : > { %979 = vrcp.f32 %v539_v36 }
 0x2d3   : > { %v536_v38 = vpop.xlane.xlu1 %535 }
 0x2d4   : > { %981 = vrcp.f32 %v536_v38 }
 0x2d6   : > { %v978_v39 = vpop.eup %977 }
 0x2d7   : > { %v608_v40 = vsel %vm423_vm0, %v978_v39, 0.0  ;;  %v980_v41 = vpop.eup %979 }
 0x2d8   : > { %609 = vadd.xlane.f32.xlu0 %v608_v40  ;;  %v543_v45 = vmul.f32 %v980_v41, %v1152_v57 }
 0x2da   : > { %v982_v43 = vpop.eup %981 }
 0x2db   : > { %v542_v44 = vmul.f32 %v982_v43, %v970_v17 }
 0x2dd   : > { %v544_v46 = vpack.c.bf16 %v543_v45, %v542_v44 }
 0x2df   : > { %896 = vmatmul.msk.bf16.vlgmr.msra.gmra.mxu3 %vm423_vm0, %v544_v46 }
 0x2e9   : > { %616 = vrot.lane.b32.xlu1 %v1143_v42, %s1017_s17 }
 0x2ec   : > { %687 = vrot.lane.b32.xlu0 %v1143_v42, %s1016_s15 }
 0x330   : > { %v678_v48 = vpop.xlane.xlu1 %677 }
 0x338   : > { %v681_v47 = vpop.xlane.xlu0 %680 }
 0x343   : > { %v607_v50 = vpop.xlane.xlu1 %606 }
 0x34b   : > { %v610_v49 = vpop.xlane.xlu0 %609 }
 0x34c   : > { %983 = vrcp.f32 %v610_v49 }
 0x34d   : > { %985 = vrcp.f32 %v607_v50 }
 0x34e   : > { %987 = vrcp.f32 %v681_v47 }
 0x34f   : > { %989 = vrcp.f32 %v678_v48 }
 0x352   : > { %v984_v51 = vpop.eup %983 }
 0x353   : > { %v986_v52 = vpop.eup %985  ;;  %v614_v54 = vmul.f32 %v984_v51, %v978_v39 }
 0x354   : > { %v988_v53 = vpop.eup %987  ;;  %v613_v56 = vmul.f32 %v986_v52, %v976_v34 }
 0x355   : > { %v990_v55 = vpop.eup %989  ;;  %v685_v58 = vmul.f32 %v988_v53, %v974_v27 }
 0x356   : > { %v615_v59 = vpack.c.bf16 %v614_v54, %v613_v56  ;;  %v684_v60 = vmul.f32 %v990_v55, %v972_v25 }
 0x358   : > { %v686_v62 = vpack.c.bf16 %v685_v58, %v684_v60 }
 0x35b   : > { %v617_v57 = vpop.permute.xlu1 %616 }
 0x35c   : > { %629 = vmatpush.bf16.msrb.mxu3 %v617_v57 }
 0x35e   : > { %v688_v42 = vpop.permute.xlu0 %687 }
 0x35f   : > { %898 = vmatmul.msk.bf16.vlgmr.msrb.gmra.mxu3 %vm423_vm0, %v615_v59  ;;  %700 = vmatpush.bf16.msrb.mxu2 %v688_v42 }
 0x362   : > { %v560_v63 = vpop.f32.mrf.mxu3  ;;  %900 = vmatmul.msk.bf16.vlgmr.msrb.gmra.mxu2 %vm423_vm0, %v686_v62 }
 0x36a   : > { %v562_v0 = vpop.f32.mrf.mxu3 }
 0x36b   : > { %v944_v1 = vpack.i.bf16 %v562_v0, %v560_v63 }
 0x36d   : > { %945 = vrot.lane.b32.xlu2 %v944_v1, %s1018_s9 }
 0x3c7   : > { %v946_v9 = vpop.permute.xlu2 %945 }
 0x3c8   : > { %v948_v11 = vunpack.i.h.bf16 %v946_v9  ;;  %v947_v12 = vunpack.i.l.bf16 %v946_v9 }
 0x3ca   : > { %v732_v16 = vsel %vm423_vm0, %v1161_v3, %v948_v11  ;;  %v731_v19 = vsel %vm423_vm0, %v1156_v61, %v947_v12 }
 0x3e2   : > { %v631_v2 = vpop.f32.mrf.mxu3 }
 0x3e5   : > { %v702_v4 = vpop.f32.mrf.mxu2 }
 0x3ea   : > { %v633_v5 = vpop.f32.mrf.mxu3 }
 0x3eb   : > { %v949_v6 = vpack.i.bf16 %v633_v5, %v631_v2 }
 0x3ed   : > { %950 = vrot.lane.b32.xlu2 %v949_v6, %s1019_s10  ;;  %v704_v7 = vpop.f32.mrf.mxu2 }
 0x3ee   : > { %v954_v8 = vpack.i.bf16 %v704_v7, %v702_v4 }
 0x3f5   : > { %955 = vrot.lane.b32.xlu2 %v954_v8, %s1020_s11 }
 0x447   : > { %v951_v10 = vpop.permute.xlu2 %950 }
 0x448   : > { %v953_v14 = vunpack.i.h.bf16 %v951_v10  ;;  %v952_v15 = vunpack.i.l.bf16 %v951_v10 }
 0x44a   : > { %v735_v13 = vsel %vm733_vm1, %v732_v16, %v953_v14  ;;  %v734_v22 = vsel %vm733_vm1, %v731_v19, %v952_v15 }
 0x44f   : > { %v956_v17 = vpop.permute.xlu2 %955 }
 0x450   : > { %v958_v20 = vunpack.i.h.bf16 %v956_v17  ;;  %v957_v21 = vunpack.i.l.bf16 %v956_v17 }
 0x452   : > { %v738_v23 = vsel %vm736_vm2, %v735_v13, %v958_v20  ;;  %v737_v24 = vsel %vm736_vm2, %v734_v22, %v957_v21 }
 0x453   : > { %v741_v25 = vsel %vm739_vm3, %v738_v23, 0.0  ;;  %v740_v26 = vsel %vm739_vm3, %v737_v24, 0.0 }
 0x454   : > { %v911_v3 = vpack.c.bf16 %v741_v25, %v740_v26 }
 0x456   : > { %912 = vst [vmem:[%s403_s20] sm:$0xff] %v911_v3  }
 0x457 PF: > { %p11_p9 = scmp.ge.s32.totalorder %s1063_s19, 4   ;;  %s1205_s15 = smov %s1009_s16 }
 0x458   : > { %s1206_s16 = smov %s1072_s22  ;;  %s1207_s17 = smov %s1063_s19 }
 0x459   :  { %13 = sbr.rel (!%p11_p9) target bundleno = 2 (0x2), region = 213 }

// kernel: decoder_layer.10
= control target key start
LH: loop header
LB: loop body
LE: loop exit
PB: predicated region body
PF: predicated region fallthrough
CT: control target
= control target key end

     0   :  { %s484_s15 = smov 0   ;;  %s531_s0 = inlined_call_operand.vmem [shape: bf16[2,16,128], index: 0, kind: input, shape index: {}]   ;;  %s532_s1 = inlined_call_operand.vmem [shape: f32[2,16,128], index: 1, kind: input, shape index: {}]   ;;  %s533_s2 = inlined_call_operand.vmem [shape: bf16[128,128], index: 2, kind: input, shape index: {}]   ;;  %s534_s3 = inlined_call_operand.vmem [shape: f32[1,128], index: 3, kind: input, shape index: {}]   ;;  %s535_s4 = inlined_call_operand.vmem [shape: f32[2,16,128], index: 4, kind: output, shape index: {}]  }
   0x1 LB: > { %s381_s16 = sadd.s32 4294967295, %s457_s15   ;;  %p385_p0 = scmp.ge.s32.totalorder %s457_s15, 1  ;;  %s457_s15 = sphi %s484_s15, %s14_s15  }
   0x2   : > { %p172_p1 = scmp.lt.s32.totalorder %s457_s15, 3 }
   0x4   : > { %p173_p2 = pnand %p385_p0, %p172_p1 }
   0x5   : > { %p203_p3 = scmp.lt.s32.totalorder (!%p173_p2), %s381_s16, 1 }
   0x6   : > { %176 = sbr.rel (%p173_p2) target bundleno = 182 (0xb6), region = 36 }
   0xb   : > { %v441_v0 = vld [vmem:[%s533_s2 + $0x38] sm:$0xff]  ;;  %v440_v1 = vld [vmem:[%s533_s2 + $0x30] sm:$0xff]  ;;  %v439_v2 = vld [vmem:[%s533_s2 + $0x28] sm:$0xff]  ;;  %s537_s16 = smov (!%p203_p3, %s381_s16), 1 }
   0xc   : > { %294 = vmatpush.bf16.msra.mxu0 %v441_v0  ;;  %v438_v3 = vld [vmem:[%s533_s2 + $0x20] sm:$0xff]  ;;  %v437_v4 = vld [vmem:[%s533_s2 + $0x18] sm:$0xff]  ;;  %v436_v5 = vld [vmem:[%s533_s2 + $0x10] sm:$0xff]  ;;  %s430_s5 = sshll.u32 %s537_s16, 3  ;;  %s431_s11 = sshll.u32 %s537_s16, 4 }
   0xd   : > { %v435_v6 = vld [vmem:[%s533_s2 + $0x8] sm:$0xff]  ;;  %v434_v7 = vld [vmem:[%s533_s2] sm:$0xff]  ;;  %s207_s10 = scalar_lea.vmem %s531_s0, %s430_s5  ;;  %s212_s14 = scalar_lea.vmem %s532_s1, %s431_s11 }
   0xe   : > { %v433_v8 = vld [vmem:[%s207_s10] sm:$0xff]  ;;  %s217_s21 = scalar_lea.vmem %s535_s4, %s431_s11  ;;  %v309_v15 = vld [vmem:[%s212_s14 + $0x8] sm:$0xff] }
   0xf   : > { %v450_v9 = vld [vmem:[%s534_s3] ss:$0 sm:$0xff] }
  0x10   : > { %295 = vmatpush.bf16.msra.mxu0 %v440_v1  ;;  %v308_v11 = vld [vmem:[%s212_s14] sm:$0xff] }
  0x14   : > { %296 = vmatpush.bf16.msra.mxu0 %v439_v2 }
  0x18   : > { %297 = vmatpush.bf16.msra.mxu0 %v438_v3 }
  0x1c   : > { %298 = vmatpush.bf16.msra.mxu0 %v437_v4 }
  0x20   : > { %299 = vmatpush.bf16.msra.mxu0 %v436_v5 }
  0x24   : > { %300 = vmatpush.bf16.msra.mxu0 %v435_v6 }
  0x28   : > { %301 = vmatpush.bf16.msra.mxu0 %v434_v7 }
  0x2b   : > { %302 = vmatmul.bf16.vlgmr.msra.gmra.mxu0 %v433_v8 }
  0xa8   : > { %v303_v10 = vpop.f32.mrf.mxu0 }
  0xa9   : > { %v304_v12 = vadd.f32 %v450_v9, %v303_v10 }
  0xab   : > { %v310_v13 = vadd.f32 %v308_v11, %v304_v12 }
  0xad   : > { %312 = vst [vmem:[%s217_s21] sm:$0xff] %v310_v13 }
  0xb0   : > { %v305_v14 = vpop.f32.mrf.mxu0 }
  0xb1   : > { %v306_v16 = vadd.f32 %v450_v9, %v305_v14 }
  0xb3   : > { %v311_v17 = vadd.f32 %v309_v15, %v306_v16 }
  0xb5   : > { %313 = vst [vmem:[%s217_s21 + $0x8] sm:$0xff] %v311_v17 }
  0xb6 PF: > { %s14_s15 = sadd.s32 1, %s457_s15  }
  0xb7   : > { %p11_p4 = scmp.ge.s32.totalorder %s14_s15, 4  }
  0xb9   :  { %13 = sbr.rel (!%p11_p4) target bundleno = 1 (0x1), region = 69 }

// kernel: decoder_layer.11
= control target key start
LH: loop header
LB: loop body
LE: loop exit
PB: predicated region body
PF: predicated region fallthrough
CT: control target
= control target key end

     0   :  { %s573_s18 = smov 0   ;;  %s637_s0 = inlined_call_operand.vmem [shape: f32[2,16,128], index: 0, kind: input, shape index: {}]   ;;  %s638_s1 = inlined_call_operand.vmem [shape: f32[1,128], index: 1, kind: input, shape index: {}]   ;;  %s639_s2 = inlined_call_operand.vmem [shape: f32[1,128], index: 2, kind: input, shape index: {}]   ;;  %s640_s3 = inlined_call_operand.vmem [shape: bf16[128,128], index: 3, kind: input, shape index: {}]   ;;  %s641_s4 = inlined_call_operand.vmem [shape: f32[1,128], index: 4, kind: input, shape index: {}]   ;;  %s642_s5 = inlined_call_operand.vmem [shape: bf16[2,16,128], index: 5, kind: output, shape index: {}]  }
   0x1 LB: > { %s458_s19 = sadd.s32 4294967295, %s541_s18   ;;  %p462_p0 = scmp.ge.s32.totalorder %s541_s18, 1  ;;  %s541_s18 = sphi %s573_s18, %s15_s18  }
   0x2   : > { %p187_p1 = scmp.lt.s32.totalorder %s541_s18, 3 }
   0x4   : > { %p188_p2 = pnand %p462_p0, %p187_p1 }
   0x5   : > { %p215_p3 = scmp.lt.s32.totalorder (!%p188_p2), %s458_s19, 1 }
   0x6   : > { %191 = sbr.rel (%p188_p2) target bundleno = 449 (0x1c1), region = 40 }
   0xb   : > { %s644_s19 = smov (!%p215_p3, %s458_s19), 1  ;;  %v237_v2 = vlaneseq  ;;  %v510_v14 = vld [vmem:[%s640_s3 + $0x38] sm:$0xff]  ;;  %v509_v15 = vld [vmem:[%s640_s3 + $0x30] sm:$0xff]  ;;  %v508_v16 = vld [vmem:[%s640_s3 + $0x28] sm:$0xff] }
   0xc   : > { %s501_s20 = sshll.u32 %s644_s19, 4  ;;  %385 = vmatpush.bf16.msra.mxu0 %v510_v14  ;;  %v507_v19 = vld [vmem:[%s640_s3 + $0x20] sm:$0xff]  ;;  %v506_v20 = vld [vmem:[%s640_s3 + $0x18] sm:$0xff]  ;;  %v505_v25 = vld [vmem:[%s640_s3 + $0x10] sm:$0xff] }
   0xd   : > { %s219_s23 = scalar_lea.vmem %s637_s0, %s501_s20  ;;  %v238_v3 = vand.u32 127, %v237_v2  ;;  %v504_v28 = vld [vmem:[%s640_s3 + $0x8] sm:$0xff]  ;;  %v503_v33 = vld [vmem:[%s640_s3] sm:$0xff] }
   0xe   : > { %v225_v0 = vld [vmem:[%s219_s23] sm:$0xff]  ;;  %v226_v1 = vld [vmem:[%s219_s23 + $0x8] sm:$0xff]  ;;  %s502_s23 = sshll.u32 %s644_s19, 3 }
   0xf   : > { %229 = vadd.xlane.f32.xlu0 %v225_v0  ;;  %vm239_vm0 = vcmp.lt.s32.totalorder %v238_v3, 64  ;;  %v524_v57 = vld [vmem:[%s638_s1] ss:$0 sm:$0xff]  ;;  %s224_s26 = scalar_lea.vmem %s642_s5, %s502_s23 }
  0x10   : > { %386 = vmatpush.bf16.msra.mxu0 %v509_v15  ;;  %v526_v15 = vld [vmem:[%s641_s4] ss:$0 sm:$0xff] }
  0x14   : > { %387 = vmatpush.bf16.msra.mxu0 %v508_v16 }
  0x17   : > { %231 = vadd.xlane.f32.xlu0 %v226_v1 }
  0x18   : > { %388 = vmatpush.bf16.msra.mxu0 %v507_v19 }
  0x1c   : > { %389 = vmatpush.bf16.msra.mxu0 %v506_v20 }
  0x20   : > { %390 = vmatpush.bf16.msra.mxu0 %v505_v25 }
  0x24   : > { %391 = vmatpush.bf16.msra.mxu0 %v504_v28 }
  0x28   : > { %392 = vmatpush.bf16.msra.mxu0 %v503_v33 }
  0x82   : > { %v230_v4 = vpop.xlane.xlu0 %229 }
  0x83   : > { %v233_v5 = vmul.f32 0.015625, %v230_v4 }
  0x85   : > { %v235_v6 = vsub.f32 %v225_v0, %v233_v5 }
  0x87   : > { %v587_v7 = vsel %vm239_vm0, %v235_v6, 0.0 }
  0x88   : > { %v242_v8 = vmul.f32 %v587_v7, %v587_v7 }
  0x8a   : > { %244 = vadd.xlane.f32.xlu1 %v242_v8  ;;  %v232_v9 = vpop.xlane.xlu0 %231  ;;  %v525_v8 = vld [vmem:[%s639_s2] ss:$0 sm:$0xff] }
  0x8b   : > { %v234_v10 = vmul.f32 0.015625, %v232_v9 }
  0x8d   : > { %v236_v11 = vsub.f32 %v226_v1, %v234_v10  ;;  %v253_v1 = vmul.f32 %v524_v57, %v587_v7 }
  0x8f   : > { %v591_v12 = vsel %vm239_vm0, %v236_v11, 0.0 }
  0x90   : > { %v243_v13 = vmul.f32 %v591_v12, %v591_v12  ;;  %v254_v4 = vmul.f32 %v524_v57, %v591_v12 }
  0x92   : > { %246 = vadd.xlane.f32.xlu1 %v243_v13 }
  0xfd   : > { %v245_v17 = vpop.xlane.xlu1 %244 }
  0xfe   : > { %v248_v18 = vmul.f32 0.015873017, %v245_v17 }
 0x100   : > { %527 = vrsqrt.f32 %v248_v18  ;;  %vm262_vm1 = vcmp.eq.f32.partialorder %v248_v18, inf  ;;  %v265_v36 = vand.u32 2147483648, %v248_v18  ;;  %vm264_vm2 = vcmp.eq.f32.partialorder %v248_v18, 0.0 }
 0x105   : > { %v247_v21 = vpop.xlane.xlu1 %246 }
 0x106   : > { %v528_v22 = vpop.eup %527  ;;  %v249_v23 = vmul.f32 0.015873017, %v247_v21 }
 0x107   : > { %v256_v24 = vmul.f32 %v528_v22, %v248_v18 }
 0x108   : > { %529 = vrsqrt.f32 %v249_v23  ;;  %vm274_vm3 = vcmp.eq.f32.partialorder %v249_v23, inf  ;;  %v277_v44 = vand.u32 2147483648, %v249_v23  ;;  %vm276_vm4 = vcmp.eq.f32.partialorder %v249_v23, 0.0 }
 0x109   : > { %v257_v26 = vmul.f32 %v528_v22, %v256_v24 }
 0x10b   : > { %v258_v27 = vmul.f32 0.5, %v257_v26 }
 0x10d   : > { %v259_v29 = vsub.f32 1.5, %v258_v27 }
 0x10e   : > { %v530_v30 = vpop.eup %529 }
 0x10f   : > { %v260_v31 = vmul.f32 %v528_v22, %v259_v29  ;;  %v268_v32 = vmul.f32 %v530_v30, %v249_v23 }
 0x111   : > { %v261_v34 = vmul.f32 %v260_v31, %v248_v18  ;;  %v269_v35 = vmul.f32 %v530_v30, %v268_v32 }
 0x113   : > { %v270_v37 = vmul.f32 0.5, %v269_v35  ;;  %v263_v38 = vsel %vm262_vm1, %v248_v18, %v261_v34 }
 0x114   : > { %v266_v39 = vsel %vm264_vm2, %v265_v36, %v263_v38 }
 0x115   : > { %v271_v40 = vsub.f32 1.5, %v270_v37  ;;  %v279_v41 = vadd.f32 1e-06, %v266_v39 }
 0x117   : > { %v272_v42 = vmul.f32 %v530_v30, %v271_v40  ;;  %531 = vrcp.f32 %v279_v41  ;;  %v292_v54 = vand.u32 2147483648, %v279_v41  ;;  %vm286_vm6 = vweird.f32 %v279_v41 }
 0x118   : > { %v290_v55 = vand.u32 2147483647, %v279_v41 }
 0x119   : > { %v273_v43 = vmul.f32 %v272_v42, %v249_v23  ;;  %v293_v60 = vor.u32 1.1754944e-38, %v292_v54 }
 0x11a   : > { %vm291_vm8 = vcmp.eq.f32.partialorder %v290_v55, 8.507059e+37 }
 0x11b   : > { %v275_v45 = vsel %vm274_vm3, %v249_v23, %v273_v43 }
 0x11c   : > { %v278_v46 = vsel %vm276_vm4, %v277_v44, %v275_v45 }
 0x11d   : > { %v532_v47 = vpop.eup %531  ;;  %v280_v48 = vadd.f32 1e-06, %v278_v46 }
 0x11e   : > { %v282_v49 = vmul.f32 %v532_v47, %v279_v41  ;;  %vm287_vm5 = vweird.f32 %v532_v47 }
 0x11f   : > { %533 = vrcp.f32 %v280_v48  ;;  %vm288_vm7 = vmor %vm286_vm6, %vm287_vm5  ;;  %v307_v61 = vand.u32 2147483648, %v280_v48  ;;  %v305_v63 = vand.u32 2147483647, %v280_v48  ;;  %vm301_vm10 = vweird.f32 %v280_v48 }
 0x120   : > { %v283_v50 = vsub.f32 1.0, %v282_v49 }
 0x121   : > { %v308_v3 = vor.u32 1.1754944e-38, %v307_v61  ;;  %vm306_vm12 = vcmp.eq.f32.partialorder %v305_v63, 8.507059e+37 }
 0x122   : > { %v284_v51 = vmul.f32 %v532_v47, %v283_v50 }
 0x124   : > { %v285_v52 = vadd.f32 %v532_v47, %v284_v51 }
 0x125   : > { %v534_v53 = vpop.eup %533 }
 0x126   : > { %v297_v56 = vmul.f32 %v534_v53, %v280_v48  ;;  %v289_v58 = vsel %vm288_vm7, %v532_v47, %v285_v52  ;;  %vm302_vm9 = vweird.f32 %v534_v53 }
 0x127   : > { %v294_v0 = vsel %vm291_vm8, %v293_v60, %v289_v58  ;;  %vm303_vm11 = vmor %vm301_vm10, %vm302_vm9 }
 0x128   : > { %v298_v59 = vsub.f32 1.0, %v297_v56  ;;  %v295_v5 = vmul.f32 %v294_v0, %v253_v1 }
 0x12a   : > { %v299_v62 = vmul.f32 %v534_v53, %v298_v59  ;;  %v314_v11 = vadd.f32 %v525_v8, %v295_v5 }
 0x12c   : > { %v300_v2 = vadd.f32 %v534_v53, %v299_v62 }
 0x12e   : > { %v304_v6 = vsel %vm303_vm11, %v534_v53, %v300_v2 }
 0x12f   : > { %v309_v9 = vsel %vm306_vm12, %v308_v3, %v304_v6 }
 0x130   : > { %v310_v10 = vmul.f32 %v309_v9, %v254_v4 }
 0x132   : > { %v315_v13 = vadd.f32 %v525_v8, %v310_v10 }
 0x134   : > { %v316_v14 = vpack.c.bf16 %v315_v13, %v314_v11 }
 0x136   : > { %393 = vmatmul.bf16.vlgmr.msra.gmra.mxu0 %v316_v14 }
 0x1b3   : > { %v394_v7 = vpop.f32.mrf.mxu0 }
 0x1b4   : > { %v395_v16 = vadd.f32 %v526_v15, %v394_v7 }
 0x1bb   : > { %v396_v12 = vpop.f32.mrf.mxu0 }
 0x1bc   : > { %v397_v17 = vadd.f32 %v526_v15, %v396_v12 }
 0x1be   : > { %v514_v18 = vpack.c.bf16 %v397_v17, %v395_v16 }
 0x1c0   : > { %515 = vst [vmem:[%s224_s26] sm:$0xff] %v514_v18  }
 0x1c1 PF: > { %s15_s18 = sadd.s32 1, %s541_s18  }
 0x1c2   : > { %p12_p4 = scmp.ge.s32.totalorder %s15_s18, 4  }
 0x1c4   :  { %14 = sbr.rel (!%p12_p4) target bundleno = 1 (0x1), region = 70 }

// kernel: decoder_layer.15
= control target key start
LH: loop header
LB: loop body
LE: loop exit
PB: predicated region body
PF: predicated region fallthrough
CT: control target
= control target key end

     0   :  { %12 = vsyncpa [#allocation4], 0  ;;  %s1562_s0 = inlined_call_operand.vmem [shape: f32[2,16,128], index: 0, kind: input, shape index: {}]   ;;  %s1563_s1 = inlined_call_operand.vmem [shape: f32[1,128], index: 1, kind: input, shape index: {}]   ;;  %s1564_s2 = inlined_call_operand.vmem [shape: f32[1,128], index: 2, kind: input, shape index: {}]   ;;  %s1565_s3 = inlined_call_operand.vmem [shape: bf16[128,256], index: 3, kind: input, shape index: {}]   ;;  %s1566_s4 = inlined_call_operand.vmem [shape: f32[1,256], index: 4, kind: input, shape index: {}]   ;;  %s1567_s5 = inlined_call_operand.vmem [shape: bf16[256,128], index: 5, kind: input, shape index: {}]   ;;  %s1568_s6 = inlined_call_operand.vmem [shape: f32[1,128], index: 6, kind: input, shape index: {}]   ;;  %s1569_s7 = inlined_call_operand.hbm [shape: f32[2,16,128], index: 7, kind: output, shape index: {}]  }
   0x1   :  { %14 = vsyncpa [#allocation4 + $0x1], 0  ;;  %s1271_s24 = smov 0   ;;  %s1273_s25 = smov 0  }
   0x2   :  { %s1275_s26 = smov 0   ;;  %s1277_s27 = smov 0  }
   0x3   :  { %s1279_s28 = smov 0   ;;  %s1281_s29 = smov 0  }
   0x4 LB: > { %s893_s30 = sadd.s32 4294967295, %s1227_s29   ;;  %s894_s8 = sadd.s32 4294967294, %s1227_s29   ;;  %s1227_s29 = sphi %s1281_s29, %s20_s29   ;;  %s1223_s28 = sphi %s1279_s28, %s1576_s28   ;;  %s1219_s27 = sphi %s1277_s27, %s1575_s27   ;;  %s1215_s26 = sphi %s1275_s26, %s1574_s26   ;;  %s1211_s25 = sphi %s1273_s25, %s1573_s25   ;;  %s1207_s24 = sphi %s1271_s24, %s1572_s24  }
   0x5   : > { %s32_s9 = sadd.s32 1, %s1223_s28  ;;  %s206_s10 = sadd.s32 1, %s1215_s26 }
   0x6   : > { %p34_p0 = scmp.ge.s32.totalorder %s32_s9, 2  ;;  %p216_p1 = scmp.ne.s32.totalorder %s1215_s26, %s1211_s25 }
   0x7   : > { %p217_p2 = scmp.eq.s32.totalorder %s893_s30, 1  ;;  %p222_p3 = scmp.ne.s32.totalorder %s1211_s25, %s1207_s24 }
   0x8   : > { %s1578_s9 = smov (%p34_p0, %s32_s9), 0  ;;  %p223_p5 = scmp.eq.s32.totalorder %s894_s8, 1 }
   0x9   : > { %p1311_p4 = por %p217_p2, %p216_p1  ;;  %s203_s12 = ssub.s32 %s1223_s28, %s1578_s9 }
   0xa   : > { %p900_p6 = scmp.ge.s32.totalorder %s1227_s29, 1  ;;  %p204_p7 = scmp.eq.s32.totalorder %s203_s12, 0 }
   0xb   : > { %p1318_p8 = por %p223_p5, %p222_p3  ;;  %p284_p9 = scmp.lt.s32.totalorder %s1227_s29, 3 }
   0xc   : > { %s1324_s14 = scalar_select %p204_p7, %s1215_s26, %s206_s10  }
   0xd   : > { %p285_p10 = pnand %p900_p6, %p284_p9 }
   0xe   : > { %p330_p11 = scmp.lt.s32.totalorder (!%p285_p10), %s1219_s27, 1  ;;  %s327_s20 = sand.u32 (!%p285_p10), 1, %s1211_s25  }
   0xf   : > { %288 = sbr.rel (%p285_p10) target bundleno = 616 (0x268), region = 48  ;;  %s901_s21 = sshll.u32 (!%p285_p10), %s327_s20, 4 }
  0x10   : > { %s1075_s22 = sshll.u32 (!%p285_p10), %s1219_s27, 4  ;;  %s329_s10 = scalar_lea.vmem (!%p285_p10), [#allocation3], %s901_s21 }
  0x11   : > { %s777_s8 = scalar_lea.hbm (!%p285_p10), %s1569_s7, %s1075_s22  ;;  %s778_s12 = sshll.u32 (!%p285_p10), %s329_s10, 4  ;;  %s779_s12 = int_to_ptr.vmem [resolvable:$true] %s778_s12 }
  0x12   : > { %s1169_s21 = scalar_lea.hbm (!%p285_p10), %s1569_s7, 32 }
  0x14   : > { %s331_s15 = scalar_select %p330_p11, %s1219_s27, 1  ;;  %v368_v2 = vlaneseq  ;;  %v966_v16 = vld [vmem:[%s1565_s3 + $0x70] sm:$0xf]  ;;  %v1058_v17 = vld [vmem:[%s1565_s3 + $0x74] sm:$0xf0] }
  0x15   : > { %v1057_v18 = vld [vmem:[%s1565_s3 + $0x74] sm:$0xf]  ;;  %v968_v19 = vld [vmem:[%s1565_s3 + $0x78] sm:$0xf0]  ;;  %v967_v20 = vor.u32 %v1058_v17, %v966_v16  ;;  %v958_v22 = vld [vmem:[%s1565_s3 + $0x60] sm:$0xf] }
  0x16   : > { %s1041_s16 = sshll.u32 %s331_s15, 4  ;;  %v369_v3 = vand.u32 127, %v368_v2  ;;  %v971_v21 = vor.u32 %v1057_v18, %v968_v19  ;;  %v1056_v23 = vld [vmem:[%s1565_s3 + $0x64] sm:$0xf0]  ;;  %v1055_v24 = vld [vmem:[%s1565_s3 + $0x64] sm:$0xf] }
  0x17   : > { %s334_s19 = scalar_lea.vmem %s1562_s0, %s1041_s16  ;;  %569 = vmatpush.bf16.msra.mxu0 %v967_v20  ;;  %v959_v25 = vor.u32 %v1056_v23, %v958_v22  ;;  %v960_v26 = vld [vmem:[%s1565_s3 + $0x68] sm:$0xf0]  ;;  %v950_v32 = vld [vmem:[%s1565_s3 + $0x50] sm:$0xf]  ;;  %v1054_v33 = vld [vmem:[%s1565_s3 + $0x54] sm:$0xf0] }
  0x18   : > { %v1331_v0 = vld [vmem:[%s334_s19] sm:$0xff]  ;;  %v1334_v1 = vld [vmem:[%s334_s19 + $0x8] sm:$0xff]  ;;  %vm370_vm0 = vcmp.lt.s32.totalorder %v369_v3, 64  ;;  %583 = vmatpush.bf16.msra.mxu1 %v971_v21  ;;  %v963_v28 = vor.u32 %v1055_v24, %v960_v26  ;;  %v1053_v34 = vld [vmem:[%s1565_s3 + $0x54] sm:$0xf]  ;;  %v951_v37 = vor.u32 %v1054_v33, %v950_v32  ;;  %s780_s15 = sshll.u32 %s777_s8, 4  ;;  %s781_s15 = int_to_ptr.hbm [resolvable:$true] %s780_s15 }
  0x19   : > { %360 = vadd.xlane.f32.xlu0 %v1331_v0  ;;  %v952_v35 = vld [vmem:[%s1565_s3 + $0x58] sm:$0xf0]  ;;  %v942_v40 = vld [vmem:[%s1565_s3 + $0x40] sm:$0xf]  ;;  %v1052_v41 = vld [vmem:[%s1565_s3 + $0x44] sm:$0xf0] }
  0x1a   : > { %v955_v38 = vor.u32 %v1053_v34, %v952_v35  ;;  %v943_v42 = vor.u32 %v1052_v41, %v942_v40  ;;  %v1051_v43 = vld [vmem:[%s1565_s3 + $0x44] sm:$0xf]  ;;  %v944_v44 = vld [vmem:[%s1565_s3 + $0x48] sm:$0xf0]  ;;  %v934_v47 = vld [vmem:[%s1565_s3 + $0x30] sm:$0xf] }
  0x1b   : > { %570 = vmatpush.bf16.msra.mxu0 %v959_v25  ;;  %v947_v46 = vor.u32 %v1051_v43, %v944_v44  ;;  %v1050_v48 = vld [vmem:[%s1565_s3 + $0x34] sm:$0xf0]  ;;  %v1049_v51 = vld [vmem:[%s1565_s3 + $0x34] sm:$0xf]  ;;  %v936_v52 = vld [vmem:[%s1565_s3 + $0x38] sm:$0xf0] }
  0x1c   : > { %584 = vmatpush.bf16.msra.mxu1 %v963_v28  ;;  %v935_v50 = vor.u32 %v1050_v48, %v934_v47  ;;  %v939_v55 = vor.u32 %v1049_v51, %v936_v52  ;;  %v926_v56 = vld [vmem:[%s1565_s3 + $0x20] sm:$0xf]  ;;  %v1048_v57 = vld [vmem:[%s1565_s3 + $0x24] sm:$0xf0]  ;;  %v1047_v58 = vld [vmem:[%s1565_s3 + $0x24] sm:$0xf] }
  0x1d   : > { %v928_v59 = vld [vmem:[%s1565_s3 + $0x28] sm:$0xf0]  ;;  %v927_v3 = vor.u32 %v1048_v57, %v926_v56  ;;  %v910_v16 = vld [vmem:[%s1565_s3] sm:$0xf]  ;;  %v1044_v18 = vld [vmem:[%s1565_s3 + $0x4] sm:$0xf0] }
  0x1e   : > { %v1043_v19 = vld [vmem:[%s1565_s3 + $0x4] sm:$0xf]  ;;  %v912_v20 = vld [vmem:[%s1565_s3 + $0x8] sm:$0xf0]  ;;  %v911_v23 = vor.u32 %v1044_v18, %v910_v16  ;;  %v1066_v32 = vld [vmem:[%s1567_s5 + $0x38] sm:$0xff]  ;;  %s766_s27 = scalar_lea.sflag [#allocation4], %s327_s20 }
  0x1f   : > { %571 = vmatpush.bf16.msra.mxu0 %v951_v37  ;;  %v915_v24 = vor.u32 %v1043_v19, %v912_v20  ;;  %v1074_v33 = vld [vmem:[%s1567_s5 + $0x78] sm:$0xff]  ;;  %731 = vmatpush.bf16.msra.mxu2 %v1066_v32  ;;  %v1073_v35 = vld [vmem:[%s1567_s5 + $0x70] sm:$0xff]  ;;  %v1072_v40 = vld [vmem:[%s1567_s5 + $0x68] sm:$0xff]  ;;  %s1163_s16 = sshra.s32 %s781_s15, 4  ;;  %s1164_s16 = int_to_ptr.hbm [resolvable:$true] %s1163_s16 }
  0x20   : > { %585 = vmatpush.bf16.msra.mxu1 %v955_v38  ;;  %745 = vmatpush.bf16.msra.mxu3 %v1074_v33  ;;  %v1139_v43 = vld [vmem:[%s1563_s1] ss:$0 sm:$0xff]  ;;  %s1165_s17 = scalar_lea.hbm %s1164_s16, 16  ;;  %p1170_p1 = scmp.lt.s32.totalorder %s1164_s16, %s1569_s7 }
  0x21   : > { %362 = vadd.xlane.f32.xlu0 %v1334_v1  ;;  %v1063_v48 = vld [vmem:[%s1567_s5 + $0x20] sm:$0xff]  ;;  %p1166_p12 = scmp.ne.s32.totalorder %s1164_s16, %s1165_s17  ;;  %p1171_p2 = scmp.lt.s32.totalorder %s1169_s21, %s1165_s17 }
  0x23   : > { %572 = vmatpush.bf16.msra.mxu0 %v943_v42  ;;  %p1167_p13 = pnand %p1166_p12, %p1311_p4  ;;  %p1172_p3 = por %p1171_p2, %p1170_p1 }
  0x24   : > { %586 = vmatpush.bf16.msra.mxu1 %v947_v46  ;;  %746 = vmatpush.bf16.msra.mxu3 %v1073_v35 }
  0x25   : > { %p1168_p0 = pneg %p1167_p13 }
  0x27   : > { %573 = vmatpush.bf16.msra.mxu0 %v935_v50  ;;  %p1173_p5 = pnand %p1172_p3, %p1168_p0 }
  0x28   : > { %587 = vmatpush.bf16.msra.mxu1 %v939_v55  ;;  %747 = vmatpush.bf16.msra.mxu3 %v1072_v40 }
  0x2b   : > { %574 = vmatpush.bf16.msra.mxu0 %v927_v3  ;;  %v1070_v3 = vld [vmem:[%s1567_s5 + $0x58] sm:$0xff] }
  0x8c   : > { %v361_v4 = vpop.xlane.xlu0 %360 }
  0x8d   : > { %v364_v5 = vmul.f32 0.015625, %v361_v4  ;;  %v931_v4 = vor.u32 %v1047_v58, %v928_v59  ;;  %v1140_v59 = vld [vmem:[%s1564_s2] ss:$0 sm:$0xff] }
  0x8f   : > { %v366_v6 = vsub.f32 %v1331_v0, %v364_v5  ;;  %v918_v5 = vld [vmem:[%s1565_s3 + $0x10] sm:$0xf]  ;;  %588 = vmatpush.bf16.msra.mxu1 %v931_v4 }
  0x90   : > { %v1061_v4 = vld [vmem:[%s1567_s5 + $0x10] sm:$0xff] }
  0x91   : > { %v1338_v7 = vsel %vm370_vm0, %v366_v6, 0.0 }
  0x92   : > { %v373_v8 = vmul.f32 %v1338_v7, %v1338_v7 }
  0x94   : > { %375 = vadd.xlane.f32.xlu1 %v373_v8  ;;  %v363_v9 = vpop.xlane.xlu0 %362  ;;  %v1046_v8 = vld [vmem:[%s1565_s3 + $0x14] sm:$0xf0] }
  0x95   : > { %v365_v10 = vmul.f32 0.015625, %v363_v9  ;;  %v1045_v9 = vld [vmem:[%s1565_s3 + $0x14] sm:$0xf] }
  0x97   : > { %v367_v11 = vsub.f32 %v1334_v1, %v365_v10  ;;  %v920_v10 = vld [vmem:[%s1565_s3 + $0x18] sm:$0xf0] }
  0x99   : > { %v1343_v12 = vsel %vm370_vm0, %v367_v11, 0.0 }
  0x9a   : > { %v374_v13 = vmul.f32 %v1343_v12, %v1343_v12  ;;  %v385_v56 = vmul.f32 %v1139_v43, %v1343_v12  ;;  %v1062_v12 = vld [vmem:[%s1567_s5 + $0x18] sm:$0xff] }
  0x9c   : > { %377 = vadd.xlane.f32.xlu1 %v374_v13 }
 0x107   : > { %v376_v14 = vpop.xlane.xlu1 %375 }
 0x108   : > { %v1347_v15 = vmul.f32 0.015873017, %v376_v14  ;;  %v919_v14 = vor.u32 %v1046_v8, %v918_v5  ;;  %v1069_v5 = vld [vmem:[%s1567_s5 + $0x50] sm:$0xff]  ;;  %v1068_v8 = vld [vmem:[%s1567_s5 + $0x48] sm:$0xff] }
 0x10a   : > { %1141 = vrsqrt.f32 %v1347_v15  ;;  %vm393_vm1 = vcmp.eq.f32.partialorder %v1347_v15, inf  ;;  %vm395_vm2 = vcmp.eq.f32.partialorder %v1347_v15, 0.0  ;;  %v396_v62 = vand.u32 2147483648, %v1347_v15  ;;  %575 = vmatpush.bf16.msra.mxu0 %v919_v14 }
 0x10e   : > { %576 = vmatpush.bf16.msra.mxu0 %v911_v23 }
 0x10f   : > { %v378_v27 = vpop.xlane.xlu1 %377 }
 0x110   : > { %v1142_v29 = vpop.eup %1141  ;;  %v1374_v30 = vmul.f32 0.015873017, %v378_v27 }
 0x111   : > { %v387_v31 = vmul.f32 %v1142_v29, %v1347_v15 }
 0x112   : > { %1143 = vrsqrt.f32 %v1374_v30  ;;  %vm405_vm3 = vcmp.eq.f32.partialorder %v1374_v30, inf  ;;  %v408_v22 = vand.u32 2147483648, %v1374_v30  ;;  %vm407_vm4 = vcmp.eq.f32.partialorder %v1374_v30, 0.0 }
 0x113   : > { %v388_v36 = vmul.f32 %v1142_v29, %v387_v31 }
 0x115   : > { %v389_v39 = vmul.f32 0.5, %v388_v36 }
 0x117   : > { %v390_v45 = vsub.f32 1.5, %v389_v39  ;;  %v1064_v39 = vld [vmem:[%s1567_s5 + $0x28] sm:$0xff] }
 0x118   : > { %v1144_v49 = vpop.eup %1143 }
 0x119   : > { %v391_v53 = vmul.f32 %v1142_v29, %v390_v45  ;;  %v399_v54 = vmul.f32 %v1144_v49, %v1374_v30 }
 0x11b   : > { %v392_v60 = vmul.f32 %v391_v53, %v1347_v15  ;;  %v400_v61 = vmul.f32 %v1144_v49, %v399_v54  ;;  %v384_v53 = vmul.f32 %v1139_v43, %v1338_v7 }
 0x11d   : > { %v394_v63 = vsel %vm393_vm1, %v1347_v15, %v392_v60  ;;  %v401_v2 = vmul.f32 0.5, %v400_v61  ;;  %v923_v15 = vor.u32 %v1045_v9, %v920_v10  ;;  %v1059_v9 = vld [vmem:[%s1567_s5] sm:$0xff] }
 0x11e   : > { %v397_v6 = vsel %vm395_vm2, %v396_v62, %v394_v63  ;;  %v1067_v10 = vld [vmem:[%s1567_s5 + $0x40] sm:$0xff] }
 0x11f   : > { %v410_v11 = vadd.f32 1e-06, %v397_v6  ;;  %v402_v13 = vsub.f32 1.5, %v401_v2  ;;  %589 = vmatpush.bf16.msra.mxu1 %v923_v15  ;;  %v1060_v6 = vld [vmem:[%s1567_s5 + $0x8] sm:$0xff] }
 0x121   : > { %1145 = vrcp.f32 %v410_v11  ;;  %v403_v17 = vmul.f32 %v1144_v49, %v402_v13  ;;  %v423_v38 = vand.u32 2147483648, %v410_v11  ;;  %vm417_vm6 = vweird.f32 %v410_v11  ;;  %v1071_v49 = vld [vmem:[%s1567_s5 + $0x60] sm:$0xff] }
 0x122   : > { %v421_v41 = vand.u32 2147483647, %v410_v11  ;;  %748 = vmatpush.bf16.msra.mxu3 %v1071_v49 }
 0x123   : > { %v404_v21 = vmul.f32 %v403_v17, %v1374_v30  ;;  %590 = vmatpush.bf16.msra.mxu1 %v915_v24  ;;  %v424_v46 = vor.u32 1.1754944e-38, %v423_v38 }
 0x124   : > { %vm422_vm8 = vcmp.eq.f32.partialorder %v421_v41, 8.507059e+37 }
 0x125   : > { %v406_v25 = vsel %vm405_vm3, %v1374_v30, %v404_v21  ;;  %v1065_v30 = vld [vmem:[%s1567_s5 + $0x30] sm:$0xff] }
 0x126   : > { %v409_v27 = vsel %vm407_vm4, %v408_v22, %v406_v25  ;;  %732 = vmatpush.bf16.msra.mxu2 %v1065_v30  ;;  %749 = vmatpush.bf16.msra.mxu3 %v1070_v3 }
 0x127   : > { %v1146_v26 = vpop.eup %1145  ;;  %v411_v29 = vadd.f32 1e-06, %v409_v27 }
 0x128   : > { %v413_v28 = vmul.f32 %v1146_v26, %v410_v11  ;;  %vm418_vm5 = vweird.f32 %v1146_v26  ;;  %v477_v11 = vld [vmem:[%s1566_s4] sm:$0x3] }
 0x129   : > { %1147 = vrcp.f32 %v411_v29  ;;  %vm419_vm7 = vmor %vm417_vm6, %vm418_vm5  ;;  %v438_v47 = vand.u32 2147483648, %v411_v29  ;;  %v436_v51 = vand.u32 2147483647, %v411_v29  ;;  %vm432_vm10 = vweird.f32 %v411_v29 }
 0x12a   : > { %v414_v31 = vsub.f32 1.0, %v413_v28  ;;  %733 = vmatpush.bf16.msra.mxu2 %v1064_v39  ;;  %750 = vmatpush.bf16.msra.mxu3 %v1069_v5  ;;  %v479_v15 = vperm.slane %v477_v11, 0  ;;  %v480_v16 = vperm.slane %v477_v11, 1 }
 0x12b   : > { %v439_v55 = vor.u32 1.1754944e-38, %v438_v47  ;;  %vm437_vm12 = vcmp.eq.f32.partialorder %v436_v51, 8.507059e+37 }
 0x12c   : > { %v415_v34 = vmul.f32 %v1146_v26, %v414_v31 }
 0x12e   : > { %v416_v36 = vadd.f32 %v1146_v26, %v415_v34  ;;  %734 = vmatpush.bf16.msra.mxu2 %v1063_v48  ;;  %751 = vmatpush.bf16.msra.mxu3 %v1068_v8 }
 0x12f   : > { %v1148_v37 = vpop.eup %1147 }
 0x130   : > { %v428_v42 = vmul.f32 %v1148_v37, %v411_v29  ;;  %v420_v45 = vsel %vm419_vm7, %v1146_v26, %v416_v36  ;;  %vm433_vm9 = vweird.f32 %v1148_v37  ;;  %v1138_v29 = vld [vmem:[%s1568_s6] ss:$0 sm:$0xff] }
 0x131   : > { %v425_v52 = vsel %vm422_vm8, %v424_v46, %v420_v45  ;;  %vm434_vm11 = vmor %vm432_vm10, %vm433_vm9  ;;  %v455_v31 = vadd.f32 %v1138_v29, %v1331_v0  ;;  %v456_v35 = vadd.f32 %v1138_v29, %v1334_v1 }
 0x132   : > { %v429_v44 = vsub.f32 1.0, %v428_v42  ;;  %v426_v57 = vmul.f32 %v425_v52, %v384_v53  ;;  %735 = vmatpush.bf16.msra.mxu2 %v1062_v12  ;;  %752 = vmatpush.bf16.msra.mxu3 %v1067_v10 }
 0x134   : > { %v430_v50 = vmul.f32 %v1148_v37, %v429_v44  ;;  %v445_v62 = vadd.f32 %v1140_v59, %v426_v57 }
 0x136   : > { %v431_v54 = vadd.f32 %v1148_v37, %v430_v50  ;;  %736 = vmatpush.bf16.msra.mxu2 %v1061_v4 }
 0x138   : > { %v435_v58 = vsel %vm434_vm11, %v1148_v37, %v431_v54 }
 0x139   : > { %v440_v60 = vsel %vm437_vm12, %v439_v55, %v435_v58 }
 0x13a   : > { %v441_v61 = vmul.f32 %v440_v60, %v385_v56  ;;  %737 = vmatpush.bf16.msra.mxu2 %v1060_v6 }
 0x13c   : > { %v446_v63 = vadd.f32 %v1140_v59, %v441_v61 }
 0x13e   : > { %v1079_v7 = vpack.c.bf16 %v446_v63, %v445_v62  ;;  %738 = vmatpush.bf16.msra.mxu2 %v1059_v9 }
 0x140   : > { %1080 = vst [vmem:[#allocation2] sm:$0xff] %v1079_v7  }
 0x147   : > { %v1042_v2 = vld [vmem:[#allocation2] sm:$0xff] }
 0x148   : > { %577 = vmatmul.bf16.vlgmr.msra.gmra.mxu0 %v1042_v2  ;;  %591 = vmatmul.bf16.vlgmr.msra.gmra.mxu1 %v1042_v2 }
 0x1c5   : > { %v578_v13 = vpop.f32.mrf.mxu0  ;;  %v592_v14 = vpop.f32.mrf.mxu1 }
 0x1c6   : > { %v579_v17 = vadd.f32 %v578_v13, %v479_v15  ;;  %v593_v18 = vadd.f32 %v592_v14, %v480_v16 }
 0x1c8   : > { %v597_v23 = vmax.f32 %v579_v17, 0.0  ;;  %v598_v24 = vmax.f32 %v593_v18, 0.0 }
 0x1cd   : > { %v580_v19 = vpop.f32.mrf.mxu0  ;;  %v594_v20 = vpop.f32.mrf.mxu1 }
 0x1ce   : > { %v581_v21 = vadd.f32 %v580_v19, %v479_v15  ;;  %v595_v22 = vadd.f32 %v594_v20, %v480_v16 }
 0x1d0   : > { %v599_v25 = vmax.f32 %v581_v21, 0.0  ;;  %v600_v26 = vmax.f32 %v595_v22, 0.0 }
 0x1d2   : > { %v601_v27 = vpack.c.bf16 %v599_v25, %v597_v23  ;;  %v602_v28 = vpack.c.bf16 %v600_v26, %v598_v24 }
 0x1d4   : > { %739 = vmatmul.bf16.vlgmr.msra.gmra.mxu2 %v601_v27  ;;  %753 = vmatmul.bf16.vlgmr.msra.gmra.mxu3 %v602_v28 }
 0x257   : > { %v740_v32 = vpop.f32.mrf.mxu2  ;;  %v754_v33 = vpop.f32.mrf.mxu3 }
 0x258   : > { %v755_v34 = vadd.f32 %v754_v33, %v740_v32 }
 0x25a   : > { %v761_v30 = vadd.f32 %v755_v34, %v455_v31 }
 0x25c   : > { %763 = vst [vmem:[%s329_s10] sm:$0xff] %v761_v30 }
 0x25f   : > { %v742_v36 = vpop.f32.mrf.mxu2  ;;  %v756_v37 = vpop.f32.mrf.mxu3 }
 0x260   : > { %v757_v38 = vadd.f32 %v756_v37, %v742_v36 }
 0x262   : > { %v762_v0 = vadd.f32 %v757_v38, %v456_v35 }
 0x264   : > { %764 = vst [vmem:[%s329_s10 + $0x8] sm:$0xff] %v762_v0 }
 0x265   : > { %1176 = shalt.err (!%p1173_p5)
}
 0x266   : > { %s1229_s20 = smov 128   ;;  %s1230_s30 = smov 8  }
 0x267   : > { %1081 = dma.vmem_to_hbm [thread:$0]  (%p1311_p4), %s779_s12, 256, %s781_s15, %s766_s27, %s1229_s20, %s1229_s20, %s1230_s30  }
 0x268 PF: > { %p1087_p6 = scmp.ge.s32.totalorder %s1227_s29, 2  ;;  %s795_s8 = sand.u32 1, %s1207_s24  }
 0x269   : > { %s796_s10 = scalar_lea.sflag [#allocation4], %s795_s8 }
 0x26a   : > { %p1084_p7 = pnand %p1087_p6, %p1318_p8 }
 0x26c   : > { %p1085_p9 = pneg %p1084_p7 }
 0x26e   : > { %1202 = dma.done.wait (%p1085_p9), %s796_s10, 256  }
 0x26f   : > { %1204 = vsyncadd (%p1085_p9), %s796_s10, 4294967040  ;;  %s20_s29 = sadd.s32 1, %s1227_s29   ;;  %s1572_s24 = smov %s1211_s25 }
 0x270   : > { %p17_p10 = scmp.ge.s32.totalorder %s20_s29, 4   ;;  %s1573_s25 = smov %s1215_s26 }
 0x271   : > { %s1574_s26 = smov %s1324_s14  ;;  %s1575_s27 = smov %s1223_s28 }
 0x272   : > { %s1576_s28 = smov %s1578_s9  ;;  %19 = sbr.rel (!%p17_p10) target bundleno = 4 (0x4), region = 96 }
 0x277   :  { %802 = vsyncpa [#allocation4], 1 }
 0x278   :  { %804 = vsyncpa [#allocation4 + $0x1], 1 }

// kernel: decoder_layer.12
= control target key start
LH: loop header
LB: loop body
LE: loop exit
PB: predicated region body
PF: predicated region fallthrough
CT: control target
= control target key end

     0   :  { %s482_s12 = smov 0   ;;  %s605_s0 = inlined_call_operand.vmem [shape: f32[2,8,128], index: 0, kind: input, shape index: {}]   ;;  %s606_s1 = inlined_call_operand.vmem [shape: bf16[128,256], index: 1, kind: input, shape index: {}]   ;;  %s607_s2 = inlined_call_operand.vmem [shape: f32[1,256], index: 2, kind: input, shape index: {}]   ;;  %s608_s3 = inlined_call_operand.vmem [shape: bf16[2,8,256], index: 3, kind: output, shape index: {}]  }
   0x1 LB: > { %s355_s13 = sadd.s32 4294967295, %s460_s12   ;;  %p359_p0 = scmp.ge.s32.totalorder %s460_s12, 1  ;;  %s460_s12 = sphi %s482_s12, %s13_s12  }
   0x2   : > { %p136_p1 = scmp.lt.s32.totalorder %s460_s12, 3 }
   0x4   : > { %p137_p2 = pnand %p359_p0, %p136_p1 }
   0x5   : > { %p159_p3 = scmp.lt.s32.totalorder (!%p137_p2), %s355_s13, 1 }
   0x6   : > { %140 = sbr.rel (%p137_p2) target bundleno = 180 (0xb4), region = 32 }
   0xb   : > { %v421_v0 = vld [vmem:[%s606_s1 + $0x70] sm:$0xf]  ;;  %v445_v1 = vld [vmem:[%s606_s1 + $0x74] sm:$0xf0]  ;;  %v444_v2 = vld [vmem:[%s606_s1 + $0x74] sm:$0xf] }
   0xc   : > { %v422_v3 = vor.u32 %v445_v1, %v421_v0  ;;  %v423_v4 = vld [vmem:[%s606_s1 + $0x78] sm:$0xf0]  ;;  %v413_v5 = vld [vmem:[%s606_s1 + $0x60] sm:$0xf]  ;;  %v443_v6 = vld [vmem:[%s606_s1 + $0x64] sm:$0xf0] }
   0xd   : > { %v426_v7 = vor.u32 %v444_v2, %v423_v4  ;;  %v442_v8 = vld [vmem:[%s606_s1 + $0x64] sm:$0xf]  ;;  %v415_v9 = vld [vmem:[%s606_s1 + $0x68] sm:$0xf0]  ;;  %v414_v10 = vor.u32 %v443_v6, %v413_v5  ;;  %v405_v12 = vld [vmem:[%s606_s1 + $0x50] sm:$0xf] }
   0xe   : > { %272 = vmatpush.bf16.msra.mxu0 %v422_v3  ;;  %v418_v11 = vor.u32 %v442_v8, %v415_v9  ;;  %v441_v13 = vld [vmem:[%s606_s1 + $0x54] sm:$0xf0]  ;;  %v440_v14 = vld [vmem:[%s606_s1 + $0x54] sm:$0xf]  ;;  %v407_v15 = vld [vmem:[%s606_s1 + $0x58] sm:$0xf0] }
   0xf   : > { %285 = vmatpush.bf16.msra.mxu1 %v426_v7  ;;  %v406_v16 = vor.u32 %v441_v13, %v405_v12  ;;  %v410_v17 = vor.u32 %v440_v14, %v407_v15  ;;  %v397_v18 = vld [vmem:[%s606_s1 + $0x40] sm:$0xf]  ;;  %v439_v19 = vld [vmem:[%s606_s1 + $0x44] sm:$0xf0]  ;;  %v438_v20 = vld [vmem:[%s606_s1 + $0x44] sm:$0xf] }
  0x10   : > { %v399_v21 = vld [vmem:[%s606_s1 + $0x48] sm:$0xf0]  ;;  %v398_v22 = vor.u32 %v439_v19, %v397_v18  ;;  %v389_v24 = vld [vmem:[%s606_s1 + $0x30] sm:$0xf]  ;;  %v437_v25 = vld [vmem:[%s606_s1 + $0x34] sm:$0xf0] }
  0x11   : > { %v402_v23 = vor.u32 %v438_v20, %v399_v21  ;;  %v436_v26 = vld [vmem:[%s606_s1 + $0x34] sm:$0xf]  ;;  %v391_v27 = vld [vmem:[%s606_s1 + $0x38] sm:$0xf0]  ;;  %v390_v28 = vor.u32 %v437_v25, %v389_v24  ;;  %v381_v30 = vld [vmem:[%s606_s1 + $0x20] sm:$0xf] }
  0x12   : > { %273 = vmatpush.bf16.msra.mxu0 %v414_v10  ;;  %v394_v29 = vor.u32 %v436_v26, %v391_v27  ;;  %v435_v31 = vld [vmem:[%s606_s1 + $0x24] sm:$0xf0]  ;;  %v434_v32 = vld [vmem:[%s606_s1 + $0x24] sm:$0xf]  ;;  %v383_v33 = vld [vmem:[%s606_s1 + $0x28] sm:$0xf0] }
  0x13   : > { %286 = vmatpush.bf16.msra.mxu1 %v418_v11  ;;  %s610_s13 = smov (!%p159_p3, %s355_s13), 1  ;;  %v382_v34 = vor.u32 %v435_v31, %v381_v30  ;;  %v386_v35 = vor.u32 %v434_v32, %v383_v33  ;;  %v373_v36 = vld [vmem:[%s606_s1 + $0x10] sm:$0xf]  ;;  %v433_v37 = vld [vmem:[%s606_s1 + $0x14] sm:$0xf0] }
  0x14   : > { %v432_v38 = vld [vmem:[%s606_s1 + $0x14] sm:$0xf]  ;;  %v375_v39 = vld [vmem:[%s606_s1 + $0x18] sm:$0xf0]  ;;  %s360_s20 = sshll.u32 %s610_s13, 3  ;;  %v374_v40 = vor.u32 %v433_v37, %v373_v36 }
  0x15   : > { %v378_v41 = vor.u32 %v432_v38, %v375_v39  ;;  %v365_v42 = vld [vmem:[%s606_s1] sm:$0xf]  ;;  %v431_v43 = vld [vmem:[%s606_s1 + $0x4] sm:$0xf0]  ;;  %s162_s27 = scalar_lea.vmem %s605_s0, %s360_s20  ;;  %v430_v44 = vld [vmem:[%s606_s1 + $0x4] sm:$0xf]  ;;  %s167_s8 = scalar_lea.vmem %s608_s3, %s360_s20 }
  0x16   : > { %274 = vmatpush.bf16.msra.mxu0 %v406_v16  ;;  %v367_v45 = vld [vmem:[%s606_s1 + $0x8] sm:$0xf0]  ;;  %v366_v46 = vor.u32 %v431_v43, %v365_v42  ;;  %v168_v47 = vld [vmem:[%s162_s27] sm:$0xff] }
  0x17   : > { %287 = vmatpush.bf16.msra.mxu1 %v410_v17  ;;  %v370_v48 = vor.u32 %v430_v44, %v367_v45  ;;  %v169_v49 = vpack.c.bf16 %v168_v47, %v168_v47  ;;  %v186_v50 = vld [vmem:[%s607_s2] sm:$0x3] }
  0x18   : > { %v188_v51 = vperm.slane %v186_v50, 0  ;;  %v189_v52 = vperm.slane %v186_v50, 1 }
  0x1a   : > { %275 = vmatpush.bf16.msra.mxu0 %v398_v22 }
  0x1b   : > { %288 = vmatpush.bf16.msra.mxu1 %v402_v23 }
  0x1e   : > { %276 = vmatpush.bf16.msra.mxu0 %v390_v28 }
  0x1f   : > { %289 = vmatpush.bf16.msra.mxu1 %v394_v29 }
  0x22   : > { %277 = vmatpush.bf16.msra.mxu0 %v382_v34 }
  0x23   : > { %290 = vmatpush.bf16.msra.mxu1 %v386_v35 }
  0x26   : > { %278 = vmatpush.bf16.msra.mxu0 %v374_v40 }
  0x27   : > { %291 = vmatpush.bf16.msra.mxu1 %v378_v41 }
  0x2a   : > { %279 = vmatpush.bf16.msra.mxu0 %v366_v46 }
  0x2b   : > { %292 = vmatpush.bf16.msra.mxu1 %v370_v48 }
  0x2d   : > { %280 = vmatmul.bf16.vlgmr.msra.gmra.mxu0 %v169_v49 }
  0x2e   : > { %293 = vmatmul.bf16.vlgmr.msra.gmra.mxu1 %v169_v49 }
  0xaa   : > { %v281_v53 = vpop.f32.mrf.mxu0 }
  0xab   : > { %v282_v54 = vadd.f32 %v281_v53, %v188_v51  ;;  %v294_v55 = vpop.f32.mrf.mxu1 }
  0xac   : > { %v295_v56 = vadd.f32 %v294_v55, %v189_v52 }
  0xae   : > { %v298_v57 = vpack.c.bf16 %v295_v56, %v282_v54 }
  0xb0   : > { %299 = vst [vmem:[%s167_s8] sm:$0xff] %v298_v57 }
  0xb2   : > { %v283_v58 = vpop.f32.mrf.mxu0 }
  0xb3   : > { %v296_v59 = vpop.f32.mrf.mxu1 }
  0xb4 PF: > { %s13_s12 = sadd.s32 1, %s460_s12  }
  0xb5   : > { %p10_p4 = scmp.ge.s32.totalorder %s13_s12, 4  }
  0xb7   :  { %12 = sbr.rel (!%p10_p4) target bundleno = 1 (0x1), region = 62 }

// kernel: decoder_layer.13
= control target key start
LH: loop header
LB: loop body
LE: loop exit
PB: predicated region body
PF: predicated region fallthrough
CT: control target
= control target key end

     0   :  { %s845_s15 = smov 0   ;;  %s951_s0 = inlined_call_operand.vmem [shape: bf16[2,16,128], index: 0, kind: input, shape index: {}]   ;;  %s952_s1 = inlined_call_operand.vmem [shape: bf16[2,8,256], index: 1, kind: input, shape index: {}, may-alias: {1,2}]   ;;  %s953_s2 = inlined_call_operand.vmem [shape: bf16[2,8,256], index: 2, kind: input, shape index: {}, may-alias: {1,2}]   ;;  %s954_s3 = inlined_call_operand.vmem [shape: f32[2,16,8], index: 3, kind: input, shape index: {}]   ;;  %s955_s4 = inlined_call_operand.vmem [shape: bf16[2,16,128], index: 4, kind: output, shape index: {}]  }
   0x1 LB: > { %s704_s16 = sadd.s32 4294967295, %s812_s15   ;;  %p708_p0 = scmp.ge.s32.totalorder %s812_s15, 1  ;;  %s812_s15 = sphi %s845_s15, %s14_s15  }
   0x2   : > { %p193_p1 = scmp.lt.s32.totalorder %s812_s15, 3 }
   0x4   : > { %p194_p2 = pnand %p708_p0, %p193_p1 }
   0x5   : > { %p235_p3 = scmp.lt.s32.totalorder (!%p194_p2), %s704_s16, 1  ;;  %s814_s24 = smov (!%p194_p2), 112  }
   0x6   : > { %197 = sbr.rel (%p194_p2) target bundleno = 1084 (0x43c), region = 36  ;;  %s815_s25 = smov (!%p194_p2), 80  }
   0x7   : > { %s816_s30 = smov (!%p194_p2), 96   ;;  %s817_s8 = smov (!%p194_p2), 16  }
   0x8   : > { %s818_s9 = smov (!%p194_p2), 32   ;;  %s819_s10 = smov (!%p194_p2), 48  }
   0xb   : > { %s957_s16 = smov (!%p235_p3, %s704_s16), 1  ;;  %vm273_vm0 = vcmask 130048   ;;  %vm298_vm1 = vcmask 64512   ;;  %vm325_vm2 = vcmask 1043456   ;;  %vm594_vm3 = vcmask 261120  }
   0xc   : > { %s853_s17 = sshll.u32 %s957_s16, 3  ;;  %s737_s26 = sshll.u32 %s957_s16, 4  ;;  %vm597_vm4 = vcmask 392192   ;;  %vm600_vm5 = vcmask 523264  }
   0xd   : > { %s239_s20 = scalar_lea.vmem %s951_s0, %s853_s17  ;;  %s244_s23 = scalar_lea.vmem %s952_s1, %s853_s17 }
   0xe   : > { %v264_v0 = vld [vmem:[%s244_s23] sm:$0xf]  ;;  %s255_s29 = scalar_lea.vmem %s954_s3, %s737_s26  ;;  %s656_s7 = scalar_lea.vmem %s953_s2, %s853_s17 }
   0xf   : > { %v739_v1 = vld [vmem:[%s239_s20] sm:$0xff]  ;;  %v278_v2 = vsel %vm273_vm0, %v264_v0, 0  ;;  %v346_v3 = vunpack.c.l.b16 %v264_v0  ;;  %v877_v14 = vld [vmem:[%s255_s29 + $0x8] sm:$0xff]  ;;  %s260_s13 = scalar_lea.vmem %s955_s4, %s853_s17 }
  0x10   : > { %287 = vmatpush.bf16.xpose.msra.mxu0 %v278_v2  ;;  %343 = vrot.lane.b32.xlu2 %v739_v1, %s814_s24  ;;  %v873_v9 = vld [vmem:[%s255_s29] sm:$0xff] }
  0x11   : > { %v347_v4 = vpack.c.b16 %v346_v3, %v346_v3  ;;  %v719_v38 = vld [vmem:[%s656_s7 + $0x4] sm:$0xf] }
  0x12   : > { %v327_v39 = vsel %vm325_vm2, %v719_v38, 0  ;;  %v398_v40 = vunpack.c.l.b16 %v719_v38 }
  0x13   : > { %348 = vrot.lane.b32.xlu1 %v347_v4, %s814_s24  ;;  %336 = vmatpush.bf16.msra.mxu1 %v327_v39 }
  0x14   : > { %v899_v41 = vpack.c.b16 %v398_v40, %v398_v40 }
  0x17   : > { %724 = vmatmul.msk.bf16.vlgmr.msra.gmra.mxu0 %vm273_vm0, %v739_v1 }
  0x18   : > { %497 = vrot.lane.b32.xlu2 %v347_v4, %s815_s25 }
  0x6a   : > { %v344_v7 = vpop.permute.xlu2 %343 }
  0x72   : > { %v498_v26 = vpop.permute.xlu2 %497 }
  0x73   : > { %v503_v29 = vsel %vm273_vm0, %v498_v26, 0 }
  0x74   : > { %512 = vmatpush.bf16.xpose.msrb.mxu0 %v503_v29 }
  0x85   : > { %v349_v5 = vpop.permute.xlu1 %348 }
  0x86   : > { %v354_v6 = vsel %vm273_vm0, %v349_v5, 0 }
  0x87   : > { %363 = vmatpush.bf16.xpose.msra.mxu2 %v354_v6 }
  0x8e   : > { %726 = vmatmul.msk.bf16.vlgmr.msra.gmra.mxu2 %vm273_vm0, %v344_v7 }
  0x94   : > { %v289_v8 = vpop.f32.mrf.mxu0 }
  0x95   : > { %v294_v10 = vmul.f32 0.25, %v289_v8 }
  0x97   : > { %v296_v11 = vadd.f32 %v294_v10, %v873_v9 }
  0x99   : > { %v299_v12 = vsel %vm298_vm1, %v296_v11, -inf }
  0x9a   : > { %300 = vmax.xlane.f32.xlu0 %v299_v12 }
  0x9c   : > { %v291_v13 = vpop.f32.mrf.mxu0 }
  0x9d   : > { %v295_v15 = vmul.f32 0.25, %v291_v13 }
  0x9f   : > { %v297_v16 = vadd.f32 %v295_v15, %v877_v14 }
  0xa1   : > { %v302_v17 = vsel %vm298_vm1, %v297_v16, -inf }
  0xa2   : > { %303 = vmax.xlane.f32.xlu0 %v302_v17 }
  0xb6   : > { %424 = vrot.lane.b32.xlu0 %v347_v4, %s816_s30 }
  0xbe   : > { %422 = vrot.lane.b32.xlu0 %v739_v1, %s816_s30 }
 0x10d   : > { %v301_v18 = vpop.xlane.xlu0 %300 }
 0x10e   : > { %v305_v19 = vsub.f32 %v296_v11, %v301_v18 }
 0x110   : > { %v307_v20 = vmul.f32 1.442695, %v305_v19 }
 0x111   : > { %v365_v27 = vpop.f32.mrf.mxu2 }
 0x112   : > { %774 = vpow2.f32 %v307_v20  ;;  %v370_v28 = vmul.f32 0.25, %v365_v27 }
 0x114   : > { %v886_v30 = vadd.f32 %v370_v28, %v873_v9 }
 0x115   : > { %v304_v21 = vpop.xlane.xlu0 %303 }
 0x116   : > { %v306_v22 = vsub.f32 %v297_v16, %v304_v21  ;;  %v374_v31 = vsel %vm298_vm1, %v886_v30, -inf }
 0x117   : > { %375 = vmax.xlane.f32.xlu0 %v374_v31 }
 0x118   : > { %v775_v23 = vpop.eup %774  ;;  %v309_v24 = vmul.f32 1.442695, %v306_v22 }
 0x119   : > { %v311_v25 = vsel %vm298_vm1, %v775_v23, 0.0  ;;  %v367_v34 = vpop.f32.mrf.mxu2 }
 0x11a   : > { %776 = vpow2.f32 %v309_v24  ;;  %312 = vadd.xlane.f32.xlu1 %v311_v25  ;;  %v371_v35 = vmul.f32 0.25, %v367_v34 }
 0x11c   : > { %v373_v36 = vadd.f32 %v371_v35, %v877_v14 }
 0x11e   : > { %v377_v37 = vsel %vm298_vm1, %v373_v36, -inf }
 0x120   : > { %v777_v32 = vpop.eup %776 }
 0x121   : > { %v314_v33 = vsel %vm298_vm1, %v777_v32, 0.0 }
 0x122   : > { %315 = vadd.xlane.f32.xlu2 %v314_v33 }
 0x128   : > { %v425_v42 = vpop.permute.xlu0 %424 }
 0x129   : > { %v430_v43 = vsel %vm273_vm0, %v425_v42, 0 }
 0x12a   : > { %439 = vmatpush.bf16.xpose.msrb.mxu1 %v430_v43 }
 0x130   : > { %v423_v52 = vpop.permute.xlu0 %422 }
 0x13a   : > { %495 = vrot.lane.b32.xlu2 %v739_v1, %s815_s25 }
 0x163   : > { %378 = vmax.xlane.f32.xlu2 %v377_v37 }
 0x17b   : > { %400 = vrot.lane.b32.xlu2 %v899_v41, %s814_s24 }
 0x18a   : > { %v376_v5 = vpop.xlane.xlu0 %375 }
 0x18b   : > { %v380_v8 = vsub.f32 %v886_v30, %v376_v5 }
 0x18d   : > { %v313_v44 = vpop.xlane.xlu1 %312  ;;  %v382_v11 = vmul.f32 1.442695, %v380_v8 }
 0x18e   : > { %778 = vrcp.f32 %v313_v44 }
 0x194   : > { %v779_v46 = vpop.eup %778 }
 0x195   : > { %v316_v45 = vpop.xlane.xlu2 %315  ;;  %v319_v49 = vmul.f32 %v779_v46, %v775_v23 }
 0x196   : > { %780 = vrcp.f32 %v316_v45 }
 0x19c   : > { %v781_v47 = vpop.eup %780 }
 0x19d   : > { %v496_v48 = vpop.permute.xlu2 %495  ;;  %v320_v50 = vmul.f32 %v781_v47, %v777_v32 }
 0x19e   : > { %730 = vmatmul.msk.bf16.vlgmr.msrb.gmra.mxu0 %vm273_vm0, %v496_v48 }
 0x19f   : > { %v321_v51 = vpack.c.bf16 %v320_v50, %v319_v49 }
 0x1a1   : > { %725 = vmatmul.msk.bf16.vlgmr.msra.gmra.mxu1 %vm298_vm1, %v321_v51 }
 0x1b1   : > { %728 = vmatmul.msk.bf16.vlgmr.msrb.gmra.mxu1 %vm273_vm0, %v423_v52 }
 0x1d6   : > { %v379_v53 = vpop.xlane.xlu2 %378 }
 0x1d7   : > { %v381_v54 = vsub.f32 %v373_v36, %v379_v53 }
 0x1d9   : > { %v384_v55 = vmul.f32 1.442695, %v381_v54 }
 0x1db   : > { %782 = vpow2.f32 %v384_v55 }
 0x1dc   : > { %784 = vpow2.f32 %v382_v11 }
 0x1de   : > { %v401_v22 = vpop.permute.xlu2 %400 }
 0x1df   : > { %v406_v24 = vsel %vm325_vm2, %v401_v22, 0 }
 0x1e0   : > { %415 = vmatpush.bf16.msra.mxu3 %v406_v24 }
 0x1e1   : > { %v907_v56 = vpop.eup %782 }
 0x1e2   : > { %v389_v57 = vsel %vm298_vm1, %v907_v56, 0.0  ;;  %v785_v17 = vpop.eup %784 }
 0x1e3   : > { %390 = vadd.xlane.f32.xlu0 %v389_v57  ;;  %v386_v18 = vsel %vm298_vm1, %v785_v17, 0.0 }
 0x21b   : > { %v514_v58 = vpop.f32.mrf.mxu0 }
 0x21c   : > { %v519_v59 = vmul.f32 0.25, %v514_v58 }
 0x21e   : > { %v911_v60 = vpop.f32.mrf.mxu1  ;;  %v521_v61 = vadd.f32 %v519_v59, %v873_v9 }
 0x220   : > { %v523_v62 = vsel %vm298_vm1, %v521_v61, -inf }
 0x221   : > { %524 = vmax.xlane.f32.xlu1 %v523_v62 }
 0x223   : > { %v516_v63 = vpop.f32.mrf.mxu0 }
 0x224   : > { %v520_v0 = vmul.f32 0.25, %v516_v63 }
 0x226   : > { %v522_v1 = vadd.f32 %v520_v0, %v877_v14  ;;  %v916_v2 = vpop.f32.mrf.mxu1 }
 0x228   : > { %v526_v3 = vsel %vm298_vm1, %v522_v1, -inf }
 0x229   : > { %527 = vmax.xlane.f32.xlu1 %v526_v3 }
 0x22e   : > { %v441_v4 = vpop.f32.mrf.mxu1 }
 0x22f   : > { %v446_v6 = vmul.f32 0.25, %v441_v4 }
 0x231   : > { %v448_v7 = vadd.f32 %v446_v6, %v873_v9 }
 0x233   : > { %v450_v10 = vsel %vm298_vm1, %v448_v7, -inf }
 0x234   : > { %451 = vmax.xlane.f32.xlu1 %v450_v10 }
 0x236   : > { %v443_v12 = vpop.f32.mrf.mxu1 }
 0x237   : > { %v447_v13 = vmul.f32 0.25, %v443_v12 }
 0x239   : > { %v449_v15 = vadd.f32 %v447_v13, %v877_v14 }
 0x23b   : > { %v453_v16 = vsel %vm298_vm1, %v449_v15, -inf }
 0x23c   : > { %454 = vmax.xlane.f32.xlu1 %v453_v16 }
 0x244   : > { %387 = vadd.xlane.f32.xlu1 %v386_v18 }
 0x256   : > { %v391_v36 = vpop.xlane.xlu0 %390 }
 0x294   : > { %v525_v19 = vpop.xlane.xlu1 %524 }
 0x295   : > { %v529_v9 = vsub.f32 %v521_v61, %v525_v19 }
 0x297   : > { %v531_v20 = vmul.f32 1.442695, %v529_v9 }
 0x299   : > { %786 = vpow2.f32 %v531_v20 }
 0x29c   : > { %v528_v21 = vpop.xlane.xlu1 %527 }
 0x29d   : > { %v530_v23 = vsub.f32 %v522_v1, %v528_v21 }
 0x29f   : > { %v787_v25 = vpop.eup %786  ;;  %v533_v14 = vmul.f32 1.442695, %v530_v23 }
 0x2a0   : > { %v535_v26 = vsel %vm298_vm1, %v787_v25, 0.0 }
 0x2a1   : > { %788 = vpow2.f32 %v533_v14  ;;  %536 = vadd.xlane.f32.xlu1 %v535_v26 }
 0x2a7   : > { %v789_v27 = vpop.eup %788  ;;  %v452_v28 = vpop.xlane.xlu1 %451 }
 0x2a8   : > { %v456_v29 = vsub.f32 %v448_v7, %v452_v28  ;;  %v538_v30 = vsel %vm298_vm1, %v789_v27, 0.0 }
 0x2a9   : > { %539 = vadd.xlane.f32.xlu0 %v538_v30 }
 0x2aa   : > { %v458_v31 = vmul.f32 1.442695, %v456_v29 }
 0x2ac   : > { %790 = vpow2.f32 %v458_v31 }
 0x2af   : > { %v455_v32 = vpop.xlane.xlu1 %454 }
 0x2b0   : > { %v457_v33 = vsub.f32 %v449_v15, %v455_v32 }
 0x2b2   : > { %v791_v34 = vpop.eup %790  ;;  %v460_v35 = vmul.f32 1.442695, %v457_v33 }
 0x2b3   : > { %v462_v37 = vsel %vm298_vm1, %v791_v34, 0.0 }
 0x2b4   : > { %792 = vpow2.f32 %v460_v35  ;;  %463 = vadd.xlane.f32.xlu1 %v462_v37 }
 0x2b5   : > { %794 = vrcp.f32 %v391_v36 }
 0x2b7   : > { %v388_v38 = vpop.xlane.xlu1 %387 }
 0x2b8   : > { %796 = vrcp.f32 %v388_v38 }
 0x2ba   : > { %v793_v39 = vpop.eup %792 }
 0x2bb   : > { %v465_v40 = vsel %vm298_vm1, %v793_v39, 0.0  ;;  %v795_v42 = vpop.eup %794 }
 0x2bc   : > { %466 = vadd.xlane.f32.xlu0 %v465_v40  ;;  %v395_v45 = vmul.f32 %v795_v42, %v907_v56 }
 0x2be   : > { %v797_v43 = vpop.eup %796 }
 0x2bf   : > { %v394_v44 = vmul.f32 %v797_v43, %v785_v17 }
 0x2c1   : > { %v396_v46 = vpack.c.bf16 %v395_v45, %v394_v44 }
 0x2c3   : > { %727 = vmatmul.msk.bf16.vlgmr.msra.gmra.mxu3 %vm298_vm1, %v396_v46 }
 0x2cd   : > { %473 = vrot.lane.b32.xlu1 %v899_v41, %s816_s30 }
 0x2d0   : > { %546 = vrot.lane.b32.xlu0 %v899_v41, %s815_s25 }
 0x314   : > { %v537_v48 = vpop.xlane.xlu1 %536 }
 0x31c   : > { %v540_v47 = vpop.xlane.xlu0 %539 }
 0x327   : > { %v464_v50 = vpop.xlane.xlu1 %463 }
 0x32f   : > { %v467_v49 = vpop.xlane.xlu0 %466 }
 0x330   : > { %798 = vrcp.f32 %v467_v49 }
 0x331   : > { %800 = vrcp.f32 %v464_v50 }
 0x332   : > { %802 = vrcp.f32 %v540_v47 }
 0x333   : > { %804 = vrcp.f32 %v537_v48 }
 0x336   : > { %v799_v51 = vpop.eup %798 }
 0x337   : > { %v801_v52 = vpop.eup %800  ;;  %v471_v54 = vmul.f32 %v799_v51, %v793_v39 }
 0x338   : > { %v803_v53 = vpop.eup %802  ;;  %v470_v57 = vmul.f32 %v801_v52, %v791_v34 }
 0x339   : > { %v805_v56 = vpop.eup %804  ;;  %v544_v59 = vmul.f32 %v803_v53, %v789_v27 }
 0x33a   : > { %v472_v61 = vpack.c.bf16 %v471_v54, %v470_v57  ;;  %v543_v62 = vmul.f32 %v805_v56, %v787_v25 }
 0x33c   : > { %v545_v0 = vpack.c.bf16 %v544_v59, %v543_v62 }
 0x33f   : > { %v474_v55 = vpop.permute.xlu1 %473 }
 0x340   : > { %v479_v58 = vsel %vm325_vm2, %v474_v55, 0 }
 0x341   : > { %488 = vmatpush.bf16.msrb.mxu3 %v479_v58 }
 0x342   : > { %v547_v41 = vpop.permute.xlu0 %546 }
 0x343   : > { %v552_v63 = vsel %vm325_vm2, %v547_v41, 0 }
 0x344   : > { %729 = vmatmul.msk.bf16.vlgmr.msrb.gmra.mxu3 %vm298_vm1, %v472_v61  ;;  %561 = vmatpush.bf16.msrb.mxu2 %v552_v63 }
 0x346   : > { %v417_v1 = vpop.f32.mrf.mxu3 }
 0x347   : > { %731 = vmatmul.msk.bf16.vlgmr.msrb.gmra.mxu2 %vm298_vm1, %v545_v0 }
 0x34e   : > { %v419_v3 = vpop.f32.mrf.mxu3 }
 0x34f   : > { %v759_v4 = vpack.i.bf16 %v419_v3, %v417_v1 }
 0x351   : > { %760 = vrot.lane.b32.xlu2 %v759_v4, %s817_s8 }
 0x3ab   : > { %v761_v12 = vpop.permute.xlu2 %760 }
 0x3ac   : > { %v763_v15 = vunpack.i.h.bf16 %v761_v12  ;;  %v762_v16 = vunpack.i.l.bf16 %v761_v12 }
 0x3ae   : > { %v593_v19 = vsel %vm273_vm0, %v916_v2, %v763_v15  ;;  %v592_v20 = vsel %vm273_vm0, %v911_v60, %v762_v16 }
 0x3c7   : > { %v490_v5 = vpop.f32.mrf.mxu3 }
 0x3ca   : > { %v563_v6 = vpop.f32.mrf.mxu2 }
 0x3cf   : > { %v492_v7 = vpop.f32.mrf.mxu3 }
 0x3d0   : > { %v764_v8 = vpack.i.bf16 %v492_v7, %v490_v5 }
 0x3d2   : > { %765 = vrot.lane.b32.xlu2 %v764_v8, %s818_s9  ;;  %v565_v10 = vpop.f32.mrf.mxu2 }
 0x3d3   : > { %v769_v11 = vpack.i.bf16 %v565_v10, %v563_v6 }
 0x3da   : > { %770 = vrot.lane.b32.xlu2 %v769_v11, %s819_s10 }
 0x42c   : > { %v766_v13 = vpop.permute.xlu2 %765 }
 0x42d   : > { %v768_v17 = vunpack.i.h.bf16 %v766_v13  ;;  %v767_v18 = vunpack.i.l.bf16 %v766_v13 }
 0x42f   : > { %v596_v23 = vsel %vm594_vm3, %v593_v19, %v768_v17  ;;  %v595_v24 = vsel %vm594_vm3, %v592_v20, %v767_v18 }
 0x434   : > { %v771_v9 = vpop.permute.xlu2 %770 }
 0x435   : > { %v773_v21 = vunpack.i.h.bf16 %v771_v9  ;;  %v772_v22 = vunpack.i.l.bf16 %v771_v9 }
 0x437   : > { %v599_v25 = vsel %vm597_vm4, %v596_v23, %v773_v21  ;;  %v598_v14 = vsel %vm597_vm4, %v595_v24, %v772_v22 }
 0x438   : > { %v602_v26 = vsel %vm600_vm5, %v599_v25, 0.0  ;;  %v601_v27 = vsel %vm600_vm5, %v598_v14, 0.0 }
 0x439   : > { %v743_v28 = vpack.c.bf16 %v602_v26, %v601_v27 }
 0x43b   : > { %744 = vst [vmem:[%s260_s13] sm:$0xff] %v743_v28  }
 0x43c PF: > { %s14_s15 = sadd.s32 1, %s812_s15  }
 0x43d   : > { %p11_p4 = scmp.ge.s32.totalorder %s14_s15, 4  }
 0x43f   :  { %13 = sbr.rel (!%p11_p4) target bundleno = 1 (0x1), region = 75 }

</bundles_post_ra>
